<compile_context>
chip_gen: v5e
topology: v5e:2x2
jax: 0.10.0
libtpu: 0.0.40
codegen_flags: <defaults>
</compile_context>

<pallas_src>
import math
import jax
import jax.numpy as jnp
from jax.experimental import pallas as pl
from jax.experimental.pallas import tpu as pltpu

# ----- scaled-down ViT-style image encoder config -----
B       = 2                      # batch
C       = 4                      # input channels
IMG     = 16                     # spatial size
PATCH   = 4                      # patch size
N_TOK   = (IMG // PATCH) ** 2    # 16 patch tokens
P_DIM   = C * PATCH * PATCH      # 64 flattened-patch dim
D       = 32                     # embed dim
NH      = 4                      # attention heads
HD      = D // NH                # 8
FF      = 64                     # MLP hidden dim
NLAYERS = 2                      # transformer blocks
EPS     = 1e-6                   # ViT LayerNorm eps
BN      = B * N_TOK              # 32 token rows total


# ------------------------------ kernel ---------------------------------------

def _layernorm(x, g, b):
    # one-pass statistics: E[x], E[x^2]
    mu = jnp.mean(x, axis=-1, keepdims=True)
    ms = jnp.mean(x * x, axis=-1, keepdims=True)
    var = ms - mu * mu
    return (x - mu) * jax.lax.rsqrt(var + EPS) * g + b


def encoder_kernel(patch_ref, pos_ref, pw_ref,
                   qkv_w_ref, out_w_ref, mlp_w1_ref, mlp_w2_ref,
                   vec_ref, fin_ref, o_ref):
    """Whole ViT encoder: patch embed -> NLAYERS blocks -> LN -> avg pool."""
    # ---- patch embedding: (BN, P) @ (P, D); patch bias folded into pos ----
    x = jnp.dot(patch_ref[...].astype(jnp.bfloat16), pw_ref[...],
                preferred_element_type=jnp.float32) + pos_ref[...]      # (BN, D) f32

    scale = jnp.float32(1.0 / math.sqrt(HD))

    for l in range(NLAYERS):                       # static unroll over blocks
        vec   = vec_ref[l]                         # (8, 4*D) f32 bias/LN slab
        b_qkv = vec[0:1, :3 * D]                   # (1, 3D)
        b_out = vec[0:1, 3 * D:]                   # (1, D)
        b1    = vec[1:2, :FF]
        b2    = vec[2:3, :D]
        ln1_g = vec[3:4, :D]
        ln1_b = vec[4:5, :D]
        ln2_g = vec[5:6, :D]
        ln2_b = vec[6:7, :D]

        # ---------------- multi-head self-attention (pre-LN) -----------------
        h = _layernorm(x, ln1_g, ln1_b)
        qkv = jnp.dot(h.astype(jnp.bfloat16), qkv_w_ref[l],
                      preferred_element_type=jnp.float32) + b_qkv       # (BN, 3D)
        wo = out_w_ref[l]                                               # (D, D) bf16

        attn_out = jnp.zeros((BN, D), jnp.float32)
        for hh in range(NH):                       # static head loop, batched over B
            qh = (qkv[:, hh * HD:(hh + 1) * HD] * scale).reshape(B, N_TOK, HD)
            kh = qkv[:, D + hh * HD:D + (hh + 1) * HD].reshape(B, N_TOK, HD)
            vh = qkv[:, 2 * D + hh * HD:2 * D + (hh + 1) * HD].reshape(B, N_TOK, HD)

            # scores: contract last dims directly (no kh.T / XLU transpose)
            s = jnp.einsum('bqd,bkd->bqk',
                           qh.astype(jnp.bfloat16), kh.astype(jnp.bfloat16),
                           preferred_element_type=jnp.float32)          # (B, N, N)
            m = jnp.max(s, axis=-1, keepdims=True)
            p = jnp.exp(s - m)
            p = p * pl.reciprocal(jnp.sum(p, axis=-1, keepdims=True), approx=True)

            ctx = jnp.einsum('bqk,bkd->bqd',
                             p.astype(jnp.bfloat16), vh.astype(jnp.bfloat16),
                             preferred_element_type=jnp.float32)        # (B, N, HD)
            # project this head's context through its row-slice of W_out
            # (avoids the per-head concatenate entirely)
            attn_out = attn_out + jnp.dot(
                ctx.reshape(BN, HD).astype(jnp.bfloat16),
                wo[hh * HD:(hh + 1) * HD, :],
                preferred_element_type=jnp.float32)
        x = x + attn_out + b_out

        # ----------------------------- MLP (pre-LN) ---------------------------
        h = _layernorm(x, ln2_g, ln2_b)
        h1 = jnp.dot(h.astype(jnp.bfloat16), mlp_w1_ref[l],
                     preferred_element_type=jnp.float32) + b1
        # TODO(synk): timm ViT uses exact erf-GELU; tanh-approx GELU used for TPU lowering.
        h1 = jax.nn.gelu(h1, approximate=True)
        h2 = jnp.dot(h1.astype(jnp.bfloat16), mlp_w2_ref[l],
                     preferred_element_type=jnp.float32) + b2
        x = x + h2

    # ---- final LayerNorm + global average pool over tokens (global_pool='avg') ----
    fin = fin_ref[...]                                                  # (2, D)
    x = _layernorm(x, fin[0:1, :], fin[1:2, :])
    o_ref[...] = jnp.mean(x.reshape(B, N_TOK, D), axis=1)               # (B, D)


# --------------------------- pallas wrapper -----------------------------------

def _full_spec(shape):
    n = len(shape)
    return pl.BlockSpec(shape, lambda i, n=n: (0,) * n)


def image_encoder_forward(params, x):
    """Equivalent of MemoryEfficientImageEncoder.forward -> (B, D) pooled features."""
    assert x.shape == (B, C, IMG, IMG), x.shape
    g = IMG // PATCH
    # patchify (pure layout glue, matches a stride=PATCH conv patch-embed)
    patches = x.reshape(B, C, g, PATCH, g, PATCH)
    patches = patches.transpose(0, 2, 4, 1, 3, 5).reshape(BN, P_DIM)
    # positional embedding with the patch-embed bias folded in, tiled over batch
    pos = jnp.tile(params['pos'] + params['patch_b'][None, :], (B, 1))   # (BN, D)

    return pl.pallas_call(
        encoder_kernel,
        out_shape=jax.ShapeDtypeStruct((B, D), jnp.float32),
        grid=(1,),
        in_specs=[
            _full_spec((BN, P_DIM)),             # patches
            _full_spec((BN, D)),                 # pos (+ patch bias)
            _full_spec((P_DIM, D)),              # patch-embed weight
            _full_spec((NLAYERS, D, 3 * D)),     # fused QKV weights
            _full_spec((NLAYERS, D, D)),         # attention output weights
            _full_spec((NLAYERS, D, FF)),        # MLP up
            _full_spec((NLAYERS, FF, D)),        # MLP down
            _full_spec((NLAYERS, 8, 4 * D)),     # packed biases + LN params
            _full_spec((2, D)),                  # final LN gamma/beta
        ],
        out_specs=_full_spec((B, D)),
        compiler_params=pltpu.CompilerParams(dimension_semantics=("arbitrary",)),
    )(patches, pos, params['patch_w'],
      params['qkv_w'], params['out_w'], params['mlp_w1'], params['mlp_w2'],
      params['vec'], params['final_ln'])


# ------------------------------ params ----------------------------------------

def init_params(key):
    keys = iter(jax.random.split(key, 64))

    def nrm(shape, scale=0.02):
        return scale * jax.random.normal(next(keys), shape, dtype=jnp.float32)

    params = {
        'patch_w': nrm((P_DIM, D)).astype(jnp.bfloat16),
        'patch_b': nrm((D,)),
        'pos': nrm((N_TOK, D)),
        'final_ln': jnp.stack([jnp.ones((D,), jnp.float32),
                               jnp.zeros((D,), jnp.float32)]),            # (2, D)
    }

    qkv_ws, out_ws, w1s, w2s, vecs = [], [], [], [], []
    for _ in range(NLAYERS):
        wq, wk, wv, wo = nrm((D, D)), nrm((D, D)), nrm((D, D)), nrm((D, D))
        bq, bk, bv, bo = nrm((D,)), nrm((D,)), nrm((D,)), nrm((D,))
        w1, b1 = nrm((D, FF)), nrm((FF,))
        w2, b2 = nrm((FF, D)), nrm((D,))
        ln1_g = jnp.ones((D,), jnp.float32)
        ln1_b = jnp.zeros((D,), jnp.float32)
        ln2_g = jnp.ones((D,), jnp.float32)
        ln2_b = jnp.zeros((D,), jnp.float32)

        W4 = 4 * D
        vec = jnp.stack([
            jnp.concatenate([bq, bk, bv, bo]),          # row 0: qkv + out biases (128)
            jnp.pad(b1, (0, W4 - FF)),                  # row 1: MLP up bias
            jnp.pad(b2, (0, W4 - D)),                   # row 2: MLP down bias
            jnp.pad(ln1_g, (0, W4 - D)),                # rows 3-6: LN params
            jnp.pad(ln1_b, (0, W4 - D)),
            jnp.pad(ln2_g, (0, W4 - D)),
            jnp.pad(ln2_b, (0, W4 - D)),
            jnp.zeros((W4,), jnp.float32),              # row 7: padding to 8 rows
        ])                                              # (8, 128)

        qkv_ws.append(jnp.concatenate([wq, wk, wv], axis=1))   # (D, 3D)
        out_ws.append(wo)
        w1s.append(w1)
        w2s.append(w2)
        vecs.append(vec)

    params['qkv_w'] = jnp.stack(qkv_ws).astype(jnp.bfloat16)   # (L, D, 3D)
    params['out_w'] = jnp.stack(out_ws).astype(jnp.bfloat16)   # (L, D, D)
    params['mlp_w1'] = jnp.stack(w1s).astype(jnp.bfloat16)     # (L, D, FF)
    params['mlp_w2'] = jnp.stack(w2s).astype(jnp.bfloat16)     # (L, FF, D)
    params['vec'] = jnp.stack(vecs)                            # (L, 8, 128) f32
    return params


# ------------------------------ main ------------------------------------------

if __name__ == "__main__":
    key = jax.random.PRNGKey(0)
    pkey, xkey = jax.random.split(key)

    params = init_params(pkey)
    x = jax.random.normal(xkey, (B, C, IMG, IMG), dtype=jnp.float32)

    out = image_encoder_forward(params, x)
    out = jax.block_until_ready(out)

    assert out.shape == (B, D), out.shape
    assert bool(jnp.all(jnp.isfinite(out)))
    print("KERNEL_OK")
</pallas_src>

<mosaic_0001>
module attributes {stable_mosaic.version = 11 : i64} {
  func.func @encoder_kernel(%arg0: i32, %arg1: memref<32x64xf32, #tpu.memory_space<vmem>>, %arg2: memref<32x32xf32, #tpu.memory_space<vmem>>, %arg3: memref<64x32xbf16, #tpu.memory_space<vmem>>, %arg4: memref<2x32x96xbf16, #tpu.memory_space<vmem>>, %arg5: memref<2x32x32xbf16, #tpu.memory_space<vmem>>, %arg6: memref<2x32x64xbf16, #tpu.memory_space<vmem>>, %arg7: memref<2x64x32xbf16, #tpu.memory_space<vmem>>, %arg8: memref<2x8x128xf32, #tpu.memory_space<vmem>>, %arg9: memref<2x32xf32, #tpu.memory_space<vmem>>, %arg10: memref<2x32xf32, #tpu.memory_space<vmem>>) attributes {dimension_semantics = [#tpu.dimension_semantics<arbitrary>], iteration_bounds = array<i64: 1>, scalar_prefetch = 0 : i64, scratch_operands = 0 : i64, tpu.core_type = #tpu.core_type<tc>, window_params = [{pipeline_mode = #tpu.pipeline_mode<synchronous>, transform_indices = @transform_0, window_bounds = array<i64: 32, 64>}, {pipeline_mode = #tpu.pipeline_mode<synchronous>, transform_indices = @transform_1, window_bounds = array<i64: 32, 32>}, {pipeline_mode = #tpu.pipeline_mode<synchronous>, transform_indices = @transform_2, window_bounds = array<i64: 64, 32>}, {pipeline_mode = #tpu.pipeline_mode<synchronous>, transform_indices = @transform_3, window_bounds = array<i64: 2, 32, 96>}, {pipeline_mode = #tpu.pipeline_mode<synchronous>, transform_indices = @transform_4, window_bounds = array<i64: 2, 32, 32>}, {pipeline_mode = #tpu.pipeline_mode<synchronous>, transform_indices = @transform_5, window_bounds = array<i64: 2, 32, 64>}, {pipeline_mode = #tpu.pipeline_mode<synchronous>, transform_indices = @transform_6, window_bounds = array<i64: 2, 64, 32>}, {pipeline_mode = #tpu.pipeline_mode<synchronous>, transform_indices = @transform_7, window_bounds = array<i64: 2, 8, 128>}, {pipeline_mode = #tpu.pipeline_mode<synchronous>, transform_indices = @transform_8, window_bounds = array<i64: 2, 32>}, {pipeline_mode = #tpu.pipeline_mode<synchronous>, transform_indices = @transform_9, window_bounds = array<i64: 2, 32>}]} {
    %c0 = arith.constant 0 : index
    %c0_0 = arith.constant 0 : index
    %0 = vector.load %arg1[%c0, %c0_0] : memref<32x64xf32, #tpu.memory_space<vmem>>, vector<32x64xf32>
    %1 = arith.truncf %0 : vector<32x64xf32> to vector<32x64xbf16>
    %c0_1 = arith.constant 0 : index
    %c0_2 = arith.constant 0 : index
    %2 = vector.load %arg3[%c0_1, %c0_2] : memref<64x32xbf16, #tpu.memory_space<vmem>>, vector<64x32xbf16>
    %cst = arith.constant dense<0.000000e+00> : vector<32x32xf32>
    %3 = tpu.matmul %1, %2, %cst {dimension_numbers = #tpu.dot_dimension_numbers<[1], [0], [0], [1], [0, 0, 1, 1], [], []>} : vector<32x64xbf16>, vector<64x32xbf16>, vector<32x32xf32> -> vector<32x32xf32>
    %c0_3 = arith.constant 0 : index
    %c0_4 = arith.constant 0 : index
    %4 = vector.load %arg2[%c0_3, %c0_4] : memref<32x32xf32, #tpu.memory_space<vmem>>, vector<32x32xf32>
    %5 = arith.addf %3, %4 : vector<32x32xf32>
    %c0_5 = arith.constant 0 : index
    %c0_6 = arith.constant 0 : index
    %c0_7 = arith.constant 0 : index
    %6 = vector.load %arg8[%c0_5, %c0_6, %c0_7] : memref<2x8x128xf32, #tpu.memory_space<vmem>>, vector<1x8x128xf32>
    %7 = vector.shape_cast %6 : vector<1x8x128xf32> to vector<8x128xf32>
    %8 = vector.extract_strided_slice %7 {offsets = [0, 0], sizes = [1, 96], strides = [1, 1]} : vector<8x128xf32> to vector<1x96xf32>
    %9 = vector.extract_strided_slice %7 {offsets = [0, 96], sizes = [1, 32], strides = [1, 1]} : vector<8x128xf32> to vector<1x32xf32>
    %10 = vector.extract_strided_slice %7 {offsets = [1, 0], sizes = [1, 64], strides = [1, 1]} : vector<8x128xf32> to vector<1x64xf32>
    %11 = vector.extract_strided_slice %7 {offsets = [2, 0], sizes = [1, 32], strides = [1, 1]} : vector<8x128xf32> to vector<1x32xf32>
    %12 = vector.extract_strided_slice %7 {offsets = [3, 0], sizes = [1, 32], strides = [1, 1]} : vector<8x128xf32> to vector<1x32xf32>
    %13 = vector.extract_strided_slice %7 {offsets = [4, 0], sizes = [1, 32], strides = [1, 1]} : vector<8x128xf32> to vector<1x32xf32>
    %14 = vector.extract_strided_slice %7 {offsets = [5, 0], sizes = [1, 32], strides = [1, 1]} : vector<8x128xf32> to vector<1x32xf32>
    %15 = vector.extract_strided_slice %7 {offsets = [6, 0], sizes = [1, 32], strides = [1, 1]} : vector<8x128xf32> to vector<1x32xf32>
    %cst_8 = arith.constant dense<0.000000e+00> : vector<32xf32>
    %16 = vector.multi_reduction <add>, %5, %cst_8 [1] : vector<32x32xf32> to vector<32xf32>
    %17 = vector.shape_cast %16 : vector<32xf32> to vector<32x1xf32>
    %cst_9 = arith.constant 3.200000e+01 : f32
    %18 = vector.broadcast %cst_9 : f32 to vector<32x1xf32>
    %19 = arith.divf %17, %18 : vector<32x1xf32>
    %20 = arith.mulf %5, %5 : vector<32x32xf32>
    %cst_10 = arith.constant dense<0.000000e+00> : vector<32xf32>
    %21 = vector.multi_reduction <add>, %20, %cst_10 [1] : vector<32x32xf32> to vector<32xf32>
    %22 = vector.shape_cast %21 : vector<32xf32> to vector<32x1xf32>
    %cst_11 = arith.constant 3.200000e+01 : f32
    %23 = vector.broadcast %cst_11 : f32 to vector<32x1xf32>
    %24 = arith.divf %22, %23 : vector<32x1xf32>
    %25 = arith.mulf %19, %19 : vector<32x1xf32>
    %26 = arith.subf %24, %25 : vector<32x1xf32>
    %27 = vector.broadcast %19 : vector<32x1xf32> to vector<32x32xf32>
    %28 = arith.subf %5, %27 : vector<32x32xf32>
    %cst_12 = arith.constant 9.99999997E-7 : f32
    %29 = vector.broadcast %cst_12 : f32 to vector<32x1xf32>
    %30 = arith.addf %26, %29 : vector<32x1xf32>
    %31 = math.rsqrt %30 : vector<32x1xf32>
    %32 = vector.broadcast %31 : vector<32x1xf32> to vector<32x32xf32>
    %33 = arith.mulf %28, %32 : vector<32x32xf32>
    %34 = vector.broadcast %12 : vector<1x32xf32> to vector<32x32xf32>
    %35 = arith.mulf %33, %34 : vector<32x32xf32>
    %36 = vector.broadcast %13 : vector<1x32xf32> to vector<32x32xf32>
    %37 = arith.addf %35, %36 : vector<32x32xf32>
    %38 = arith.truncf %37 : vector<32x32xf32> to vector<32x32xbf16>
    %c0_13 = arith.constant 0 : index
    %c0_14 = arith.constant 0 : index
    %c0_15 = arith.constant 0 : index
    %39 = vector.load %arg4[%c0_13, %c0_14, %c0_15] : memref<2x32x96xbf16, #tpu.memory_space<vmem>>, vector<1x32x96xbf16>
    %40 = vector.shape_cast %39 : vector<1x32x96xbf16> to vector<32x96xbf16>
    %cst_16 = arith.constant dense<0.000000e+00> : vector<32x96xf32>
    %41 = tpu.matmul %38, %40, %cst_16 {dimension_numbers = #tpu.dot_dimension_numbers<[1], [0], [0], [1], [0, 0, 1, 1], [], []>} : vector<32x32xbf16>, vector<32x96xbf16>, vector<32x96xf32> -> vector<32x96xf32>
    %42 = vector.broadcast %8 : vector<1x96xf32> to vector<32x96xf32>
    %43 = arith.addf %41, %42 : vector<32x96xf32>
    %c0_17 = arith.constant 0 : index
    %c0_18 = arith.constant 0 : index
    %c0_19 = arith.constant 0 : index
    %44 = vector.load %arg5[%c0_17, %c0_18, %c0_19] : memref<2x32x32xbf16, #tpu.memory_space<vmem>>, vector<1x32x32xbf16>
    %45 = vector.shape_cast %44 : vector<1x32x32xbf16> to vector<32x32xbf16>
    %cst_20 = arith.constant 0.000000e+00 : f32
    %46 = vector.broadcast %cst_20 : f32 to vector<32x32xf32>
    %47 = vector.extract_strided_slice %43 {offsets = [0, 0], sizes = [32, 8], strides = [1, 1]} : vector<32x96xf32> to vector<32x8xf32>
    %cst_21 = arith.constant 0.353553385 : f32
    %48 = vector.broadcast %cst_21 : f32 to vector<32x8xf32>
    %49 = arith.mulf %47, %48 : vector<32x8xf32>
    %50 = vector.shape_cast %49 : vector<32x8xf32> to vector<2x16x8xf32>
    %51 = vector.extract_strided_slice %43 {offsets = [0, 32], sizes = [32, 8], strides = [1, 1]} : vector<32x96xf32> to vector<32x8xf32>
    %52 = vector.shape_cast %51 : vector<32x8xf32> to vector<2x16x8xf32>
    %53 = vector.extract_strided_slice %43 {offsets = [0, 64], sizes = [32, 8], strides = [1, 1]} : vector<32x96xf32> to vector<32x8xf32>
    %54 = vector.shape_cast %53 : vector<32x8xf32> to vector<2x16x8xf32>
    %55 = arith.truncf %50 : vector<2x16x8xf32> to vector<2x16x8xbf16>
    %56 = arith.truncf %52 : vector<2x16x8xf32> to vector<2x16x8xbf16>
    "tpu.trace_start"() <{level = 10 : i32, message = "bqd,bkd->bqk"}> : () -> ()
    %cst_22 = arith.constant dense<0.000000e+00> : vector<2x16x16xf32>
    %57 = tpu.matmul %55, %56, %cst_22 {dimension_numbers = #tpu.dot_dimension_numbers<[2], [2], [1], [1], [0, 0, 0, 1, 1, 1], [0], [0]>} : vector<2x16x8xbf16>, vector<2x16x8xbf16>, vector<2x16x16xf32> -> vector<2x16x16xf32>
    "tpu.trace_stop"() : () -> ()
    %cst_23 = arith.constant dense<0xFF800000> : vector<2x16xf32>
    %58 = vector.multi_reduction <maximumf>, %57, %cst_23 [2] : vector<2x16x16xf32> to vector<2x16xf32>
    %59 = vector.shape_cast %58 : vector<2x16xf32> to vector<2x16x1xf32>
    %60 = vector.broadcast %59 : vector<2x16x1xf32> to vector<2x16x16xf32>
    %61 = arith.subf %57, %60 : vector<2x16x16xf32>
    %62 = math.exp %61 : vector<2x16x16xf32>
    %cst_24 = arith.constant dense<0.000000e+00> : vector<2x16xf32>
    %63 = vector.multi_reduction <add>, %62, %cst_24 [2] : vector<2x16x16xf32> to vector<2x16xf32>
    %64 = vector.shape_cast %63 : vector<2x16xf32> to vector<2x16x1xf32>
    %65 = tpu.reciprocal %64 {approx = true} : vector<2x16x1xf32> -> vector<2x16x1xf32>
    %66 = vector.broadcast %65 : vector<2x16x1xf32> to vector<2x16x16xf32>
    %67 = arith.mulf %62, %66 : vector<2x16x16xf32>
    %68 = arith.truncf %67 : vector<2x16x16xf32> to vector<2x16x16xbf16>
    %69 = arith.truncf %54 : vector<2x16x8xf32> to vector<2x16x8xbf16>
    "tpu.trace_start"() <{level = 10 : i32, message = "bqk,bkd->bqd"}> : () -> ()
    %cst_25 = arith.constant dense<0.000000e+00> : vector<2x16x8xf32>
    %70 = tpu.matmul %68, %69, %cst_25 {dimension_numbers = #tpu.dot_dimension_numbers<[2], [1], [1], [2], [0, 0, 0, 1, 1, 2], [0], [0]>} : vector<2x16x16xbf16>, vector<2x16x8xbf16>, vector<2x16x8xf32> -> vector<2x16x8xf32>
    "tpu.trace_stop"() : () -> ()
    %71 = vector.shape_cast %70 : vector<2x16x8xf32> to vector<32x8xf32>
    %72 = arith.truncf %71 : vector<32x8xf32> to vector<32x8xbf16>
    %73 = vector.extract_strided_slice %45 {offsets = [0, 0], sizes = [8, 32], strides = [1, 1]} : vector<32x32xbf16> to vector<8x32xbf16>
    %cst_26 = arith.constant dense<0.000000e+00> : vector<32x32xf32>
    %74 = tpu.matmul %72, %73, %cst_26 {dimension_numbers = #tpu.dot_dimension_numbers<[1], [0], [0], [1], [0, 0, 1, 1], [], []>} : vector<32x8xbf16>, vector<8x32xbf16>, vector<32x32xf32> -> vector<32x32xf32>
    %75 = arith.addf %46, %74 : vector<32x32xf32>
    %76 = vector.extract_strided_slice %43 {offsets = [0, 8], sizes = [32, 8], strides = [1, 1]} : vector<32x96xf32> to vector<32x8xf32>
    %cst_27 = arith.constant 0.353553385 : f32
    %77 = vector.broadcast %cst_27 : f32 to vector<32x8xf32>
    %78 = arith.mulf %76, %77 : vector<32x8xf32>
    %79 = vector.shape_cast %78 : vector<32x8xf32> to vector<2x16x8xf32>
    %80 = vector.extract_strided_slice %43 {offsets = [0, 40], sizes = [32, 8], strides = [1, 1]} : vector<32x96xf32> to vector<32x8xf32>
    %81 = vector.shape_cast %80 : vector<32x8xf32> to vector<2x16x8xf32>
    %82 = vector.extract_strided_slice %43 {offsets = [0, 72], sizes = [32, 8], strides = [1, 1]} : vector<32x96xf32> to vector<32x8xf32>
    %83 = vector.shape_cast %82 : vector<32x8xf32> to vector<2x16x8xf32>
    %84 = arith.truncf %79 : vector<2x16x8xf32> to vector<2x16x8xbf16>
    %85 = arith.truncf %81 : vector<2x16x8xf32> to vector<2x16x8xbf16>
    "tpu.trace_start"() <{level = 10 : i32, message = "bqd,bkd->bqk"}> : () -> ()
    %cst_28 = arith.constant dense<0.000000e+00> : vector<2x16x16xf32>
    %86 = tpu.matmul %84, %85, %cst_28 {dimension_numbers = #tpu.dot_dimension_numbers<[2], [2], [1], [1], [0, 0, 0, 1, 1, 1], [0], [0]>} : vector<2x16x8xbf16>, vector<2x16x8xbf16>, vector<2x16x16xf32> -> vector<2x16x16xf32>
    "tpu.trace_stop"() : () -> ()
    %cst_29 = arith.constant dense<0xFF800000> : vector<2x16xf32>
    %87 = vector.multi_reduction <maximumf>, %86, %cst_29 [2] : vector<2x16x16xf32> to vector<2x16xf32>
    %88 = vector.shape_cast %87 : vector<2x16xf32> to vector<2x16x1xf32>
    %89 = vector.broadcast %88 : vector<2x16x1xf32> to vector<2x16x16xf32>
    %90 = arith.subf %86, %89 : vector<2x16x16xf32>
    %91 = math.exp %90 : vector<2x16x16xf32>
    %cst_30 = arith.constant dense<0.000000e+00> : vector<2x16xf32>
    %92 = vector.multi_reduction <add>, %91, %cst_30 [2] : vector<2x16x16xf32> to vector<2x16xf32>
    %93 = vector.shape_cast %92 : vector<2x16xf32> to vector<2x16x1xf32>
    %94 = tpu.reciprocal %93 {approx = true} : vector<2x16x1xf32> -> vector<2x16x1xf32>
    %95 = vector.broadcast %94 : vector<2x16x1xf32> to vector<2x16x16xf32>
    %96 = arith.mulf %91, %95 : vector<2x16x16xf32>
    %97 = arith.truncf %96 : vector<2x16x16xf32> to vector<2x16x16xbf16>
    %98 = arith.truncf %83 : vector<2x16x8xf32> to vector<2x16x8xbf16>
    "tpu.trace_start"() <{level = 10 : i32, message = "bqk,bkd->bqd"}> : () -> ()
    %cst_31 = arith.constant dense<0.000000e+00> : vector<2x16x8xf32>
    %99 = tpu.matmul %97, %98, %cst_31 {dimension_numbers = #tpu.dot_dimension_numbers<[2], [1], [1], [2], [0, 0, 0, 1, 1, 2], [0], [0]>} : vector<2x16x16xbf16>, vector<2x16x8xbf16>, vector<2x16x8xf32> -> vector<2x16x8xf32>
    "tpu.trace_stop"() : () -> ()
    %100 = vector.shape_cast %99 : vector<2x16x8xf32> to vector<32x8xf32>
    %101 = arith.truncf %100 : vector<32x8xf32> to vector<32x8xbf16>
    %102 = vector.extract_strided_slice %45 {offsets = [8, 0], sizes = [8, 32], strides = [1, 1]} : vector<32x32xbf16> to vector<8x32xbf16>
    %cst_32 = arith.constant dense<0.000000e+00> : vector<32x32xf32>
    %103 = tpu.matmul %101, %102, %cst_32 {dimension_numbers = #tpu.dot_dimension_numbers<[1], [0], [0], [1], [0, 0, 1, 1], [], []>} : vector<32x8xbf16>, vector<8x32xbf16>, vector<32x32xf32> -> vector<32x32xf32>
    %104 = arith.addf %75, %103 : vector<32x32xf32>
    %105 = vector.extract_strided_slice %43 {offsets = [0, 16], sizes = [32, 8], strides = [1, 1]} : vector<32x96xf32> to vector<32x8xf32>
    %cst_33 = arith.constant 0.353553385 : f32
    %106 = vector.broadcast %cst_33 : f32 to vector<32x8xf32>
    %107 = arith.mulf %105, %106 : vector<32x8xf32>
    %108 = vector.shape_cast %107 : vector<32x8xf32> to vector<2x16x8xf32>
    %109 = vector.extract_strided_slice %43 {offsets = [0, 48], sizes = [32, 8], strides = [1, 1]} : vector<32x96xf32> to vector<32x8xf32>
    %110 = vector.shape_cast %109 : vector<32x8xf32> to vector<2x16x8xf32>
    %111 = vector.extract_strided_slice %43 {offsets = [0, 80], sizes = [32, 8], strides = [1, 1]} : vector<32x96xf32> to vector<32x8xf32>
    %112 = vector.shape_cast %111 : vector<32x8xf32> to vector<2x16x8xf32>
    %113 = arith.truncf %108 : vector<2x16x8xf32> to vector<2x16x8xbf16>
    %114 = arith.truncf %110 : vector<2x16x8xf32> to vector<2x16x8xbf16>
    "tpu.trace_start"() <{level = 10 : i32, message = "bqd,bkd->bqk"}> : () -> ()
    %cst_34 = arith.constant dense<0.000000e+00> : vector<2x16x16xf32>
    %115 = tpu.matmul %113, %114, %cst_34 {dimension_numbers = #tpu.dot_dimension_numbers<[2], [2], [1], [1], [0, 0, 0, 1, 1, 1], [0], [0]>} : vector<2x16x8xbf16>, vector<2x16x8xbf16>, vector<2x16x16xf32> -> vector<2x16x16xf32>
    "tpu.trace_stop"() : () -> ()
    %cst_35 = arith.constant dense<0xFF800000> : vector<2x16xf32>
    %116 = vector.multi_reduction <maximumf>, %115, %cst_35 [2] : vector<2x16x16xf32> to vector<2x16xf32>
    %117 = vector.shape_cast %116 : vector<2x16xf32> to vector<2x16x1xf32>
    %118 = vector.broadcast %117 : vector<2x16x1xf32> to vector<2x16x16xf32>
    %119 = arith.subf %115, %118 : vector<2x16x16xf32>
    %120 = math.exp %119 : vector<2x16x16xf32>
    %cst_36 = arith.constant dense<0.000000e+00> : vector<2x16xf32>
    %121 = vector.multi_reduction <add>, %120, %cst_36 [2] : vector<2x16x16xf32> to vector<2x16xf32>
    %122 = vector.shape_cast %121 : vector<2x16xf32> to vector<2x16x1xf32>
    %123 = tpu.reciprocal %122 {approx = true} : vector<2x16x1xf32> -> vector<2x16x1xf32>
    %124 = vector.broadcast %123 : vector<2x16x1xf32> to vector<2x16x16xf32>
    %125 = arith.mulf %120, %124 : vector<2x16x16xf32>
    %126 = arith.truncf %125 : vector<2x16x16xf32> to vector<2x16x16xbf16>
    %127 = arith.truncf %112 : vector<2x16x8xf32> to vector<2x16x8xbf16>
    "tpu.trace_start"() <{level = 10 : i32, message = "bqk,bkd->bqd"}> : () -> ()
    %cst_37 = arith.constant dense<0.000000e+00> : vector<2x16x8xf32>
    %128 = tpu.matmul %126, %127, %cst_37 {dimension_numbers = #tpu.dot_dimension_numbers<[2], [1], [1], [2], [0, 0, 0, 1, 1, 2], [0], [0]>} : vector<2x16x16xbf16>, vector<2x16x8xbf16>, vector<2x16x8xf32> -> vector<2x16x8xf32>
    "tpu.trace_stop"() : () -> ()
    %129 = vector.shape_cast %128 : vector<2x16x8xf32> to vector<32x8xf32>
    %130 = arith.truncf %129 : vector<32x8xf32> to vector<32x8xbf16>
    %131 = vector.extract_strided_slice %45 {offsets = [16, 0], sizes = [8, 32], strides = [1, 1]} : vector<32x32xbf16> to vector<8x32xbf16>
    %cst_38 = arith.constant dense<0.000000e+00> : vector<32x32xf32>
    %132 = tpu.matmul %130, %131, %cst_38 {dimension_numbers = #tpu.dot_dimension_numbers<[1], [0], [0], [1], [0, 0, 1, 1], [], []>} : vector<32x8xbf16>, vector<8x32xbf16>, vector<32x32xf32> -> vector<32x32xf32>
    %133 = arith.addf %104, %132 : vector<32x32xf32>
    %134 = vector.extract_strided_slice %43 {offsets = [0, 24], sizes = [32, 8], strides = [1, 1]} : vector<32x96xf32> to vector<32x8xf32>
    %cst_39 = arith.constant 0.353553385 : f32
    %135 = vector.broadcast %cst_39 : f32 to vector<32x8xf32>
    %136 = arith.mulf %134, %135 : vector<32x8xf32>
    %137 = vector.shape_cast %136 : vector<32x8xf32> to vector<2x16x8xf32>
    %138 = vector.extract_strided_slice %43 {offsets = [0, 56], sizes = [32, 8], strides = [1, 1]} : vector<32x96xf32> to vector<32x8xf32>
    %139 = vector.shape_cast %138 : vector<32x8xf32> to vector<2x16x8xf32>
    %140 = vector.extract_strided_slice %43 {offsets = [0, 88], sizes = [32, 8], strides = [1, 1]} : vector<32x96xf32> to vector<32x8xf32>
    %141 = vector.shape_cast %140 : vector<32x8xf32> to vector<2x16x8xf32>
    %142 = arith.truncf %137 : vector<2x16x8xf32> to vector<2x16x8xbf16>
    %143 = arith.truncf %139 : vector<2x16x8xf32> to vector<2x16x8xbf16>
    "tpu.trace_start"() <{level = 10 : i32, message = "bqd,bkd->bqk"}> : () -> ()
    %cst_40 = arith.constant dense<0.000000e+00> : vector<2x16x16xf32>
    %144 = tpu.matmul %142, %143, %cst_40 {dimension_numbers = #tpu.dot_dimension_numbers<[2], [2], [1], [1], [0, 0, 0, 1, 1, 1], [0], [0]>} : vector<2x16x8xbf16>, vector<2x16x8xbf16>, vector<2x16x16xf32> -> vector<2x16x16xf32>
    "tpu.trace_stop"() : () -> ()
    %cst_41 = arith.constant dense<0xFF800000> : vector<2x16xf32>
    %145 = vector.multi_reduction <maximumf>, %144, %cst_41 [2] : vector<2x16x16xf32> to vector<2x16xf32>
    %146 = vector.shape_cast %145 : vector<2x16xf32> to vector<2x16x1xf32>
    %147 = vector.broadcast %146 : vector<2x16x1xf32> to vector<2x16x16xf32>
    %148 = arith.subf %144, %147 : vector<2x16x16xf32>
    %149 = math.exp %148 : vector<2x16x16xf32>
    %cst_42 = arith.constant dense<0.000000e+00> : vector<2x16xf32>
    %150 = vector.multi_reduction <add>, %149, %cst_42 [2] : vector<2x16x16xf32> to vector<2x16xf32>
    %151 = vector.shape_cast %150 : vector<2x16xf32> to vector<2x16x1xf32>
    %152 = tpu.reciprocal %151 {approx = true} : vector<2x16x1xf32> -> vector<2x16x1xf32>
    %153 = vector.broadcast %152 : vector<2x16x1xf32> to vector<2x16x16xf32>
    %154 = arith.mulf %149, %153 : vector<2x16x16xf32>
    %155 = arith.truncf %154 : vector<2x16x16xf32> to vector<2x16x16xbf16>
    %156 = arith.truncf %141 : vector<2x16x8xf32> to vector<2x16x8xbf16>
    "tpu.trace_start"() <{level = 10 : i32, message = "bqk,bkd->bqd"}> : () -> ()
    %cst_43 = arith.constant dense<0.000000e+00> : vector<2x16x8xf32>
    %157 = tpu.matmul %155, %156, %cst_43 {dimension_numbers = #tpu.dot_dimension_numbers<[2], [1], [1], [2], [0, 0, 0, 1, 1, 2], [0], [0]>} : vector<2x16x16xbf16>, vector<2x16x8xbf16>, vector<2x16x8xf32> -> vector<2x16x8xf32>
    "tpu.trace_stop"() : () -> ()
    %158 = vector.shape_cast %157 : vector<2x16x8xf32> to vector<32x8xf32>
    %159 = arith.truncf %158 : vector<32x8xf32> to vector<32x8xbf16>
    %160 = vector.extract_strided_slice %45 {offsets = [24, 0], sizes = [8, 32], strides = [1, 1]} : vector<32x32xbf16> to vector<8x32xbf16>
    %cst_44 = arith.constant dense<0.000000e+00> : vector<32x32xf32>
    %161 = tpu.matmul %159, %160, %cst_44 {dimension_numbers = #tpu.dot_dimension_numbers<[1], [0], [0], [1], [0, 0, 1, 1], [], []>} : vector<32x8xbf16>, vector<8x32xbf16>, vector<32x32xf32> -> vector<32x32xf32>
    %162 = arith.addf %133, %161 : vector<32x32xf32>
    %163 = arith.addf %5, %162 : vector<32x32xf32>
    %164 = vector.broadcast %9 : vector<1x32xf32> to vector<32x32xf32>
    %165 = arith.addf %163, %164 : vector<32x32xf32>
    %cst_45 = arith.constant dense<0.000000e+00> : vector<32xf32>
    %166 = vector.multi_reduction <add>, %165, %cst_45 [1] : vector<32x32xf32> to vector<32xf32>
    %167 = vector.shape_cast %166 : vector<32xf32> to vector<32x1xf32>
    %cst_46 = arith.constant 3.200000e+01 : f32
    %168 = vector.broadcast %cst_46 : f32 to vector<32x1xf32>
    %169 = arith.divf %167, %168 : vector<32x1xf32>
    %170 = arith.mulf %165, %165 : vector<32x32xf32>
    %cst_47 = arith.constant dense<0.000000e+00> : vector<32xf32>
    %171 = vector.multi_reduction <add>, %170, %cst_47 [1] : vector<32x32xf32> to vector<32xf32>
    %172 = vector.shape_cast %171 : vector<32xf32> to vector<32x1xf32>
    %cst_48 = arith.constant 3.200000e+01 : f32
    %173 = vector.broadcast %cst_48 : f32 to vector<32x1xf32>
    %174 = arith.divf %172, %173 : vector<32x1xf32>
    %175 = arith.mulf %169, %169 : vector<32x1xf32>
    %176 = arith.subf %174, %175 : vector<32x1xf32>
    %177 = vector.broadcast %169 : vector<32x1xf32> to vector<32x32xf32>
    %178 = arith.subf %165, %177 : vector<32x32xf32>
    %cst_49 = arith.constant 9.99999997E-7 : f32
    %179 = vector.broadcast %cst_49 : f32 to vector<32x1xf32>
    %180 = arith.addf %176, %179 : vector<32x1xf32>
    %181 = math.rsqrt %180 : vector<32x1xf32>
    %182 = vector.broadcast %181 : vector<32x1xf32> to vector<32x32xf32>
    %183 = arith.mulf %178, %182 : vector<32x32xf32>
    %184 = vector.broadcast %14 : vector<1x32xf32> to vector<32x32xf32>
    %185 = arith.mulf %183, %184 : vector<32x32xf32>
    %186 = vector.broadcast %15 : vector<1x32xf32> to vector<32x32xf32>
    %187 = arith.addf %185, %186 : vector<32x32xf32>
    %188 = arith.truncf %187 : vector<32x32xf32> to vector<32x32xbf16>
    %c0_50 = arith.constant 0 : index
    %c0_51 = arith.constant 0 : index
    %c0_52 = arith.constant 0 : index
    %189 = vector.load %arg6[%c0_50, %c0_51, %c0_52] : memref<2x32x64xbf16, #tpu.memory_space<vmem>>, vector<1x32x64xbf16>
    %190 = vector.shape_cast %189 : vector<1x32x64xbf16> to vector<32x64xbf16>
    %cst_53 = arith.constant dense<0.000000e+00> : vector<32x64xf32>
    %191 = tpu.matmul %188, %190, %cst_53 {dimension_numbers = #tpu.dot_dimension_numbers<[1], [0], [0], [1], [0, 0, 1, 1], [], []>} : vector<32x32xbf16>, vector<32x64xbf16>, vector<32x64xf32> -> vector<32x64xf32>
    %192 = vector.broadcast %10 : vector<1x64xf32> to vector<32x64xf32>
    %193 = arith.addf %191, %192 : vector<32x64xf32>
    %194 = arith.mulf %193, %193 : vector<32x64xf32>
    %195 = arith.mulf %193, %194 : vector<32x64xf32>
    %cst_54 = arith.constant 4.471500e-02 : f32
    %196 = vector.broadcast %cst_54 : f32 to vector<32x64xf32>
    %197 = arith.mulf %196, %195 : vector<32x64xf32>
    %198 = arith.addf %193, %197 : vector<32x64xf32>
    %cst_55 = arith.constant 0.797884583 : f32
    %199 = vector.broadcast %cst_55 : f32 to vector<32x64xf32>
    %200 = arith.mulf %199, %198 : vector<32x64xf32>
    %201 = math.tanh %200 : vector<32x64xf32>
    %cst_56 = arith.constant 1.000000e+00 : f32
    %202 = vector.broadcast %cst_56 : f32 to vector<32x64xf32>
    %203 = arith.addf %202, %201 : vector<32x64xf32>
    %cst_57 = arith.constant 5.000000e-01 : f32
    %204 = vector.broadcast %cst_57 : f32 to vector<32x64xf32>
    %205 = arith.mulf %204, %203 : vector<32x64xf32>
    %206 = arith.mulf %193, %205 : vector<32x64xf32>
    %207 = arith.truncf %206 : vector<32x64xf32> to vector<32x64xbf16>
    %c0_58 = arith.constant 0 : index
    %c0_59 = arith.constant 0 : index
    %c0_60 = arith.constant 0 : index
    %208 = vector.load %arg7[%c0_58, %c0_59, %c0_60] : memref<2x64x32xbf16, #tpu.memory_space<vmem>>, vector<1x64x32xbf16>
    %209 = vector.shape_cast %208 : vector<1x64x32xbf16> to vector<64x32xbf16>
    %cst_61 = arith.constant dense<0.000000e+00> : vector<32x32xf32>
    %210 = tpu.matmul %207, %209, %cst_61 {dimension_numbers = #tpu.dot_dimension_numbers<[1], [0], [0], [1], [0, 0, 1, 1], [], []>} : vector<32x64xbf16>, vector<64x32xbf16>, vector<32x32xf32> -> vector<32x32xf32>
    %211 = vector.broadcast %11 : vector<1x32xf32> to vector<32x32xf32>
    %212 = arith.addf %210, %211 : vector<32x32xf32>
    %213 = arith.addf %165, %212 : vector<32x32xf32>
    %c1 = arith.constant 1 : index
    %c0_62 = arith.constant 0 : index
    %c0_63 = arith.constant 0 : index
    %214 = vector.load %arg8[%c1, %c0_62, %c0_63] : memref<2x8x128xf32, #tpu.memory_space<vmem>>, vector<1x8x128xf32>
    %215 = vector.shape_cast %214 : vector<1x8x128xf32> to vector<8x128xf32>
    %216 = vector.extract_strided_slice %215 {offsets = [0, 0], sizes = [1, 96], strides = [1, 1]} : vector<8x128xf32> to vector<1x96xf32>
    %217 = vector.extract_strided_slice %215 {offsets = [0, 96], sizes = [1, 32], strides = [1, 1]} : vector<8x128xf32> to vector<1x32xf32>
    %218 = vector.extract_strided_slice %215 {offsets = [1, 0], sizes = [1, 64], strides = [1, 1]} : vector<8x128xf32> to vector<1x64xf32>
    %219 = vector.extract_strided_slice %215 {offsets = [2, 0], sizes = [1, 32], strides = [1, 1]} : vector<8x128xf32> to vector<1x32xf32>
    %220 = vector.extract_strided_slice %215 {offsets = [3, 0], sizes = [1, 32], strides = [1, 1]} : vector<8x128xf32> to vector<1x32xf32>
    %221 = vector.extract_strided_slice %215 {offsets = [4, 0], sizes = [1, 32], strides = [1, 1]} : vector<8x128xf32> to vector<1x32xf32>
    %222 = vector.extract_strided_slice %215 {offsets = [5, 0], sizes = [1, 32], strides = [1, 1]} : vector<8x128xf32> to vector<1x32xf32>
    %223 = vector.extract_strided_slice %215 {offsets = [6, 0], sizes = [1, 32], strides = [1, 1]} : vector<8x128xf32> to vector<1x32xf32>
    %cst_64 = arith.constant dense<0.000000e+00> : vector<32xf32>
    %224 = vector.multi_reduction <add>, %213, %cst_64 [1] : vector<32x32xf32> to vector<32xf32>
    %225 = vector.shape_cast %224 : vector<32xf32> to vector<32x1xf32>
    %cst_65 = arith.constant 3.200000e+01 : f32
    %226 = vector.broadcast %cst_65 : f32 to vector<32x1xf32>
    %227 = arith.divf %225, %226 : vector<32x1xf32>
    %228 = arith.mulf %213, %213 : vector<32x32xf32>
    %cst_66 = arith.constant dense<0.000000e+00> : vector<32xf32>
    %229 = vector.multi_reduction <add>, %228, %cst_66 [1] : vector<32x32xf32> to vector<32xf32>
    %230 = vector.shape_cast %229 : vector<32xf32> to vector<32x1xf32>
    %cst_67 = arith.constant 3.200000e+01 : f32
    %231 = vector.broadcast %cst_67 : f32 to vector<32x1xf32>
    %232 = arith.divf %230, %231 : vector<32x1xf32>
    %233 = arith.mulf %227, %227 : vector<32x1xf32>
    %234 = arith.subf %232, %233 : vector<32x1xf32>
    %235 = vector.broadcast %227 : vector<32x1xf32> to vector<32x32xf32>
    %236 = arith.subf %213, %235 : vector<32x32xf32>
    %cst_68 = arith.constant 9.99999997E-7 : f32
    %237 = vector.broadcast %cst_68 : f32 to vector<32x1xf32>
    %238 = arith.addf %234, %237 : vector<32x1xf32>
    %239 = math.rsqrt %238 : vector<32x1xf32>
    %240 = vector.broadcast %239 : vector<32x1xf32> to vector<32x32xf32>
    %241 = arith.mulf %236, %240 : vector<32x32xf32>
    %242 = vector.broadcast %220 : vector<1x32xf32> to vector<32x32xf32>
    %243 = arith.mulf %241, %242 : vector<32x32xf32>
    %244 = vector.broadcast %221 : vector<1x32xf32> to vector<32x32xf32>
    %245 = arith.addf %243, %244 : vector<32x32xf32>
    %246 = arith.truncf %245 : vector<32x32xf32> to vector<32x32xbf16>
    %c1_69 = arith.constant 1 : index
    %c0_70 = arith.constant 0 : index
    %c0_71 = arith.constant 0 : index
    %247 = vector.load %arg4[%c1_69, %c0_70, %c0_71] : memref<2x32x96xbf16, #tpu.memory_space<vmem>>, vector<1x32x96xbf16>
    %248 = vector.shape_cast %247 : vector<1x32x96xbf16> to vector<32x96xbf16>
    %cst_72 = arith.constant dense<0.000000e+00> : vector<32x96xf32>
    %249 = tpu.matmul %246, %248, %cst_72 {dimension_numbers = #tpu.dot_dimension_numbers<[1], [0], [0], [1], [0, 0, 1, 1], [], []>} : vector<32x32xbf16>, vector<32x96xbf16>, vector<32x96xf32> -> vector<32x96xf32>
    %250 = vector.broadcast %216 : vector<1x96xf32> to vector<32x96xf32>
    %251 = arith.addf %249, %250 : vector<32x96xf32>
    %c1_73 = arith.constant 1 : index
    %c0_74 = arith.constant 0 : index
    %c0_75 = arith.constant 0 : index
    %252 = vector.load %arg5[%c1_73, %c0_74, %c0_75] : memref<2x32x32xbf16, #tpu.memory_space<vmem>>, vector<1x32x32xbf16>
    %253 = vector.shape_cast %252 : vector<1x32x32xbf16> to vector<32x32xbf16>
    %cst_76 = arith.constant 0.000000e+00 : f32
    %254 = vector.broadcast %cst_76 : f32 to vector<32x32xf32>
    %255 = vector.extract_strided_slice %251 {offsets = [0, 0], sizes = [32, 8], strides = [1, 1]} : vector<32x96xf32> to vector<32x8xf32>
    %cst_77 = arith.constant 0.353553385 : f32
    %256 = vector.broadcast %cst_77 : f32 to vector<32x8xf32>
    %257 = arith.mulf %255, %256 : vector<32x8xf32>
    %258 = vector.shape_cast %257 : vector<32x8xf32> to vector<2x16x8xf32>
    %259 = vector.extract_strided_slice %251 {offsets = [0, 32], sizes = [32, 8], strides = [1, 1]} : vector<32x96xf32> to vector<32x8xf32>
    %260 = vector.shape_cast %259 : vector<32x8xf32> to vector<2x16x8xf32>
    %261 = vector.extract_strided_slice %251 {offsets = [0, 64], sizes = [32, 8], strides = [1, 1]} : vector<32x96xf32> to vector<32x8xf32>
    %262 = vector.shape_cast %261 : vector<32x8xf32> to vector<2x16x8xf32>
    %263 = arith.truncf %258 : vector<2x16x8xf32> to vector<2x16x8xbf16>
    %264 = arith.truncf %260 : vector<2x16x8xf32> to vector<2x16x8xbf16>
    "tpu.trace_start"() <{level = 10 : i32, message = "bqd,bkd->bqk"}> : () -> ()
    %cst_78 = arith.constant dense<0.000000e+00> : vector<2x16x16xf32>
    %265 = tpu.matmul %263, %264, %cst_78 {dimension_numbers = #tpu.dot_dimension_numbers<[2], [2], [1], [1], [0, 0, 0, 1, 1, 1], [0], [0]>} : vector<2x16x8xbf16>, vector<2x16x8xbf16>, vector<2x16x16xf32> -> vector<2x16x16xf32>
    "tpu.trace_stop"() : () -> ()
    %cst_79 = arith.constant dense<0xFF800000> : vector<2x16xf32>
    %266 = vector.multi_reduction <maximumf>, %265, %cst_79 [2] : vector<2x16x16xf32> to vector<2x16xf32>
    %267 = vector.shape_cast %266 : vector<2x16xf32> to vector<2x16x1xf32>
    %268 = vector.broadcast %267 : vector<2x16x1xf32> to vector<2x16x16xf32>
    %269 = arith.subf %265, %268 : vector<2x16x16xf32>
    %270 = math.exp %269 : vector<2x16x16xf32>
    %cst_80 = arith.constant dense<0.000000e+00> : vector<2x16xf32>
    %271 = vector.multi_reduction <add>, %270, %cst_80 [2] : vector<2x16x16xf32> to vector<2x16xf32>
    %272 = vector.shape_cast %271 : vector<2x16xf32> to vector<2x16x1xf32>
    %273 = tpu.reciprocal %272 {approx = true} : vector<2x16x1xf32> -> vector<2x16x1xf32>
    %274 = vector.broadcast %273 : vector<2x16x1xf32> to vector<2x16x16xf32>
    %275 = arith.mulf %270, %274 : vector<2x16x16xf32>
    %276 = arith.truncf %275 : vector<2x16x16xf32> to vector<2x16x16xbf16>
    %277 = arith.truncf %262 : vector<2x16x8xf32> to vector<2x16x8xbf16>
    "tpu.trace_start"() <{level = 10 : i32, message = "bqk,bkd->bqd"}> : () -> ()
    %cst_81 = arith.constant dense<0.000000e+00> : vector<2x16x8xf32>
    %278 = tpu.matmul %276, %277, %cst_81 {dimension_numbers = #tpu.dot_dimension_numbers<[2], [1], [1], [2], [0, 0, 0, 1, 1, 2], [0], [0]>} : vector<2x16x16xbf16>, vector<2x16x8xbf16>, vector<2x16x8xf32> -> vector<2x16x8xf32>
    "tpu.trace_stop"() : () -> ()
    %279 = vector.shape_cast %278 : vector<2x16x8xf32> to vector<32x8xf32>
    %280 = arith.truncf %279 : vector<32x8xf32> to vector<32x8xbf16>
    %281 = vector.extract_strided_slice %253 {offsets = [0, 0], sizes = [8, 32], strides = [1, 1]} : vector<32x32xbf16> to vector<8x32xbf16>
    %cst_82 = arith.constant dense<0.000000e+00> : vector<32x32xf32>
    %282 = tpu.matmul %280, %281, %cst_82 {dimension_numbers = #tpu.dot_dimension_numbers<[1], [0], [0], [1], [0, 0, 1, 1], [], []>} : vector<32x8xbf16>, vector<8x32xbf16>, vector<32x32xf32> -> vector<32x32xf32>
    %283 = arith.addf %254, %282 : vector<32x32xf32>
    %284 = vector.extract_strided_slice %251 {offsets = [0, 8], sizes = [32, 8], strides = [1, 1]} : vector<32x96xf32> to vector<32x8xf32>
    %cst_83 = arith.constant 0.353553385 : f32
    %285 = vector.broadcast %cst_83 : f32 to vector<32x8xf32>
    %286 = arith.mulf %284, %285 : vector<32x8xf32>
    %287 = vector.shape_cast %286 : vector<32x8xf32> to vector<2x16x8xf32>
    %288 = vector.extract_strided_slice %251 {offsets = [0, 40], sizes = [32, 8], strides = [1, 1]} : vector<32x96xf32> to vector<32x8xf32>
    %289 = vector.shape_cast %288 : vector<32x8xf32> to vector<2x16x8xf32>
    %290 = vector.extract_strided_slice %251 {offsets = [0, 72], sizes = [32, 8], strides = [1, 1]} : vector<32x96xf32> to vector<32x8xf32>
    %291 = vector.shape_cast %290 : vector<32x8xf32> to vector<2x16x8xf32>
    %292 = arith.truncf %287 : vector<2x16x8xf32> to vector<2x16x8xbf16>
    %293 = arith.truncf %289 : vector<2x16x8xf32> to vector<2x16x8xbf16>
    "tpu.trace_start"() <{level = 10 : i32, message = "bqd,bkd->bqk"}> : () -> ()
    %cst_84 = arith.constant dense<0.000000e+00> : vector<2x16x16xf32>
    %294 = tpu.matmul %292, %293, %cst_84 {dimension_numbers = #tpu.dot_dimension_numbers<[2], [2], [1], [1], [0, 0, 0, 1, 1, 1], [0], [0]>} : vector<2x16x8xbf16>, vector<2x16x8xbf16>, vector<2x16x16xf32> -> vector<2x16x16xf32>
    "tpu.trace_stop"() : () -> ()
    %cst_85 = arith.constant dense<0xFF800000> : vector<2x16xf32>
    %295 = vector.multi_reduction <maximumf>, %294, %cst_85 [2] : vector<2x16x16xf32> to vector<2x16xf32>
    %296 = vector.shape_cast %295 : vector<2x16xf32> to vector<2x16x1xf32>
    %297 = vector.broadcast %296 : vector<2x16x1xf32> to vector<2x16x16xf32>
    %298 = arith.subf %294, %297 : vector<2x16x16xf32>
    %299 = math.exp %298 : vector<2x16x16xf32>
    %cst_86 = arith.constant dense<0.000000e+00> : vector<2x16xf32>
    %300 = vector.multi_reduction <add>, %299, %cst_86 [2] : vector<2x16x16xf32> to vector<2x16xf32>
    %301 = vector.shape_cast %300 : vector<2x16xf32> to vector<2x16x1xf32>
    %302 = tpu.reciprocal %301 {approx = true} : vector<2x16x1xf32> -> vector<2x16x1xf32>
    %303 = vector.broadcast %302 : vector<2x16x1xf32> to vector<2x16x16xf32>
    %304 = arith.mulf %299, %303 : vector<2x16x16xf32>
    %305 = arith.truncf %304 : vector<2x16x16xf32> to vector<2x16x16xbf16>
    %306 = arith.truncf %291 : vector<2x16x8xf32> to vector<2x16x8xbf16>
    "tpu.trace_start"() <{level = 10 : i32, message = "bqk,bkd->bqd"}> : () -> ()
    %cst_87 = arith.constant dense<0.000000e+00> : vector<2x16x8xf32>
    %307 = tpu.matmul %305, %306, %cst_87 {dimension_numbers = #tpu.dot_dimension_numbers<[2], [1], [1], [2], [0, 0, 0, 1, 1, 2], [0], [0]>} : vector<2x16x16xbf16>, vector<2x16x8xbf16>, vector<2x16x8xf32> -> vector<2x16x8xf32>
    "tpu.trace_stop"() : () -> ()
    %308 = vector.shape_cast %307 : vector<2x16x8xf32> to vector<32x8xf32>
    %309 = arith.truncf %308 : vector<32x8xf32> to vector<32x8xbf16>
    %310 = vector.extract_strided_slice %253 {offsets = [8, 0], sizes = [8, 32], strides = [1, 1]} : vector<32x32xbf16> to vector<8x32xbf16>
    %cst_88 = arith.constant dense<0.000000e+00> : vector<32x32xf32>
    %311 = tpu.matmul %309, %310, %cst_88 {dimension_numbers = #tpu.dot_dimension_numbers<[1], [0], [0], [1], [0, 0, 1, 1], [], []>} : vector<32x8xbf16>, vector<8x32xbf16>, vector<32x32xf32> -> vector<32x32xf32>
    %312 = arith.addf %283, %311 : vector<32x32xf32>
    %313 = vector.extract_strided_slice %251 {offsets = [0, 16], sizes = [32, 8], strides = [1, 1]} : vector<32x96xf32> to vector<32x8xf32>
    %cst_89 = arith.constant 0.353553385 : f32
    %314 = vector.broadcast %cst_89 : f32 to vector<32x8xf32>
    %315 = arith.mulf %313, %314 : vector<32x8xf32>
    %316 = vector.shape_cast %315 : vector<32x8xf32> to vector<2x16x8xf32>
    %317 = vector.extract_strided_slice %251 {offsets = [0, 48], sizes = [32, 8], strides = [1, 1]} : vector<32x96xf32> to vector<32x8xf32>
    %318 = vector.shape_cast %317 : vector<32x8xf32> to vector<2x16x8xf32>
    %319 = vector.extract_strided_slice %251 {offsets = [0, 80], sizes = [32, 8], strides = [1, 1]} : vector<32x96xf32> to vector<32x8xf32>
    %320 = vector.shape_cast %319 : vector<32x8xf32> to vector<2x16x8xf32>
    %321 = arith.truncf %316 : vector<2x16x8xf32> to vector<2x16x8xbf16>
    %322 = arith.truncf %318 : vector<2x16x8xf32> to vector<2x16x8xbf16>
    "tpu.trace_start"() <{level = 10 : i32, message = "bqd,bkd->bqk"}> : () -> ()
    %cst_90 = arith.constant dense<0.000000e+00> : vector<2x16x16xf32>
    %323 = tpu.matmul %321, %322, %cst_90 {dimension_numbers = #tpu.dot_dimension_numbers<[2], [2], [1], [1], [0, 0, 0, 1, 1, 1], [0], [0]>} : vector<2x16x8xbf16>, vector<2x16x8xbf16>, vector<2x16x16xf32> -> vector<2x16x16xf32>
    "tpu.trace_stop"() : () -> ()
    %cst_91 = arith.constant dense<0xFF800000> : vector<2x16xf32>
    %324 = vector.multi_reduction <maximumf>, %323, %cst_91 [2] : vector<2x16x16xf32> to vector<2x16xf32>
    %325 = vector.shape_cast %324 : vector<2x16xf32> to vector<2x16x1xf32>
    %326 = vector.broadcast %325 : vector<2x16x1xf32> to vector<2x16x16xf32>
    %327 = arith.subf %323, %326 : vector<2x16x16xf32>
    %328 = math.exp %327 : vector<2x16x16xf32>
    %cst_92 = arith.constant dense<0.000000e+00> : vector<2x16xf32>
    %329 = vector.multi_reduction <add>, %328, %cst_92 [2] : vector<2x16x16xf32> to vector<2x16xf32>
    %330 = vector.shape_cast %329 : vector<2x16xf32> to vector<2x16x1xf32>
    %331 = tpu.reciprocal %330 {approx = true} : vector<2x16x1xf32> -> vector<2x16x1xf32>
    %332 = vector.broadcast %331 : vector<2x16x1xf32> to vector<2x16x16xf32>
    %333 = arith.mulf %328, %332 : vector<2x16x16xf32>
    %334 = arith.truncf %333 : vector<2x16x16xf32> to vector<2x16x16xbf16>
    %335 = arith.truncf %320 : vector<2x16x8xf32> to vector<2x16x8xbf16>
    "tpu.trace_start"() <{level = 10 : i32, message = "bqk,bkd->bqd"}> : () -> ()
    %cst_93 = arith.constant dense<0.000000e+00> : vector<2x16x8xf32>
    %336 = tpu.matmul %334, %335, %cst_93 {dimension_numbers = #tpu.dot_dimension_numbers<[2], [1], [1], [2], [0, 0, 0, 1, 1, 2], [0], [0]>} : vector<2x16x16xbf16>, vector<2x16x8xbf16>, vector<2x16x8xf32> -> vector<2x16x8xf32>
    "tpu.trace_stop"() : () -> ()
    %337 = vector.shape_cast %336 : vector<2x16x8xf32> to vector<32x8xf32>
    %338 = arith.truncf %337 : vector<32x8xf32> to vector<32x8xbf16>
    %339 = vector.extract_strided_slice %253 {offsets = [16, 0], sizes = [8, 32], strides = [1, 1]} : vector<32x32xbf16> to vector<8x32xbf16>
    %cst_94 = arith.constant dense<0.000000e+00> : vector<32x32xf32>
    %340 = tpu.matmul %338, %339, %cst_94 {dimension_numbers = #tpu.dot_dimension_numbers<[1], [0], [0], [1], [0, 0, 1, 1], [], []>} : vector<32x8xbf16>, vector<8x32xbf16>, vector<32x32xf32> -> vector<32x32xf32>
    %341 = arith.addf %312, %340 : vector<32x32xf32>
    %342 = vector.extract_strided_slice %251 {offsets = [0, 24], sizes = [32, 8], strides = [1, 1]} : vector<32x96xf32> to vector<32x8xf32>
    %cst_95 = arith.constant 0.353553385 : f32
    %343 = vector.broadcast %cst_95 : f32 to vector<32x8xf32>
    %344 = arith.mulf %342, %343 : vector<32x8xf32>
    %345 = vector.shape_cast %344 : vector<32x8xf32> to vector<2x16x8xf32>
    %346 = vector.extract_strided_slice %251 {offsets = [0, 56], sizes = [32, 8], strides = [1, 1]} : vector<32x96xf32> to vector<32x8xf32>
    %347 = vector.shape_cast %346 : vector<32x8xf32> to vector<2x16x8xf32>
    %348 = vector.extract_strided_slice %251 {offsets = [0, 88], sizes = [32, 8], strides = [1, 1]} : vector<32x96xf32> to vector<32x8xf32>
    %349 = vector.shape_cast %348 : vector<32x8xf32> to vector<2x16x8xf32>
    %350 = arith.truncf %345 : vector<2x16x8xf32> to vector<2x16x8xbf16>
    %351 = arith.truncf %347 : vector<2x16x8xf32> to vector<2x16x8xbf16>
    "tpu.trace_start"() <{level = 10 : i32, message = "bqd,bkd->bqk"}> : () -> ()
    %cst_96 = arith.constant dense<0.000000e+00> : vector<2x16x16xf32>
    %352 = tpu.matmul %350, %351, %cst_96 {dimension_numbers = #tpu.dot_dimension_numbers<[2], [2], [1], [1], [0, 0, 0, 1, 1, 1], [0], [0]>} : vector<2x16x8xbf16>, vector<2x16x8xbf16>, vector<2x16x16xf32> -> vector<2x16x16xf32>
    "tpu.trace_stop"() : () -> ()
    %cst_97 = arith.constant dense<0xFF800000> : vector<2x16xf32>
    %353 = vector.multi_reduction <maximumf>, %352, %cst_97 [2] : vector<2x16x16xf32> to vector<2x16xf32>
    %354 = vector.shape_cast %353 : vector<2x16xf32> to vector<2x16x1xf32>
    %355 = vector.broadcast %354 : vector<2x16x1xf32> to vector<2x16x16xf32>
    %356 = arith.subf %352, %355 : vector<2x16x16xf32>
    %357 = math.exp %356 : vector<2x16x16xf32>
    %cst_98 = arith.constant dense<0.000000e+00> : vector<2x16xf32>
    %358 = vector.multi_reduction <add>, %357, %cst_98 [2] : vector<2x16x16xf32> to vector<2x16xf32>
    %359 = vector.shape_cast %358 : vector<2x16xf32> to vector<2x16x1xf32>
    %360 = tpu.reciprocal %359 {approx = true} : vector<2x16x1xf32> -> vector<2x16x1xf32>
    %361 = vector.broadcast %360 : vector<2x16x1xf32> to vector<2x16x16xf32>
    %362 = arith.mulf %357, %361 : vector<2x16x16xf32>
    %363 = arith.truncf %362 : vector<2x16x16xf32> to vector<2x16x16xbf16>
    %364 = arith.truncf %349 : vector<2x16x8xf32> to vector<2x16x8xbf16>
    "tpu.trace_start"() <{level = 10 : i32, message = "bqk,bkd->bqd"}> : () -> ()
    %cst_99 = arith.constant dense<0.000000e+00> : vector<2x16x8xf32>
    %365 = tpu.matmul %363, %364, %cst_99 {dimension_numbers = #tpu.dot_dimension_numbers<[2], [1], [1], [2], [0, 0, 0, 1, 1, 2], [0], [0]>} : vector<2x16x16xbf16>, vector<2x16x8xbf16>, vector<2x16x8xf32> -> vector<2x16x8xf32>
    "tpu.trace_stop"() : () -> ()
    %366 = vector.shape_cast %365 : vector<2x16x8xf32> to vector<32x8xf32>
    %367 = arith.truncf %366 : vector<32x8xf32> to vector<32x8xbf16>
    %368 = vector.extract_strided_slice %253 {offsets = [24, 0], sizes = [8, 32], strides = [1, 1]} : vector<32x32xbf16> to vector<8x32xbf16>
    %cst_100 = arith.constant dense<0.000000e+00> : vector<32x32xf32>
    %369 = tpu.matmul %367, %368, %cst_100 {dimension_numbers = #tpu.dot_dimension_numbers<[1], [0], [0], [1], [0, 0, 1, 1], [], []>} : vector<32x8xbf16>, vector<8x32xbf16>, vector<32x32xf32> -> vector<32x32xf32>
    %370 = arith.addf %341, %369 : vector<32x32xf32>
    %371 = arith.addf %213, %370 : vector<32x32xf32>
    %372 = vector.broadcast %217 : vector<1x32xf32> to vector<32x32xf32>
    %373 = arith.addf %371, %372 : vector<32x32xf32>
    %cst_101 = arith.constant dense<0.000000e+00> : vector<32xf32>
    %374 = vector.multi_reduction <add>, %373, %cst_101 [1] : vector<32x32xf32> to vector<32xf32>
    %375 = vector.shape_cast %374 : vector<32xf32> to vector<32x1xf32>
    %cst_102 = arith.constant 3.200000e+01 : f32
    %376 = vector.broadcast %cst_102 : f32 to vector<32x1xf32>
    %377 = arith.divf %375, %376 : vector<32x1xf32>
    %378 = arith.mulf %373, %373 : vector<32x32xf32>
    %cst_103 = arith.constant dense<0.000000e+00> : vector<32xf32>
    %379 = vector.multi_reduction <add>, %378, %cst_103 [1] : vector<32x32xf32> to vector<32xf32>
    %380 = vector.shape_cast %379 : vector<32xf32> to vector<32x1xf32>
    %cst_104 = arith.constant 3.200000e+01 : f32
    %381 = vector.broadcast %cst_104 : f32 to vector<32x1xf32>
    %382 = arith.divf %380, %381 : vector<32x1xf32>
    %383 = arith.mulf %377, %377 : vector<32x1xf32>
    %384 = arith.subf %382, %383 : vector<32x1xf32>
    %385 = vector.broadcast %377 : vector<32x1xf32> to vector<32x32xf32>
    %386 = arith.subf %373, %385 : vector<32x32xf32>
    %cst_105 = arith.constant 9.99999997E-7 : f32
    %387 = vector.broadcast %cst_105 : f32 to vector<32x1xf32>
    %388 = arith.addf %384, %387 : vector<32x1xf32>
    %389 = math.rsqrt %388 : vector<32x1xf32>
    %390 = vector.broadcast %389 : vector<32x1xf32> to vector<32x32xf32>
    %391 = arith.mulf %386, %390 : vector<32x32xf32>
    %392 = vector.broadcast %222 : vector<1x32xf32> to vector<32x32xf32>
    %393 = arith.mulf %391, %392 : vector<32x32xf32>
    %394 = vector.broadcast %223 : vector<1x32xf32> to vector<32x32xf32>
    %395 = arith.addf %393, %394 : vector<32x32xf32>
    %396 = arith.truncf %395 : vector<32x32xf32> to vector<32x32xbf16>
    %c1_106 = arith.constant 1 : index
    %c0_107 = arith.constant 0 : index
    %c0_108 = arith.constant 0 : index
    %397 = vector.load %arg6[%c1_106, %c0_107, %c0_108] : memref<2x32x64xbf16, #tpu.memory_space<vmem>>, vector<1x32x64xbf16>
    %398 = vector.shape_cast %397 : vector<1x32x64xbf16> to vector<32x64xbf16>
    %cst_109 = arith.constant dense<0.000000e+00> : vector<32x64xf32>
    %399 = tpu.matmul %396, %398, %cst_109 {dimension_numbers = #tpu.dot_dimension_numbers<[1], [0], [0], [1], [0, 0, 1, 1], [], []>} : vector<32x32xbf16>, vector<32x64xbf16>, vector<32x64xf32> -> vector<32x64xf32>
    %400 = vector.broadcast %218 : vector<1x64xf32> to vector<32x64xf32>
    %401 = arith.addf %399, %400 : vector<32x64xf32>
    %402 = arith.mulf %401, %401 : vector<32x64xf32>
    %403 = arith.mulf %401, %402 : vector<32x64xf32>
    %cst_110 = arith.constant 4.471500e-02 : f32
    %404 = vector.broadcast %cst_110 : f32 to vector<32x64xf32>
    %405 = arith.mulf %404, %403 : vector<32x64xf32>
    %406 = arith.addf %401, %405 : vector<32x64xf32>
    %cst_111 = arith.constant 0.797884583 : f32
    %407 = vector.broadcast %cst_111 : f32 to vector<32x64xf32>
    %408 = arith.mulf %407, %406 : vector<32x64xf32>
    %409 = math.tanh %408 : vector<32x64xf32>
    %cst_112 = arith.constant 1.000000e+00 : f32
    %410 = vector.broadcast %cst_112 : f32 to vector<32x64xf32>
    %411 = arith.addf %410, %409 : vector<32x64xf32>
    %cst_113 = arith.constant 5.000000e-01 : f32
    %412 = vector.broadcast %cst_113 : f32 to vector<32x64xf32>
    %413 = arith.mulf %412, %411 : vector<32x64xf32>
    %414 = arith.mulf %401, %413 : vector<32x64xf32>
    %415 = arith.truncf %414 : vector<32x64xf32> to vector<32x64xbf16>
    %c1_114 = arith.constant 1 : index
    %c0_115 = arith.constant 0 : index
    %c0_116 = arith.constant 0 : index
    %416 = vector.load %arg7[%c1_114, %c0_115, %c0_116] : memref<2x64x32xbf16, #tpu.memory_space<vmem>>, vector<1x64x32xbf16>
    %417 = vector.shape_cast %416 : vector<1x64x32xbf16> to vector<64x32xbf16>
    %cst_117 = arith.constant dense<0.000000e+00> : vector<32x32xf32>
    %418 = tpu.matmul %415, %417, %cst_117 {dimension_numbers = #tpu.dot_dimension_numbers<[1], [0], [0], [1], [0, 0, 1, 1], [], []>} : vector<32x64xbf16>, vector<64x32xbf16>, vector<32x32xf32> -> vector<32x32xf32>
    %419 = vector.broadcast %219 : vector<1x32xf32> to vector<32x32xf32>
    %420 = arith.addf %418, %419 : vector<32x32xf32>
    %421 = arith.addf %373, %420 : vector<32x32xf32>
    %c0_118 = arith.constant 0 : index
    %c0_119 = arith.constant 0 : index
    %422 = vector.load %arg9[%c0_118, %c0_119] : memref<2x32xf32, #tpu.memory_space<vmem>>, vector<2x32xf32>
    %423 = vector.extract_strided_slice %422 {offsets = [0, 0], sizes = [1, 32], strides = [1, 1]} : vector<2x32xf32> to vector<1x32xf32>
    %424 = vector.extract_strided_slice %422 {offsets = [1, 0], sizes = [1, 32], strides = [1, 1]} : vector<2x32xf32> to vector<1x32xf32>
    %cst_120 = arith.constant dense<0.000000e+00> : vector<32xf32>
    %425 = vector.multi_reduction <add>, %421, %cst_120 [1] : vector<32x32xf32> to vector<32xf32>
    %426 = vector.shape_cast %425 : vector<32xf32> to vector<32x1xf32>
    %cst_121 = arith.constant 3.200000e+01 : f32
    %427 = vector.broadcast %cst_121 : f32 to vector<32x1xf32>
    %428 = arith.divf %426, %427 : vector<32x1xf32>
    %429 = arith.mulf %421, %421 : vector<32x32xf32>
    %cst_122 = arith.constant dense<0.000000e+00> : vector<32xf32>
    %430 = vector.multi_reduction <add>, %429, %cst_122 [1] : vector<32x32xf32> to vector<32xf32>
    %431 = vector.shape_cast %430 : vector<32xf32> to vector<32x1xf32>
    %cst_123 = arith.constant 3.200000e+01 : f32
    %432 = vector.broadcast %cst_123 : f32 to vector<32x1xf32>
    %433 = arith.divf %431, %432 : vector<32x1xf32>
    %434 = arith.mulf %428, %428 : vector<32x1xf32>
    %435 = arith.subf %433, %434 : vector<32x1xf32>
    %436 = vector.broadcast %428 : vector<32x1xf32> to vector<32x32xf32>
    %437 = arith.subf %421, %436 : vector<32x32xf32>
    %cst_124 = arith.constant 9.99999997E-7 : f32
    %438 = vector.broadcast %cst_124 : f32 to vector<32x1xf32>
    %439 = arith.addf %435, %438 : vector<32x1xf32>
    %440 = math.rsqrt %439 : vector<32x1xf32>
    %441 = vector.broadcast %440 : vector<32x1xf32> to vector<32x32xf32>
    %442 = arith.mulf %437, %441 : vector<32x32xf32>
    %443 = vector.broadcast %423 : vector<1x32xf32> to vector<32x32xf32>
    %444 = arith.mulf %442, %443 : vector<32x32xf32>
    %445 = vector.broadcast %424 : vector<1x32xf32> to vector<32x32xf32>
    %446 = arith.addf %444, %445 : vector<32x32xf32>
    %447 = vector.shape_cast %446 : vector<32x32xf32> to vector<2x16x32xf32>
    %cst_125 = arith.constant dense<0.000000e+00> : vector<2x32xf32>
    %448 = vector.multi_reduction <add>, %447, %cst_125 [1] : vector<2x16x32xf32> to vector<2x32xf32>
    %cst_126 = arith.constant 1.600000e+01 : f32
    %449 = vector.broadcast %cst_126 : f32 to vector<2x32xf32>
    %450 = arith.divf %448, %449 : vector<2x32xf32>
    %c0_127 = arith.constant 0 : index
    %c0_128 = arith.constant 0 : index
    %451 = vector.load %arg10[%c0_127, %c0_128] : memref<2x32xf32, #tpu.memory_space<vmem>>, vector<2x32xf32>
    tpu.vector_store %arg10[%c0_127, %c0_128], %450 {strides = array<i32>} : memref<2x32xf32, #tpu.memory_space<vmem>>, vector<2x32xf32>,
    return
  }
  func.func @transform_0(%arg0: i32) -> (i32, i32) {
    %c0_i32 = arith.constant 0 : i32
    %c0_i32_0 = arith.constant 0 : i32
    %c0_i32_1 = arith.constant 0 : i32
    return %c0_i32, %c0_i32_0 : i32, i32
  }
  func.func @transform_1(%arg0: i32) -> (i32, i32) {
    %c0_i32 = arith.constant 0 : i32
    %c0_i32_0 = arith.constant 0 : i32
    %c0_i32_1 = arith.constant 0 : i32
    return %c0_i32, %c0_i32_0 : i32, i32
  }
  func.func @transform_2(%arg0: i32) -> (i32, i32) {
    %c0_i32 = arith.constant 0 : i32
    %c0_i32_0 = arith.constant 0 : i32
    %c0_i32_1 = arith.constant 0 : i32
    return %c0_i32, %c0_i32_0 : i32, i32
  }
  func.func @transform_3(%arg0: i32) -> (i32, i32, i32) {
    %c0_i32 = arith.constant 0 : i32
    %c0_i32_0 = arith.constant 0 : i32
    %c0_i32_1 = arith.constant 0 : i32
    %c0_i32_2 = arith.constant 0 : i32
    return %c0_i32, %c0_i32_0, %c0_i32_1 : i32, i32, i32
  }
  func.func @transform_4(%arg0: i32) -> (i32, i32, i32) {
    %c0_i32 = arith.constant 0 : i32
    %c0_i32_0 = arith.constant 0 : i32
    %c0_i32_1 = arith.constant 0 : i32
    %c0_i32_2 = arith.constant 0 : i32
    return %c0_i32, %c0_i32_0, %c0_i32_1 : i32, i32, i32
  }
  func.func @transform_5(%arg0: i32) -> (i32, i32, i32) {
    %c0_i32 = arith.constant 0 : i32
    %c0_i32_0 = arith.constant 0 : i32
    %c0_i32_1 = arith.constant 0 : i32
    %c0_i32_2 = arith.constant 0 : i32
    return %c0_i32, %c0_i32_0, %c0_i32_1 : i32, i32, i32
  }
  func.func @transform_6(%arg0: i32) -> (i32, i32, i32) {
    %c0_i32 = arith.constant 0 : i32
    %c0_i32_0 = arith.constant 0 : i32
    %c0_i32_1 = arith.constant 0 : i32
    %c0_i32_2 = arith.constant 0 : i32
    return %c0_i32, %c0_i32_0, %c0_i32_1 : i32, i32, i32
  }
  func.func @transform_7(%arg0: i32) -> (i32, i32, i32) {
    %c0_i32 = arith.constant 0 : i32
    %c0_i32_0 = arith.constant 0 : i32
    %c0_i32_1 = arith.constant 0 : i32
    %c0_i32_2 = arith.constant 0 : i32
    return %c0_i32, %c0_i32_0, %c0_i32_1 : i32, i32, i32
  }
  func.func @transform_8(%arg0: i32) -> (i32, i32) {
    %c0_i32 = arith.constant 0 : i32
    %c0_i32_0 = arith.constant 0 : i32
    %c0_i32_1 = arith.constant 0 : i32
    return %c0_i32, %c0_i32_0 : i32, i32
  }
  func.func @transform_9(%arg0: i32) -> (i32, i32) {
    %c0_i32 = arith.constant 0 : i32
    %c0_i32_0 = arith.constant 0 : i32
    %c0_i32_1 = arith.constant 0 : i32
    return %c0_i32, %c0_i32_0 : i32, i32
  }
}

</mosaic_0001>

<bundles_post_ra>
// kernel: tpu_custom_call.1
= control target key start
LH: loop header
LB: loop body
LE: loop exit
PB: predicated region body
PF: predicated region fallthrough
CT: control target
= control target key end

     0   :  { %14 = vsyncpa [#allocation3], 0  ;;  %s3861_s0 = inlined_call_operand.vmem [shape: f32[32,64], index: 0, kind: input, shape index: {}]   ;;  %s3862_s1 = inlined_call_operand.vmem [shape: f32[32,32], index: 1, kind: input, shape index: {}]   ;;  %s3863_s2 = inlined_call_operand.vmem [shape: bf16[64,32], index: 2, kind: input, shape index: {}]   ;;  %s3864_s3 = inlined_call_operand.vmem [shape: bf16[2,32,96], index: 3, kind: input, shape index: {}]   ;;  %s3865_s4 = inlined_call_operand.hbm [shape: bf16[2,32,32], index: 4, kind: input, shape index: {}]   ;;  %s3866_s5 = inlined_call_operand.hbm [shape: bf16[2,32,64], index: 5, kind: input, shape index: {}]   ;;  %s3867_s6 = inlined_call_operand.vmem [shape: bf16[2,64,32], index: 6, kind: input, shape index: {}]   ;;  %s3868_s7 = inlined_call_operand.vmem [shape: f32[2,8,128], index: 7, kind: input, shape index: {}]   ;;  %s3869_s8 = inlined_call_operand.vmem [shape: f32[2,32], index: 8, kind: input, shape index: {}]   ;;  %s3870_s9 = inlined_call_operand.hbm [shape: f32[2,32], index: 9, kind: output, shape index: {}]  }
   0x1   :  { %15 = vsyncpa [#allocation6], 0 }
   0x2   :  { %16 = vsyncpa [#allocation4], 0  ;;  %s29_s11 = sshll.u32 %s3865_s4, 4  ;;  %s3086_s12 = smov [#allocation2]   ;;  %s30_s11 = int_to_ptr.hbm [resolvable:$true] %s29_s11 }
   0x3   :  { %s31_s13 = sshll.u32 %s3086_s12, 4  ;;  %s42_s16 = sshll.u32 %s3866_s5, 4  ;;  %s32_s13 = int_to_ptr.vmem [resolvable:$true] %s31_s13  ;;  %s43_s16 = int_to_ptr.hbm [resolvable:$true] %s42_s16 }
   0x4   :  { %s3087_s17 = smov 64   ;;  %s3088_s18 = smov 4  }
   0x5   :  { %37 = dma.hbm_to_vmem [thread:$0]  %s30_s11, 512, %s32_s13, [#allocation3], %s3087_s17, %s3087_s17, %s3088_s18  }
   0x6   :  { %s3089_s19 = smov [#allocation5]  }
   0x7   :  { %s44_s20 = sshll.u32 %s3089_s19, 4  ;;  %s45_s20 = int_to_ptr.vmem [resolvable:$true] %s44_s20 }
   0x8   :  { %50 = dma.hbm_to_vmem [thread:$0]  %s43_s16, 512, %s45_s20, [#allocation6], %s3087_s17, %s3087_s17, %s3088_s18  }
   0x9   :  { %3080 = dma.done.wait [#allocation3], 512  }
   0xa   :  { %3081 = vsyncadd [#allocation3], 4294966784 }
   0xb   :  { %3082 = dma.done.wait [#allocation6], 512  }
   0xc   :  { %3083 = vsyncadd [#allocation6], 4294966784  ;;  %v2781_v0 = vld [vmem:[%s3863_s2 + $0x18] sm:$0xff]  ;;  %v2780_v1 = vld [vmem:[%s3863_s2 + $0x10] sm:$0xff]  ;;  %vm108_vm0 = vcmask 523264   ;;  %vm135_vm1 = vcmask 261120  }
   0xd   :  { %119 = vmatpush.bf16.msra.mxu0 %v2781_v0  ;;  %v2779_v2 = vld [vmem:[%s3863_s2 + $0x8] sm:$0xff]  ;;  %v2778_v3 = vld [vmem:[%s3863_s2] sm:$0xff]  ;;  %v68_v7 = vld [vmem:[%s3861_s0 + $0x10] sm:$0xff]  ;;  %v3090_v34 = vmov 32.0   ;;  %s3091_s24 = smov 88   ;;  %s3092_s25 = smov 96  }
   0xe   :  { %v66_v4 = vld [vmem:[%s3861_s0] sm:$0xff]  ;;  %v67_v5 = vld [vmem:[%s3861_s0 + $0x8] sm:$0xff]  ;;  %v69_v8 = vld [vmem:[%s3861_s0 + $0x18] sm:$0xff]  ;;  %2818 = vrcp.f32 %v3090_v34  ;;  %s3093_s26 = smov 120   ;;  %vm321_vm15 = vcmask 64512   ;;  %s3094_s27 = smov 112  }
   0xf   :  { %v70_v6 = vpack.c.bf16 %v67_v5, %v66_v4  ;;  %v71_v9 = vpack.c.bf16 %v69_v8, %v68_v7  ;;  %v80_v10 = vld [vmem:[%s3862_s1] sm:$0xff]  ;;  %v81_v16 = vld [vmem:[%s3862_s1 + $0x8] sm:$0xff]  ;;  %v82_v22 = vld [vmem:[%s3862_s1 + $0x10] sm:$0xff]  ;;  %s3095_s28 = smov 56   ;;  %s3096_s29 = smov 80  }
  0x10   :  { %v83_v28 = vld [vmem:[%s3862_s1 + $0x18] sm:$0xff]  ;;  %v2783_v44 = vld [vmem:[%s3864_s3 + $0x8] sm:$0xff]  ;;  %v2782_v48 = vld [vmem:[%s3864_s3] sm:$0xff]  ;;  %s3097_s30 = smov 72   ;;  %s3098_s10 = smov 104  }
  0x11   :  { %120 = vmatpush.bf16.msra.mxu0 %v2780_v1  ;;  %2798 = vmatpush.bf16.msra.mxu1 %v2783_v44  ;;  %s3099_s11 = smov 48   ;;  %s3100_s12 = smov 40  }
  0x12   :  { %s3101_s13 = smov 32   ;;  %s2612_s0 = sshll.u32 %s3870_s9, 4  ;;  %s2613_s0 = int_to_ptr.hbm [resolvable:$true] %s2612_s0 }
  0x14   :  { %v2819_v35 = vpop.eup %2818 }
  0x15   :  { %121 = vmatpush.bf16.msra.mxu0 %v2779_v2  ;;  %v149_v36 = vmul.f32 32.0, %v2819_v35  ;;  %vm153_vm2 = vweird.f32 %v2819_v35  ;;  %2799 = vmatpush.bf16.msra.mxu1 %v2782_v48 }
  0x17   :  { %v150_v37 = vsub.f32 1.0, %v149_v36 }
  0x19   :  { %122 = vmatpush.bf16.msra.mxu0 %v2778_v3  ;;  %v151_v38 = vmul.f32 %v2819_v35, %v150_v37 }
  0x1b   :  { %v152_v39 = vadd.f32 %v2819_v35, %v151_v38 }
  0x1c   :  { %2639 = vmatmul.msk.bf16.vlgmr.msra.gmra.mxu0 %vm108_vm0, %v70_v6 }
  0x1d   :  { %v3230_v40 = vsel %vm153_vm2, %v2819_v35, %v152_v39  ;;  %280 = vmatpush.bf16.msrb.mxu0 %v2783_v44  ;;  %vm374_vm2 = vcmask 130048  }
  0x21   :  { %281 = vmatpush.bf16.msrb.mxu0 %v2782_v48 }
  0x2c   :  { %2640 = vmatmul.msk.bf16.gmra.mxu0 %vm108_vm0, %v71_v9 }
  0x99   :  { %v124_v11 = vpop.f32.mrf.mxu0 }
  0x9a   :  { %v3193_v12 = vadd.f32 %v124_v11, %v80_v10 }
  0x9c   :  { %v136_v13 = vsel %vm135_vm1, %v3193_v12, 0.0  ;;  %v159_v14 = vmul.f32 %v3193_v12, %v3193_v12 }
  0x9d   :  { %137 = vadd.xlane.f32.xlu0 %v136_v13 }
  0x9e   :  { %v163_v15 = vsel %vm135_vm1, %v159_v14, 0.0 }
  0x9f   :  { %164 = vadd.xlane.f32.xlu1 %v163_v15 }
  0xa1   :  { %v126_v17 = vpop.f32.mrf.mxu0 }
  0xa2   :  { %v3203_v18 = vadd.f32 %v126_v17, %v81_v16  ;;  %v134_v17 = vld [vmem:[%s3868_s7] sm:$0xff] }
  0xa3   :  { %v244_v35 = vperm.slane %v134_v17, 4 }
  0xa4   :  { %v139_v19 = vsel %vm135_vm1, %v3203_v18, 0.0  ;;  %v160_v20 = vmul.f32 %v3203_v18, %v3203_v18 }
  0xa5   :  { %140 = vadd.xlane.f32.xlu0 %v139_v19 }
  0xa6   :  { %v166_v21 = vsel %vm135_vm1, %v160_v20, 0.0 }
  0xa7   :  { %167 = vadd.xlane.f32.xlu1 %v166_v21 }
  0xa9   :  { %v129_v23 = vpop.f32.mrf.mxu0 }
  0xaa   :  { %v3213_v24 = vadd.f32 %v129_v23, %v82_v22 }
  0xac   :  { %v142_v25 = vsel %vm135_vm1, %v3213_v24, 0.0  ;;  %v161_v26 = vmul.f32 %v3213_v24, %v3213_v24 }
  0xad   :  { %143 = vadd.xlane.f32.xlu2 %v142_v25 }
  0xae   :  { %v169_v27 = vsel %vm135_vm1, %v161_v26, 0.0  ;;  %v239_v26 = vperm.slane %v134_v17, 3 }
  0xaf   :  { %170 = vadd.xlane.f32.xlu0 %v169_v27 }
  0xb1   :  { %v131_v29 = vpop.f32.mrf.mxu0 }
  0xb2   :  { %v3223_v30 = vadd.f32 %v131_v29, %v83_v28 }
  0xb4   :  { %v145_v31 = vsel %vm135_vm1, %v3223_v30, 0.0  ;;  %v162_v32 = vmul.f32 %v3223_v30, %v3223_v30 }
  0xb5   :  { %146 = vadd.xlane.f32.xlu2 %v145_v31 }
  0xb6   :  { %v172_v33 = vsel %vm135_vm1, %v162_v32, 0.0 }
  0xb7   :  { %173 = vadd.xlane.f32.xlu1 %v172_v33 }
 0x110   :  { %v138_v41 = vpop.xlane.xlu0 %137 }
 0x111   :  { %v155_v42 = vmul.f32 %v3230_v40, %v138_v41 }
 0x112   :  { %v165_v43 = vpop.xlane.xlu1 %164 }
 0x113   :  { %v179_v45 = vmul.f32 %v155_v42, %v155_v42  ;;  %v175_v46 = vmul.f32 %v165_v43, %v3230_v40  ;;  %v187_v19 = vsub.f32 %v3193_v12, %v155_v42 }
 0x115   :  { %v183_v47 = vsub.f32 %v175_v46, %v179_v45 }
 0x117   :  { %v191_v49 = vadd.f32 1e-06, %v183_v47 }
 0x118   :  { %v141_v50 = vpop.xlane.xlu0 %140 }
 0x119   :  { %2820 = vrsqrt.f32 %v191_v49  ;;  %v156_v51 = vmul.f32 %v3230_v40, %v141_v50  ;;  %vm201_vm4 = vweird.f32 %v191_v49 }
 0x11a   :  { %v168_v52 = vpop.xlane.xlu1 %167 }
 0x11b   :  { %v180_v53 = vmul.f32 %v156_v51, %v156_v51  ;;  %v176_v54 = vmul.f32 %v168_v52, %v3230_v40  ;;  %v188_v29 = vsub.f32 %v3203_v18, %v156_v51 }
 0x11d   :  { %v184_v55 = vsub.f32 %v176_v54, %v180_v53 }
 0x11f   :  { %v2821_v56 = vpop.eup %2820  ;;  %v192_v57 = vadd.f32 1e-06, %v184_v55 }
 0x120   :  { %v196_v58 = vmul.f32 %v2821_v56, %v191_v49  ;;  %v144_v59 = vpop.xlane.xlu2 %143  ;;  %vm202_vm3 = vweird.f32 %v2821_v56 }
 0x121   :  { %2822 = vrsqrt.f32 %v192_v57  ;;  %v3243_v60 = vmul.f32 %v3230_v40, %v144_v59  ;;  %vm203_vm5 = vmor %vm201_vm4, %vm202_vm3  ;;  %vm211_vm7 = vweird.f32 %v192_v57  ;;  %vm629_vm3 = vcmask 1043456  }
 0x122   :  { %v197_v61 = vmul.f32 %v2821_v56, %v196_v58  ;;  %v171_v62 = vpop.xlane.xlu0 %170 }
 0x123   :  { %v181_v63 = vmul.f32 %v3243_v60, %v3243_v60  ;;  %v177_v0 = vmul.f32 %v171_v62, %v3230_v40  ;;  %v189_v45 = vsub.f32 %v3213_v24, %v3243_v60  ;;  %v3260_v62 = vperm.slane %v134_v17, 0 }
 0x124   :  { %v198_v1 = vmul.f32 0.5, %v197_v61 }
 0x125   :  { %v185_v2 = vsub.f32 %v177_v0, %v181_v63 }
 0x126   :  { %v199_v3 = vsub.f32 1.5, %v198_v1 }
 0x127   :  { %v2823_v4 = vpop.eup %2822  ;;  %v193_v5 = vadd.f32 1e-06, %v185_v2 }
 0x128   :  { %v200_v6 = vmul.f32 %v2821_v56, %v199_v3  ;;  %v206_v7 = vmul.f32 %v2823_v4, %v192_v57  ;;  %v147_v8 = vpop.xlane.xlu2 %146  ;;  %vm212_vm6 = vweird.f32 %v2823_v4 }
 0x129   :  { %v158_v9 = vmul.f32 %v3230_v40, %v147_v8  ;;  %2824 = vrsqrt.f32 %v193_v5  ;;  %vm213_vm8 = vmor %vm211_vm7, %vm212_vm6  ;;  %vm221_vm9 = vweird.f32 %v193_v5 }
 0x12a   :  { %v207_v10 = vmul.f32 %v2823_v4, %v206_v7  ;;  %v174_v11 = vpop.xlane.xlu1 %173  ;;  %v204_v15 = vsel %vm203_vm5, %v2821_v56, %v200_v6 }
 0x12b   :  { %v182_v13 = vmul.f32 %v158_v9, %v158_v9  ;;  %v178_v14 = vmul.f32 %v174_v11, %v3230_v40  ;;  %v235_v23 = vmul.f32 %v204_v15, %v187_v19  ;;  %v190_v52 = vsub.f32 %v3223_v30, %v158_v9 }
 0x12c   :  { %v208_v16 = vmul.f32 0.5, %v207_v10 }
 0x12d   :  { %v186_v20 = vsub.f32 %v178_v14, %v182_v13  ;;  %v240_v34 = vmul.f32 %v239_v26, %v235_v23 }
 0x12e   :  { %v209_v21 = vsub.f32 1.5, %v208_v16 }
 0x12f   :  { %v2825_v22 = vpop.eup %2824  ;;  %v194_v25 = vadd.f32 1e-06, %v186_v20  ;;  %v245_v41 = vadd.f32 %v244_v35, %v240_v34 }
 0x130   :  { %v210_v27 = vmul.f32 %v2823_v4, %v209_v21  ;;  %v216_v28 = vmul.f32 %v2825_v22, %v193_v5  ;;  %vm222_vm10 = vweird.f32 %v2825_v22 }
 0x131   :  { %2826 = vrsqrt.f32 %v194_v25  ;;  %vm223_vm11 = vmor %vm221_vm9, %vm222_vm10  ;;  %vm231_vm12 = vweird.f32 %v194_v25 }
 0x132   :  { %v214_v31 = vsel %vm213_vm8, %v2823_v4, %v210_v27  ;;  %v217_v32 = vmul.f32 %v2825_v22, %v216_v28 }
 0x133   :  { %v236_v33 = vmul.f32 %v214_v31, %v188_v29 }
 0x134   :  { %v218_v36 = vmul.f32 0.5, %v217_v32 }
 0x135   :  { %v241_v37 = vmul.f32 %v239_v26, %v236_v33 }
 0x136   :  { %v219_v38 = vsub.f32 1.5, %v218_v36 }
 0x137   :  { %v2827_v39 = vpop.eup %2826  ;;  %v246_v42 = vadd.f32 %v244_v35, %v241_v37 }
 0x138   :  { %v226_v43 = vmul.f32 %v2827_v39, %v194_v25  ;;  %v220_v44 = vmul.f32 %v2825_v22, %v219_v38  ;;  %vm232_vm13 = vweird.f32 %v2827_v39 }
 0x139   :  { %v249_v46 = vpack.c.bf16 %v246_v42, %v245_v41  ;;  %vm233_vm14 = vmor %vm231_vm12, %vm232_vm13 }
 0x13a   :  { %v227_v47 = vmul.f32 %v2827_v39, %v226_v43  ;;  %v224_v48 = vsel %vm223_vm11, %v2825_v22, %v220_v44 }
 0x13b   :  { %2649 = vmatmul.msk.bf16.vlgmr.msrb.gmra.mxu0 %vm135_vm1, %v249_v46  ;;  %v237_v50 = vmul.f32 %v224_v48, %v189_v45 }
 0x13c   :  { %v228_v49 = vmul.f32 0.5, %v227_v47 }
 0x13d   :  { %v242_v54 = vmul.f32 %v239_v26, %v237_v50 }
 0x13e   :  { %v229_v51 = vsub.f32 1.5, %v228_v49 }
 0x13f   :  { %v247_v58 = vadd.f32 %v244_v35, %v242_v54 }
 0x140   :  { %v230_v53 = vmul.f32 %v2827_v39, %v229_v51 }
 0x142   :  { %v234_v55 = vsel %vm233_vm14, %v2827_v39, %v230_v53 }
 0x143   :  { %v238_v56 = vmul.f32 %v234_v55, %v190_v52 }
 0x145   :  { %v243_v57 = vmul.f32 %v239_v26, %v238_v56 }
 0x147   :  { %v248_v59 = vadd.f32 %v244_v35, %v243_v57 }
 0x149   :  { %v250_v60 = vpack.c.bf16 %v248_v59, %v247_v58 }
 0x14b   :  { %2650 = vmatmul.msk.bf16.vlgmr.msra.gmra.mxu1 %vm135_vm1, %v250_v60 }
 0x1b8   :  { %v283_v61 = vpop.f32.mrf.mxu0 }
 0x1b9   :  { %v284_v63 = vadd.f32 %v283_v61, %v3260_v62 }
 0x1bb   :  { %v305_v1 = vpack.c.bf16 %v284_v63, %v284_v63  ;;  %v297_v5 = vmul.f32 0.35355338, %v284_v63 }
 0x1bd   :  { %v316_v6 = vunpack.c.l.b16 %v305_v1  ;;  %v301_v11 = vpack.c.bf16 %v297_v5, %v297_v5 }
 0x1bf   :  { %v311_v15 = vunpack.c.l.b16 %v301_v11 }
 0x1c0   :  { %v285_v0 = vpop.f32.mrf.mxu0 }
 0x1c1   :  { %v286_v2 = vadd.f32 %v285_v0, %v3260_v62 }
 0x1c3   :  { %v298_v3 = vmul.f32 0.35355338, %v286_v2  ;;  %v306_v4 = vpack.c.bf16 %v286_v2, %v286_v2 }
 0x1c5   :  { %v317_v7 = vunpack.c.l.b16 %v306_v4  ;;  %v302_v8 = vpack.c.bf16 %v298_v3, %v298_v3 }
 0x1c7   :  { %v3264_v9 = vpack.c.b16 %v317_v7, %v316_v6  ;;  %v312_v13 = vunpack.c.l.b16 %v302_v8 }
 0x1c8   :  { %v288_v10 = vpop.f32.mrf.mxu1 }
 0x1c9   :  { %477 = vrot.lane.b32.xlu1 %v3264_v9, %s3091_s24  ;;  %319 = vrot.lane.b32.xlu2 %v3264_v9, %s3092_s25  ;;  %v289_v14 = vadd.f32 %v288_v10, %v3260_v62  ;;  %v3271_v16 = vpack.c.b16 %v312_v13, %v311_v15 }
 0x1cb   :  { %v299_v17 = vmul.f32 0.35355338, %v289_v14  ;;  %v307_v20 = vpack.c.bf16 %v289_v14, %v289_v14 }
 0x1cd   :  { %v303_v22 = vpack.c.bf16 %v299_v17, %v299_v17  ;;  %v349_v26 = vunpack.c.l.b16 %v307_v20 }
 0x1cf   :  { %v344_v29 = vunpack.c.l.b16 %v303_v22 }
 0x1d0   :  { %v290_v19 = vpop.f32.mrf.mxu1 }
 0x1d1   :  { %v291_v21 = vadd.f32 %v290_v19, %v3260_v62  ;;  %475 = vrot.lane.b32.xlu2 %v3271_v16, %s3093_s26 }
 0x1d3   :  { %v300_v23 = vmul.f32 0.35355338, %v291_v21  ;;  %v308_v25 = vpack.c.bf16 %v291_v21, %v291_v21 }
 0x1d5   :  { %v304_v27 = vpack.c.bf16 %v300_v23, %v300_v23  ;;  %v350_v28 = vunpack.c.l.b16 %v308_v25 }
 0x1d7   :  { %v345_v31 = vunpack.c.l.b16 %v304_v27  ;;  %v3276_v32 = vpack.c.b16 %v350_v28, %v349_v26 }
 0x1d9   :  { %v3278_v33 = vpack.c.b16 %v345_v31, %v344_v29  ;;  %352 = vrot.lane.b32.xlu0 %v3276_v32, %s3092_s25 }
 0x223   :  { %v320_v34 = vpop.permute.xlu2 %319 }
 0x224   :  { %v326_v35 = vsel %vm321_vm15, %v320_v34, 0 }
 0x225   :  { %335 = vmatpush.bf16.xpose.msra.mxu2 %v326_v35 }
 0x22b   :  { %v476_v38 = vpop.permute.xlu2 %475 }
 0x22c   :  { %2651 = vmatmul.msk.bf16.vlgmr.msra.gmra.mxu2 %vm321_vm15, %v3271_v16 }
 0x23b   :  { %v478_v36 = vpop.permute.xlu1 %477 }
 0x23c   :  { %v483_v37 = vsel %vm321_vm15, %v478_v36, 0 }
 0x23d   :  { %492 = vmatpush.bf16.xpose.msrb.mxu1 %v483_v37 }
 0x244   :  { %2655 = vmatmul.msk.bf16.vlgmr.msrb.gmra.mxu1 %vm321_vm15, %v476_v38 }
 0x24b   :  { %v353_v39 = vpop.permute.xlu0 %352 }
 0x24c   :  { %v358_v41 = vsel %vm321_vm15, %v353_v39, 0 }
 0x24d   :  { %367 = vmatpush.bf16.xpose.msra.mxu3 %v358_v41 }
 0x254   :  { %2652 = vmatmul.msk.bf16.vlgmr.msra.gmra.mxu3 %vm321_vm15, %v3278_v33 }
 0x2af   :  { %v337_v42 = vpop.f32.mrf.mxu2 }
 0x2b0   :  { %v375_v43 = vsel %vm374_vm2, %v337_v42, -inf }
 0x2b1   :  { %376 = vmax.xlane.f32.xlu0 %v375_v43 }
 0x2b7   :  { %v339_v44 = vpop.f32.mrf.mxu2 }
 0x2b8   :  { %v378_v45 = vsel %vm374_vm2, %v339_v44, -inf }
 0x2b9   :  { %379 = vmax.xlane.f32.xlu2 %v378_v45 }
 0x2c1   :  { %v3294_v46 = vpop.f32.mrf.mxu1 }
 0x2c2   :  { %v523_v1 = vsel %vm374_vm2, %v3294_v46, -inf }
 0x2c9   :  { %v496_v49 = vpop.f32.mrf.mxu1 }
 0x2ca   :  { %v526_v50 = vsel %vm374_vm2, %v496_v49, -inf }
 0x2d1   :  { %428 = vrot.lane.b32.xlu2 %v3264_v9, %s3087_s17 }
 0x2d7   :  { %v3296_v47 = vpop.f32.mrf.mxu3 }
 0x2d8   :  { %v381_v48 = vsel %vm374_vm2, %v3296_v47, -inf }
 0x2df   :  { %v371_v0 = vpop.f32.mrf.mxu3 }
 0x2e0   :  { %v384_v4 = vsel %vm374_vm2, %v371_v0, -inf }
 0x2fa   :  { %382 = vmax.xlane.f32.xlu2 %v381_v48 }
 0x302   :  { %527 = vmax.xlane.f32.xlu2 %v526_v50 }
 0x31a   :  { %453 = vrot.lane.b32.xlu2 %v3276_v32, %s3087_s17 }
 0x322   :  { %680 = vrot.lane.b32.xlu2 %v3271_v16, %s3094_s27 }
 0x324   :  { %v377_v51 = vpop.xlane.xlu0 %376 }
 0x325   :  { %v387_v52 = vsub.f32 %v337_v42, %v377_v51 }
 0x327   :  { %v391_v53 = vmul.f32 1.442695, %v387_v52 }
 0x329   :  { %2828 = vpow2.f32 %v391_v53 }
 0x32c   :  { %v380_v54 = vpop.xlane.xlu2 %379 }
 0x32d   :  { %v388_v55 = vsub.f32 %v339_v44, %v380_v54 }
 0x32f   :  { %v2829_v56 = vpop.eup %2828  ;;  %v393_v57 = vmul.f32 1.442695, %v388_v55 }
 0x330   :  { %v399_v58 = vsel %vm374_vm2, %v2829_v56, 0.0 }
 0x331   :  { %2830 = vpow2.f32 %v393_v57  ;;  %400 = vadd.xlane.f32.xlu1 %v399_v58 }
 0x334   :  { %v429_v59 = vpop.permute.xlu2 %428 }
 0x335   :  { %441 = vmatpush.bf16.msrb.mxu2 %v429_v59 }
 0x337   :  { %v2831_v60 = vpop.eup %2830 }
 0x338   :  { %v402_v61 = vsel %vm374_vm2, %v2831_v60, 0.0 }
 0x339   :  { %403 = vadd.xlane.f32.xlu0 %v402_v61 }
 0x34a   :  { %501 = vrot.lane.b32.xlu1 %v3276_v32, %s3091_s24 }
 0x34d   :  { %499 = vrot.lane.b32.xlu0 %v3278_v33, %s3093_s26 }
 0x36d   :  { %v383_v63 = vpop.xlane.xlu2 %382 }
 0x36e   :  { %v389_v31 = vsub.f32 %v3296_v47, %v383_v63 }
 0x370   :  { %v395_v38 = vmul.f32 1.442695, %v389_v31 }
 0x374   :  { %524 = vmax.xlane.f32.xlu1 %v523_v1 }
 0x375   :  { %v528_v2 = vpop.xlane.xlu2 %527 }
 0x376   :  { %v536_v3 = vsub.f32 %v496_v49, %v528_v2 }
 0x377   :  { %385 = vmax.xlane.f32.xlu0 %v384_v4 }
 0x378   :  { %v541_v5 = vmul.f32 1.442695, %v536_v3 }
 0x37a   :  { %2832 = vpow2.f32 %v541_v5 }
 0x37d   :  { %v454_v6 = vpop.permute.xlu2 %453 }
 0x37e   :  { %466 = vmatpush.bf16.msrb.mxu3 %v454_v6 }
 0x380   :  { %v3314_v7 = vpop.eup %2832 }
 0x381   :  { %v550_v8 = vsel %vm374_vm2, %v3314_v7, 0.0 }
 0x382   :  { %551 = vadd.xlane.f32.xlu1 %v550_v8 }
 0x3a4   :  { %v401_v10 = vpop.xlane.xlu1 %400 }
 0x3a5   :  { %2834 = vrcp.f32 %v401_v10 }
 0x3ab   :  { %v2835_v13 = vpop.eup %2834 }
 0x3ac   :  { %v404_v11 = vpop.xlane.xlu0 %403  ;;  %v415_v14 = vmul.f32 %v2835_v13, %v2829_v56 }
 0x3ad   :  { %2836 = vrcp.f32 %v404_v11 }
 0x3ae   :  { %v419_v17 = vpack.c.bf16 %v415_v14, %v415_v14 }
 0x3b0   :  { %v425_v21 = vunpack.c.l.b16 %v419_v17 }
 0x3b3   :  { %v2837_v15 = vpop.eup %2836 }
 0x3b4   :  { %v416_v19 = vmul.f32 %v2837_v15, %v2831_v60 }
 0x3b6   :  { %v420_v20 = vpack.c.bf16 %v416_v19, %v416_v19 }
 0x3b8   :  { %v426_v22 = vunpack.c.l.b16 %v420_v20 }
 0x3ba   :  { %v427_v23 = vpack.c.b16 %v426_v22, %v425_v21  ;;  %v681_v22 = vpop.permute.xlu2 %680 }
 0x3bc   :  { %v502_v25 = vpop.permute.xlu1 %501  ;;  %2653 = vmatmul.msk.bf16.vlgmr.msrb.gmra.mxu2 %vm374_vm2, %v427_v23 }
 0x3bd   :  { %v507_v26 = vsel %vm321_vm15, %v502_v25, 0 }
 0x3be   :  { %516 = vmatpush.bf16.xpose.msra.mxu2 %v507_v26 }
 0x3bf   :  { %v500_v27 = vpop.permute.xlu0 %499 }
 0x3cc   :  { %2656 = vmatmul.msk.bf16.vlgmr.msra.gmra.mxu2 %vm321_vm15, %v500_v27 }
 0x3e7   :  { %v525_v28 = vpop.xlane.xlu1 %524 }
 0x3e8   :  { %v535_v29 = vsub.f32 %v3294_v46, %v525_v28  ;;  %v293_v46 = vld [vmem:[#allocation2] sm:$0xf] }
 0x3e9   :  { %v659_v47 = vsel %vm629_vm3, %v293_v46, 0 }
 0x3ea   :  { %v539_v34 = vmul.f32 1.442695, %v535_v29  ;;  %v386_v35 = vpop.xlane.xlu0 %385  ;;  %668 = vmatpush.bf16.msrb.mxu2 %v659_v47 }
 0x3eb   :  { %v390_v36 = vsub.f32 %v371_v0, %v386_v35 }
 0x3ec   :  { %2838 = vpow2.f32 %v539_v34 }
 0x3ed   :  { %v397_v37 = vmul.f32 1.442695, %v390_v36 }
 0x3ef   :  { %2840 = vpow2.f32 %v397_v37 }
 0x3f0   :  { %2842 = vpow2.f32 %v395_v38 }
 0x3f2   :  { %v2839_v39 = vpop.eup %2838 }
 0x3f3   :  { %v547_v41 = vsel %vm374_vm2, %v2839_v39, 0.0 }
 0x3f4   :  { %548 = vadd.xlane.f32.xlu0 %v547_v41 }
 0x3f5   :  { %v2841_v42 = vpop.eup %2840  ;;  %v552_v55 = vpop.xlane.xlu1 %551 }
 0x3f6   :  { %v408_v43 = vsel %vm374_vm2, %v2841_v42, 0.0  ;;  %v2843_v44 = vpop.eup %2842 }
 0x3f7   :  { %409 = vadd.xlane.f32.xlu1 %v408_v43  ;;  %v405_v45 = vsel %vm374_vm2, %v2843_v44, 0.0 }
 0x3fc   :  { %406 = vadd.xlane.f32.xlu0 %v405_v45 }
 0x410   :  { %576 = vrot.lane.b32.xlu0 %v3264_v9, %s3095_s28  ;;  %682 = vrot.lane.b32.xlu1 %v3264_v9, %s3096_s29 }
 0x43f   :  { %v443_v48 = vpop.f32.mrf.mxu2 }
 0x447   :  { %v445_v49 = vpop.f32.mrf.mxu2 }
 0x448   :  { %v473_v50 = vpack.c.bf16 %v445_v49, %v443_v48 }
 0x44a   :  { %2661 = vmatmul.msk.bf16.vlgmr.msrb.gmra.mxu2 %vm321_vm15, %v473_v50 }
 0x44f   :  { %v518_v51 = vpop.f32.mrf.mxu2 }
 0x450   :  { %v529_v52 = vsel %vm374_vm2, %v518_v51, -inf }
 0x451   :  { %530 = vmax.xlane.f32.xlu0 %v529_v52 }
 0x457   :  { %v520_v53 = vpop.f32.mrf.mxu2 }
 0x458   :  { %v532_v54 = vsel %vm374_vm2, %v520_v53, -inf }
 0x459   :  { %533 = vmax.xlane.f32.xlu2 %v532_v54 }
 0x465   :  { %704 = vrot.lane.b32.xlu0 %v3278_v33, %s3094_s27 }
 0x467   :  { %v549_v56 = vpop.xlane.xlu0 %548 }
 0x46a   :  { %v410_v57 = vpop.xlane.xlu1 %409 }
 0x46b   :  { %2844 = vrcp.f32 %v410_v57 }
 0x46f   :  { %v407_v58 = vpop.xlane.xlu0 %406 }
 0x470   :  { %2846 = vrcp.f32 %v407_v58 }
 0x471   :  { %v2845_v59 = vpop.eup %2844  ;;  %601 = vrot.lane.b32.xlu2 %v3276_v32, %s3095_s28  ;;  %2848 = vrcp.f32 %v549_v56 }
 0x472   :  { %v418_v60 = vmul.f32 %v2845_v59, %v2841_v42  ;;  %2850 = vrcp.f32 %v552_v55 }
 0x474   :  { %v422_v63 = vpack.c.bf16 %v418_v60, %v418_v60 }
 0x476   :  { %v2847_v61 = vpop.eup %2846  ;;  %v451_v2 = vunpack.c.l.b16 %v422_v63 }
 0x477   :  { %v417_v0 = vmul.f32 %v2847_v61, %v2843_v44  ;;  %v2849_v5 = vpop.eup %2848 }
 0x478   :  { %v2851_v6 = vpop.eup %2850  ;;  %v563_v8 = vmul.f32 %v2849_v5, %v2839_v39  ;;  %v294_v39 = vld [vmem:[#allocation2 + $0x4] sm:$0xf] }
 0x479   :  { %v421_v1 = vpack.c.bf16 %v417_v0, %v417_v0  ;;  %862 = vrot.lane.b32.xlu2 %v3264_v9, %s3097_s30  ;;  %v564_v13 = vmul.f32 %v2851_v6, %v3314_v7  ;;  %v631_v41 = vsel %vm629_vm3, %v294_v39, 0 }
 0x47a   :  { %v567_v15 = vpack.c.bf16 %v563_v8, %v563_v8  ;;  %640 = vmatpush.bf16.msra.mxu1 %v631_v41 }
 0x47b   :  { %v450_v3 = vunpack.c.l.b16 %v421_v1  ;;  %v568_v17 = vpack.c.bf16 %v564_v13, %v564_v13 }
 0x47c   :  { %v573_v19 = vunpack.c.l.b16 %v567_v15 }
 0x47d   :  { %v452_v4 = vpack.c.b16 %v451_v2, %v450_v3  ;;  %v574_v20 = vunpack.c.l.b16 %v568_v17 }
 0x47f   :  { %2654 = vmatmul.msk.bf16.vlgmr.msrb.gmra.mxu3 %vm374_vm2, %v452_v4  ;;  %v575_v21 = vpack.c.b16 %v574_v20, %v573_v19 }
 0x482   :  { %v683_v10 = vpop.permute.xlu1 %682  ;;  %v577_v11 = vpop.permute.xlu0 %576 }
 0x483   :  { %v688_v14 = vsel %vm321_vm15, %v683_v10, 0  ;;  %589 = vmatpush.bf16.msra.mxu3 %v577_v11 }
 0x487   :  { %697 = vmatpush.bf16.xpose.msrb.mxu3 %v688_v14 }
 0x48f   :  { %2657 = vmatmul.msk.bf16.vlgmr.msra.gmra.mxu3 %vm374_vm2, %v575_v21 }
 0x49f   :  { %2663 = vmatmul.msk.bf16.vlgmr.msrb.gmra.mxu3 %vm321_vm15, %v681_v22 }
 0x4c4   :  { %v531_v23 = vpop.xlane.xlu0 %530 }
 0x4c5   :  { %v537_v25 = vsub.f32 %v518_v51, %v531_v23 }
 0x4c7   :  { %v543_v26 = vmul.f32 1.442695, %v537_v25 }
 0x4c9   :  { %2852 = vpow2.f32 %v543_v26 }
 0x4cc   :  { %v534_v27 = vpop.xlane.xlu2 %533 }
 0x4cd   :  { %v538_v7 = vsub.f32 %v520_v53, %v534_v27  ;;  %v3369_v19 = vpop.f32.mrf.mxu2 }
 0x4cf   :  { %v2853_v28 = vpop.eup %2852  ;;  %v545_v29 = vmul.f32 1.442695, %v538_v7 }
 0x4d0   :  { %v553_v31 = vsel %vm374_vm2, %v2853_v28, 0.0 }
 0x4d1   :  { %2854 = vpow2.f32 %v545_v29  ;;  %554 = vadd.xlane.f32.xlu1 %v553_v31 }
 0x4d4   :  { %v602_v34 = vpop.permute.xlu2 %601 }
 0x4d5   :  { %614 = vmatpush.bf16.msra.mxu0 %v602_v34  ;;  %v3371_v20 = vpop.f32.mrf.mxu2 }
 0x4d7   :  { %v2855_v35 = vpop.eup %2854  ;;  %v705_v51 = vpop.permute.xlu0 %704 }
 0x4d8   :  { %v556_v36 = vsel %vm374_vm2, %v2855_v35, 0.0 }
 0x4d9   :  { %557 = vadd.xlane.f32.xlu0 %v556_v36 }
 0x4dc   :  { %v863_v37 = vpop.permute.xlu2 %862 }
 0x4dd   :  { %v868_v38 = vsel %vm321_vm15, %v863_v37, 0 }
 0x4de   :  { %877 = vmatpush.bf16.xpose.msra.mxu2 %v868_v38 }
 0x4ea   :  { %706 = vrot.lane.b32.xlu1 %v3276_v32, %s3096_s29 }
 0x4ed   :  { %860 = vrot.lane.b32.xlu0 %v3271_v16, %s3098_s10 }
 0x502   :  { %v468_v42 = vpop.f32.mrf.mxu3 }
 0x50a   :  { %v470_v43 = vpop.f32.mrf.mxu3 }
 0x50b   :  { %v474_v44 = vpack.c.bf16 %v470_v43, %v468_v42 }
 0x50d   :  { %2662 = vmatmul.msk.bf16.gmra.mxu2 %vm321_vm15, %v474_v44 }
 0x512   :  { %v591_v45 = vpop.f32.mrf.mxu3 }
 0x51a   :  { %v593_v46 = vpop.f32.mrf.mxu3 }
 0x51b   :  { %v621_v47 = vpack.c.bf16 %v593_v46, %v591_v45 }
 0x51d   :  { %2659 = vmatmul.msk.bf16.vlgmr.msra.gmra.mxu1 %vm321_vm15, %v621_v47 }
 0x522   :  { %v699_v48 = vpop.f32.mrf.mxu3 }
 0x523   :  { %v728_v49 = vsel %vm374_vm2, %v699_v48, -inf }
 0x524   :  { %729 = vmax.xlane.f32.xlu1 %v728_v49 }
 0x52a   :  { %v701_v50 = vpop.f32.mrf.mxu3 }
 0x52b   :  { %v731_v16 = vsel %vm374_vm2, %v701_v50, -inf }
 0x52c   :  { %732 = vmax.xlane.f32.xlu2 %v731_v16 }
 0x544   :  { %781 = vrot.lane.b32.xlu2 %v3264_v9, %s3099_s11  ;;  %v555_v52 = vpop.xlane.xlu1 %554 }
 0x545   :  { %2856 = vrcp.f32 %v555_v52 }
 0x54b   :  { %v2857_v54 = vpop.eup %2856 }
 0x54c   :  { %v558_v53 = vpop.xlane.xlu0 %557  ;;  %v565_v55 = vmul.f32 %v2857_v54, %v2853_v28 }
 0x54d   :  { %2858 = vrcp.f32 %v558_v53 }
 0x54e   :  { %v569_v57 = vpack.c.bf16 %v565_v55, %v565_v55 }
 0x550   :  { %v598_v60 = vunpack.c.l.b16 %v569_v57 }
 0x553   :  { %v2859_v56 = vpop.eup %2858 }
 0x554   :  { %v566_v58 = vmul.f32 %v2859_v56, %v2855_v35 }
 0x556   :  { %v570_v59 = vpack.c.bf16 %v566_v58, %v566_v58 }
 0x558   :  { %v599_v61 = vunpack.c.l.b16 %v570_v59 }
 0x55a   :  { %v600_v63 = vpack.c.b16 %v599_v61, %v598_v60 }
 0x55c   :  { %v707_v0 = vpop.permute.xlu1 %706  ;;  %2658 = vmatmul.msk.bf16.vlgmr.msra.gmra.mxu0 %vm374_vm2, %v600_v63 }
 0x55d   :  { %v712_v1 = vsel %vm321_vm15, %v707_v0, 0 }
 0x55e   :  { %721 = vmatpush.bf16.xpose.msrb.mxu0 %v712_v1 }
 0x55f   :  { %v861_v2 = vpop.permute.xlu0 %860 }
 0x560   :  { %2669 = vmatmul.msk.bf16.vlgmr.msra.gmra.mxu2 %vm321_vm15, %v861_v2 }
 0x56c   :  { %2664 = vmatmul.msk.bf16.vlgmr.msrb.gmra.mxu0 %vm321_vm15, %v705_v51 }
 0x590   :  { %v3373_v21 = vpop.f32.mrf.mxu2 }
 0x597   :  { %v730_v3 = vpop.xlane.xlu1 %729 }
 0x598   :  { %v740_v4 = vsub.f32 %v699_v48, %v730_v3  ;;  %v3375_v26 = vpop.f32.mrf.mxu2 }
 0x59a   :  { %v744_v5 = vmul.f32 1.442695, %v740_v4 }
 0x59c   :  { %2860 = vpow2.f32 %v744_v5 }
 0x59f   :  { %v733_v6 = vpop.xlane.xlu2 %732 }
 0x5a0   :  { %v741_v8 = vsub.f32 %v701_v50, %v733_v6 }
 0x5a2   :  { %v2861_v10 = vpop.eup %2860  ;;  %v746_v11 = vmul.f32 1.442695, %v741_v8  ;;  %v295_v8 = vld [vmem:[#allocation2 + $0x8] sm:$0xf] }
 0x5a3   :  { %v752_v13 = vsel %vm374_vm2, %v2861_v10, 0.0 }
 0x5a4   :  { %2862 = vpow2.f32 %v746_v11  ;;  %753 = vadd.xlane.f32.xlu0 %v752_v13 }
 0x5a7   :  { %v782_v14 = vpop.permute.xlu2 %781 }
 0x5a8   :  { %794 = vmatpush.bf16.msra.mxu3 %v782_v14 }
 0x5aa   :  { %v2863_v15 = vpop.eup %2862 }
 0x5ab   :  { %v755_v17 = vsel %vm374_vm2, %v2863_v15, 0.0 }
 0x5ac   :  { %756 = vadd.xlane.f32.xlu1 %v755_v17 }
 0x5b8   :  { %886 = vrot.lane.b32.xlu0 %v3276_v32, %s3097_s30 }
 0x5c5   :  { %884 = vrot.lane.b32.xlu1 %v3278_v33, %s3098_s10 }
 0x5d9   :  { %v616_v22 = vpop.f32.mrf.mxu0 }
 0x5e1   :  { %v618_v23 = vpop.f32.mrf.mxu0 }
 0x5e2   :  { %v622_v25 = vpack.c.bf16 %v618_v23, %v616_v22 }
 0x5e3   :  { %v879_v28 = vpop.f32.mrf.mxu2 }
 0x5e4   :  { %2660 = vmatmul.msk.bf16.gmra.mxu1 %vm321_vm15, %v622_v25  ;;  %v908_v33 = vsel %vm374_vm2, %v879_v28, -inf }
 0x5e9   :  { %v723_v27 = vpop.f32.mrf.mxu0 }
 0x5ea   :  { %v734_v7 = vsel %vm374_vm2, %v723_v27, -inf }
 0x5eb   :  { %735 = vmax.xlane.f32.xlu0 %v734_v7  ;;  %v881_v34 = vpop.f32.mrf.mxu2 }
 0x5ec   :  { %v911_v35 = vsel %vm374_vm2, %v881_v34, -inf }
 0x5ef   :  { %909 = vmax.xlane.f32.xlu1 %v908_v33 }
 0x5f1   :  { %v725_v29 = vpop.f32.mrf.mxu0 }
 0x5f2   :  { %v737_v31 = vsel %vm374_vm2, %v725_v29, -inf }
 0x5f3   :  { %738 = vmax.xlane.f32.xlu2 %v737_v31 }
 0x5fb   :  { %912 = vmax.xlane.f32.xlu2 %v911_v35 }
 0x617   :  { %v754_v36 = vpop.xlane.xlu0 %753 }
 0x618   :  { %2864 = vrcp.f32 %v754_v36 }
 0x61e   :  { %v2865_v38 = vpop.eup %2864 }
 0x61f   :  { %v757_v37 = vpop.xlane.xlu1 %756  ;;  %v768_v39 = vmul.f32 %v2865_v38, %v2861_v10  ;;  %v835_v10 = vsel %vm629_vm3, %v295_v8, 0 }
 0x620   :  { %2866 = vrcp.f32 %v757_v37  ;;  %844 = vmatpush.bf16.msrb.mxu1 %v835_v10 }
 0x621   :  { %v772_v42 = vpack.c.bf16 %v768_v39, %v768_v39 }
 0x623   :  { %v778_v46 = vunpack.c.l.b16 %v772_v42 }
 0x626   :  { %v2867_v41 = vpop.eup %2866 }
 0x627   :  { %v769_v43 = vmul.f32 %v2867_v41, %v2863_v15 }
 0x629   :  { %v773_v44 = vpack.c.bf16 %v769_v43, %v769_v43 }
 0x62a   :  { %v887_v45 = vpop.permute.xlu0 %886 }
 0x62b   :  { %v779_v47 = vunpack.c.l.b16 %v773_v44  ;;  %v892_v48 = vsel %vm321_vm15, %v887_v45, 0 }
 0x62c   :  { %901 = vmatpush.bf16.xpose.msrb.mxu3 %v892_v48 }
 0x62d   :  { %v780_v49 = vpack.c.b16 %v779_v47, %v778_v46 }
 0x62f   :  { %2665 = vmatmul.msk.bf16.vlgmr.msra.gmra.mxu3 %vm374_vm2, %v780_v49 }
 0x637   :  { %v885_v50 = vpop.permute.xlu1 %884 }
 0x63f   :  { %2670 = vmatmul.msk.bf16.vlgmr.msrb.gmra.mxu3 %vm321_vm15, %v885_v50 }
 0x65e   :  { %v736_v16 = vpop.xlane.xlu0 %735 }
 0x65f   :  { %v742_v51 = vsub.f32 %v723_v27, %v736_v16 }
 0x661   :  { %v748_v52 = vmul.f32 1.442695, %v742_v51 }
 0x662   :  { %v910_v53 = vpop.xlane.xlu1 %909 }
 0x663   :  { %2868 = vpow2.f32 %v748_v52  ;;  %v920_v54 = vsub.f32 %v879_v28, %v910_v53 }
 0x665   :  { %v924_v55 = vmul.f32 1.442695, %v920_v54 }
 0x666   :  { %v739_v56 = vpop.xlane.xlu2 %738 }
 0x667   :  { %2870 = vpow2.f32 %v924_v55  ;;  %v743_v57 = vsub.f32 %v725_v29, %v739_v56 }
 0x669   :  { %v2869_v58 = vpop.eup %2868  ;;  %v750_v59 = vmul.f32 1.442695, %v743_v57 }
 0x66a   :  { %v758_v60 = vsel %vm374_vm2, %v2869_v58, 0.0 }
 0x66b   :  { %2872 = vpow2.f32 %v750_v59  ;;  %759 = vadd.xlane.f32.xlu0 %v758_v60  ;;  %v296_v60 = vld [vmem:[#allocation2 + $0xc] sm:$0xf] }
 0x66d   :  { %v2871_v61 = vpop.eup %2870 }
 0x66e   :  { %v913_v63 = vpop.xlane.xlu2 %912  ;;  %v932_v0 = vsel %vm374_vm2, %v2871_v61, 0.0 }
 0x66f   :  { %v921_v1 = vsub.f32 %v881_v34, %v913_v63  ;;  %933 = vadd.xlane.f32.xlu1 %v932_v0 }
 0x671   :  { %v2873_v2 = vpop.eup %2872  ;;  %v926_v3 = vmul.f32 1.442695, %v921_v1 }
 0x672   :  { %v761_v4 = vsel %vm374_vm2, %v2873_v2, 0.0 }
 0x673   :  { %2874 = vpow2.f32 %v926_v3  ;;  %762 = vadd.xlane.f32.xlu2 %v761_v4 }
 0x679   :  { %v2875_v5 = vpop.eup %2874 }
 0x67a   :  { %v935_v6 = vsel %vm374_vm2, %v2875_v5, 0.0 }
 0x67b   :  { %936 = vadd.xlane.f32.xlu2 %v935_v6 }
 0x67f   :  { %806 = vrot.lane.b32.xlu0 %v3276_v32, %s3099_s11 }
 0x688   :  { %961 = vrot.lane.b32.xlu1 %v3264_v9, %s3100_s12 }
 0x690   :  { %986 = vrot.lane.b32.xlu1 %v3276_v32, %s3100_s12 }
 0x6b2   :  { %v796_v11 = vpop.f32.mrf.mxu3 }
 0x6ba   :  { %v798_v13 = vpop.f32.mrf.mxu3 }
 0x6bb   :  { %v826_v14 = vpack.c.bf16 %v798_v13, %v796_v11 }
 0x6bd   :  { %2667 = vmatmul.msk.bf16.vlgmr.msrb.gmra.mxu1 %vm321_vm15, %v826_v14 }
 0x6c2   :  { %v903_v15 = vpop.f32.mrf.mxu3 }
 0x6c3   :  { %v914_v17 = vsel %vm374_vm2, %v903_v15, -inf }
 0x6c4   :  { %915 = vmax.xlane.f32.xlu2 %v914_v17 }
 0x6ca   :  { %v905_v22 = vpop.f32.mrf.mxu3 }
 0x6cb   :  { %v917_v23 = vsel %vm374_vm2, %v905_v22, -inf }
 0x6cc   :  { %918 = vmax.xlane.f32.xlu0 %v917_v23  ;;  %v642_v23 = vpop.f32.mrf.mxu1 }
 0x6de   :  { %v760_v9 = vpop.xlane.xlu0 %759 }
 0x6df   :  { %2876 = vrcp.f32 %v760_v9  ;;  %v644_v9 = vpop.f32.mrf.mxu1 }
 0x6e2   :  { %v934_v33 = vpop.xlane.xlu1 %933 }
 0x6e5   :  { %v2877_v25 = vpop.eup %2876 }
 0x6e6   :  { %v763_v32 = vpop.xlane.xlu2 %762  ;;  %v770_v27 = vmul.f32 %v2877_v25, %v2869_v58 }
 0x6e7   :  { %2878 = vrcp.f32 %v763_v32  ;;  %v3409_v32 = vpop.f32.mrf.mxu1 }
 0x6e8   :  { %v774_v28 = vpack.c.bf16 %v770_v27, %v770_v27 }
 0x6ea   :  { %v803_v36 = vunpack.c.l.b16 %v774_v28 }
 0x6ed   :  { %v2879_v7 = vpop.eup %2878 }
 0x6ee   :  { %v771_v29 = vmul.f32 %v2879_v7, %v2873_v2  ;;  %v937_v31 = vpop.xlane.xlu2 %936  ;;  %v671_v7 = vadd.f32 %v3369_v19, %v642_v23 }
 0x6ef   :  { %2880 = vrcp.f32 %v937_v31  ;;  %v3411_v25 = vpop.f32.mrf.mxu1 }
 0x6f0   :  { %v775_v34 = vpack.c.bf16 %v771_v29, %v771_v29  ;;  %2882 = vrcp.f32 %v934_v33 }
 0x6f1   :  { %v807_v35 = vpop.permute.xlu0 %806 }
 0x6f2   :  { %v804_v37 = vunpack.c.l.b16 %v775_v34  ;;  %819 = vmatpush.bf16.msra.mxu0 %v807_v35 }
 0x6f4   :  { %v805_v38 = vpack.c.b16 %v804_v37, %v803_v36  ;;  %v673_v36 = vadd.f32 %v3371_v20, %v644_v9 }
 0x6f5   :  { %v2881_v39 = vpop.eup %2880 }
 0x6f6   :  { %2666 = vmatmul.msk.bf16.vlgmr.msra.gmra.mxu0 %vm374_vm2, %v805_v38  ;;  %v2883_v41 = vpop.eup %2882  ;;  %v949_v42 = vmul.f32 %v2881_v39, %v2875_v5 }
 0x6f7   :  { %v948_v43 = vmul.f32 %v2883_v41, %v2871_v61  ;;  %v1015_v61 = vsel %vm629_vm3, %v296_v60, 0 }
 0x6f8   :  { %v953_v45 = vpack.c.bf16 %v949_v42, %v949_v42  ;;  %1024 = vmatpush.bf16.msra.mxu3 %v1015_v61 }
 0x6f9   :  { %v952_v46 = vpack.c.bf16 %v948_v43, %v948_v43 }
 0x6fa   :  { %v962_v44 = vpop.permute.xlu1 %961  ;;  %v959_v47 = vunpack.c.l.b16 %v953_v45 }
 0x6fb   :  { %974 = vmatpush.bf16.msrb.mxu0 %v962_v44  ;;  %v958_v48 = vunpack.c.l.b16 %v952_v46 }
 0x6fd   :  { %v960_v50 = vpack.c.b16 %v959_v47, %v958_v48 }
 0x702   :  { %v987_v49 = vpop.permute.xlu1 %986 }
 0x703   :  { %999 = vmatpush.bf16.msrb.mxu2 %v987_v49 }
 0x706   :  { %2671 = vmatmul.msk.bf16.vlgmr.msrb.gmra.mxu0 %vm374_vm2, %v960_v50 }
 0x737   :  { %v916_v16 = vpop.xlane.xlu2 %915 }
 0x738   :  { %v922_v51 = vsub.f32 %v903_v15, %v916_v16 }
 0x73a   :  { %v928_v52 = vmul.f32 1.442695, %v922_v51  ;;  %v846_v27 = vpop.f32.mrf.mxu1 }
 0x73b   :  { %v856_v28 = vadd.f32 %v846_v27, %v671_v7 }
 0x73c   :  { %2884 = vpow2.f32 %v928_v52 }
 0x73f   :  { %v919_v53 = vpop.xlane.xlu0 %918 }
 0x740   :  { %v923_v54 = vsub.f32 %v905_v22, %v919_v53 }
 0x742   :  { %v2885_v55 = vpop.eup %2884  ;;  %v930_v56 = vmul.f32 1.442695, %v923_v54  ;;  %v848_v35 = vpop.f32.mrf.mxu1 }
 0x743   :  { %v938_v57 = vsel %vm374_vm2, %v2885_v55, 0.0  ;;  %v857_v38 = vadd.f32 %v848_v35, %v673_v36 }
 0x744   :  { %2886 = vpow2.f32 %v930_v56  ;;  %939 = vadd.xlane.f32.xlu2 %v938_v57  ;;  %v2785_v56 = vld [vmem:[#allocation5 + $0x8] sm:$0xff]  ;;  %v2784_v57 = vld [vmem:[#allocation5] sm:$0xff] }
 0x745   :  { %1189 = vmatpush.bf16.msra.mxu0 %v2785_v56 }
 0x749   :  { %1190 = vmatpush.bf16.msra.mxu0 %v2784_v57 }
 0x74a   :  { %v2887_v58 = vpop.eup %2886 }
 0x74b   :  { %v941_v59 = vsel %vm374_vm2, %v2887_v58, 0.0 }
 0x74c   :  { %942 = vadd.xlane.f32.xlu2 %v941_v59 }
 0x764   :  { %1045 = vrot.lane.b32.xlu2 %v3260_v62, %s3101_s13 }
 0x773   :  { %v821_v63 = vpop.f32.mrf.mxu0 }
 0x77b   :  { %v823_v0 = vpop.f32.mrf.mxu0 }
 0x77c   :  { %v827_v1 = vpack.c.bf16 %v823_v0, %v821_v63 }
 0x77e   :  { %2668 = vmatmul.msk.bf16.gmra.mxu1 %vm321_vm15, %v827_v1 }
 0x783   :  { %v976_v2 = vpop.f32.mrf.mxu0 }
 0x78b   :  { %v978_v3 = vpop.f32.mrf.mxu0 }
 0x78c   :  { %v1006_v4 = vpack.c.bf16 %v978_v3, %v976_v2 }
 0x78e   :  { %2673 = vmatmul.msk.bf16.vlgmr.msra.gmra.mxu3 %vm321_vm15, %v1006_v4 }
 0x7b7   :  { %v940_v5 = vpop.xlane.xlu2 %939 }
 0x7b8   :  { %2888 = vrcp.f32 %v940_v5 }
 0x7be   :  { %v2889_v8 = vpop.eup %2888 }
 0x7bf   :  { %v943_v6 = vpop.xlane.xlu2 %942  ;;  %v950_v62 = vmul.f32 %v2889_v8, %v2885_v55 }
 0x7c0   :  { %2890 = vrcp.f32 %v943_v6 }
 0x7c1   :  { %v954_v11 = vpack.c.bf16 %v950_v62, %v950_v62 }
 0x7c3   :  { %v983_v15 = vunpack.c.l.b16 %v954_v11 }
 0x7c6   :  { %v2891_v10 = vpop.eup %2890 }
 0x7c7   :  { %v951_v13 = vmul.f32 %v2891_v10, %v2887_v58  ;;  %v3414_v31 = vpop.permute.xlu2 %1045 }
 0x7c9   :  { %v955_v14 = vpack.c.bf16 %v951_v13, %v951_v13 }
 0x7cb   :  { %v984_v17 = vunpack.c.l.b16 %v955_v14 }
 0x7cd   :  { %v985_v22 = vpack.c.b16 %v984_v17, %v983_v15  ;;  %v3444_v17 = vld [vmem:[%s3868_s7] sm:$0xff] }
 0x7cf   :  { %2672 = vmatmul.msk.bf16.vlgmr.msrb.gmra.mxu2 %vm374_vm2, %v985_v22  ;;  %v3447_v22 = vperm.slane %v3444_v17, 5 }
 0x811   :  { %v1026_v33 = vpop.f32.mrf.mxu3 }
 0x812   :  { %v1036_v29 = vadd.f32 %v1026_v33, %v856_v28 }
 0x814   :  { %v1040_v34 = vadd.f32 %v1036_v29, %v3193_v12  ;;  %v3452_v29 = vperm.slane %v3444_v17, 6 }
 0x816   :  { %v3419_v37 = vadd.f32 %v3414_v31, %v1040_v34 }
 0x818   :  { %v1052_v39 = vsel %vm135_vm1, %v3419_v37, 0.0  ;;  %v1068_v19 = vmul.f32 %v3419_v37, %v3419_v37 }
 0x819   :  { %v1028_v41 = vpop.f32.mrf.mxu3  ;;  %1053 = vadd.xlane.f32.xlu1 %v1052_v39  ;;  %v851_v39 = vpop.f32.mrf.mxu1 }
 0x81a   :  { %v1037_v42 = vadd.f32 %v1028_v41, %v857_v38  ;;  %v1072_v43 = vsel %vm135_vm1, %v1068_v19, 0.0  ;;  %v676_v19 = vadd.f32 %v3373_v21, %v3409_v32 }
 0x81b   :  { %1073 = vadd.xlane.f32.xlu2 %v1072_v43 }
 0x81c   :  { %v1041_v12 = vadd.f32 %v1037_v42, %v3203_v18  ;;  %v858_v41 = vadd.f32 %v851_v39, %v676_v19 }
 0x81e   :  { %v3428_v20 = vadd.f32 %v3414_v31, %v1041_v12 }
 0x820   :  { %v1055_v44 = vsel %vm135_vm1, %v3428_v20, 0.0  ;;  %v1069_v45 = vmul.f32 %v3428_v20, %v3428_v20 }
 0x821   :  { %1056 = vadd.xlane.f32.xlu0 %v1055_v44  ;;  %v853_v44 = vpop.f32.mrf.mxu1 }
 0x822   :  { %v1075_v46 = vsel %vm135_vm1, %v1069_v45, 0.0  ;;  %v678_v45 = vadd.f32 %v3375_v26, %v3411_v25 }
 0x829   :  { %1076 = vadd.xlane.f32.xlu0 %v1075_v46 }
 0x852   :  { %v1001_v47 = vpop.f32.mrf.mxu2 }
 0x85a   :  { %v1003_v48 = vpop.f32.mrf.mxu2 }
 0x85b   :  { %v1007_v49 = vpack.c.bf16 %v1003_v48, %v1001_v47  ;;  %v859_v47 = vadd.f32 %v853_v44, %v678_v45 }
 0x85d   :  { %2674 = vmatmul.msk.bf16.gmra.mxu3 %vm321_vm15, %v1007_v49 }
 0x88c   :  { %v1054_v50 = vpop.xlane.xlu1 %1053 }
 0x88d   :  { %v1064_v18 = vmul.f32 %v1054_v50, %v3230_v40 }
 0x88e   :  { %v1074_v16 = vpop.xlane.xlu2 %1073 }
 0x88f   :  { %v1088_v51 = vmul.f32 %v1064_v18, %v1064_v18  ;;  %v1084_v52 = vmul.f32 %v1074_v16, %v3230_v40  ;;  %v1096_v14 = vsub.f32 %v3419_v37, %v1064_v18 }
 0x891   :  { %v1092_v53 = vsub.f32 %v1084_v52, %v1088_v51  ;;  %v2787_v51 = vld [vmem:[%s3867_s6 + $0x8] sm:$0xff]  ;;  %v3490_v52 = vperm.slane %v3444_v17, 1 }
 0x893   :  { %v1100_v54 = vadd.f32 1e-06, %v1092_v53  ;;  %v2786_v53 = vld [vmem:[%s3867_s6] sm:$0xff] }
 0x894   :  { %v1057_v55 = vpop.xlane.xlu0 %1056 }
 0x895   :  { %2892 = vrsqrt.f32 %v1100_v54  ;;  %v1065_v58 = vmul.f32 %v1057_v55, %v3230_v40  ;;  %vm1110_vm5 = vweird.f32 %v1100_v54 }
 0x897   :  { %v1089_v63 = vmul.f32 %v1065_v58, %v1065_v58  ;;  %v1097_v27 = vsub.f32 %v3428_v20, %v1065_v58 }
 0x89b   :  { %v2893_v59 = vpop.eup %2892 }
 0x89c   :  { %v1105_v60 = vmul.f32 %v2893_v59, %v1100_v54  ;;  %v1077_v61 = vpop.xlane.xlu0 %1076  ;;  %vm1111_vm4 = vweird.f32 %v2893_v59 }
 0x89d   :  { %v1085_v0 = vmul.f32 %v1077_v61, %v3230_v40  ;;  %vm1112_vm6 = vmor %vm1110_vm5, %vm1111_vm4 }
 0x89e   :  { %v1106_v1 = vmul.f32 %v2893_v59, %v1105_v60 }
 0x89f   :  { %v1093_v2 = vsub.f32 %v1085_v0, %v1089_v63 }
 0x8a0   :  { %v1107_v4 = vmul.f32 0.5, %v1106_v1 }
 0x8a1   :  { %v1101_v3 = vadd.f32 1e-06, %v1093_v2 }
 0x8a2   :  { %v1108_v5 = vsub.f32 1.5, %v1107_v4 }
 0x8a3   :  { %2894 = vrsqrt.f32 %v1101_v3  ;;  %vm1120_vm8 = vweird.f32 %v1101_v3 }
 0x8a4   :  { %v1109_v8 = vmul.f32 %v2893_v59, %v1108_v5 }
 0x8a6   :  { %v1113_v11 = vsel %vm1112_vm6, %v2893_v59, %v1109_v8 }
 0x8a7   :  { %v1144_v23 = vmul.f32 %v1113_v11, %v1096_v14 }
 0x8a9   :  { %v2895_v6 = vpop.eup %2894  ;;  %v1149_v28 = vmul.f32 %v3447_v22, %v1144_v23 }
 0x8aa   :  { %v1115_v62 = vmul.f32 %v2895_v6, %v1101_v3  ;;  %vm1121_vm7 = vweird.f32 %v2895_v6 }
 0x8ab   :  { %vm1122_vm9 = vmor %vm1120_vm8, %vm1121_vm7  ;;  %v1154_v35 = vadd.f32 %v3452_v29, %v1149_v28 }
 0x8ac   :  { %v1116_v10 = vmul.f32 %v2895_v6, %v1115_v62 }
 0x8ae   :  { %v1117_v13 = vmul.f32 0.5, %v1116_v10 }
 0x8b0   :  { %v1118_v15 = vsub.f32 1.5, %v1117_v13 }
 0x8b2   :  { %v1119_v9 = vmul.f32 %v2895_v6, %v1118_v15 }
 0x8b4   :  { %v1123_v7 = vsel %vm1122_vm9, %v2895_v6, %v1119_v9 }
 0x8b5   :  { %v1145_v33 = vmul.f32 %v1123_v7, %v1097_v27 }
 0x8b7   :  { %v1150_v34 = vmul.f32 %v3447_v22, %v1145_v33 }
 0x8b9   :  { %v1155_v36 = vadd.f32 %v3452_v29, %v1150_v34 }
 0x8bb   :  { %v1158_v38 = vpack.c.bf16 %v1155_v36, %v1154_v35 }
 0x8bd   :  { %2683 = vmatmul.msk.bf16.vlgmr.msra.gmra.mxu0 %vm135_vm1, %v1158_v38 }
 0x8e0   :  { %v1031_v42 = vpop.f32.mrf.mxu3 }
 0x8e1   :  { %v1038_v43 = vadd.f32 %v1031_v42, %v858_v41 }
 0x8e3   :  { %v1042_v12 = vadd.f32 %v1038_v43, %v3213_v24 }
 0x8e5   :  { %v3464_v46 = vadd.f32 %v3414_v31, %v1042_v12 }
 0x8e7   :  { %v1058_v48 = vsel %vm135_vm1, %v3464_v46, 0.0  ;;  %v1070_v32 = vmul.f32 %v3464_v46, %v3464_v46 }
 0x8e8   :  { %v1033_v49 = vpop.f32.mrf.mxu3  ;;  %1059 = vadd.xlane.f32.xlu0 %v1058_v48 }
 0x8e9   :  { %v1039_v50 = vadd.f32 %v1033_v49, %v859_v47  ;;  %v1078_v26 = vsel %vm135_vm1, %v1070_v32, 0.0 }
 0x8eb   :  { %v1043_v21 = vadd.f32 %v1039_v50, %v3223_v30  ;;  %v2789_v30 = vld [vmem:[%s3867_s6 + $0x18] sm:$0xff] }
 0x8ec   :  { %1283 = vmatpush.bf16.msra.mxu1 %v2789_v30 }
 0x8ed   :  { %v3472_v24 = vadd.f32 %v3414_v31, %v1043_v21  ;;  %v2788_v31 = vld [vmem:[%s3867_s6 + $0x10] sm:$0xff] }
 0x8ef   :  { %v1061_v25 = vsel %vm135_vm1, %v3472_v24, 0.0  ;;  %v1071_v18 = vmul.f32 %v3472_v24, %v3472_v24 }
 0x8f0   :  { %1079 = vadd.xlane.f32.xlu0 %v1078_v26  ;;  %1062 = vadd.xlane.f32.xlu1 %v1061_v25 }
 0x8f1   :  { %v1081_v16 = vsel %vm135_vm1, %v1071_v18, 0.0  ;;  %1284 = vmatpush.bf16.msra.mxu1 %v2788_v31 }
 0x8f5   :  { %1285 = vmatpush.bf16.msra.mxu1 %v2787_v51 }
 0x8f8   :  { %1082 = vadd.xlane.f32.xlu1 %v1081_v16 }
 0x8f9   :  { %1286 = vmatpush.bf16.msra.mxu1 %v2786_v53 }
 0x93a   :  { %v1192_v54 = vpop.f32.mrf.mxu0 }
 0x93b   :  { %v1193_v55 = vadd.f32 %v1192_v54, %v3490_v52 }
 0x93d   :  { %v1202_v56 = vmul.f32 %v1193_v55, %v1193_v55 }
 0x93f   :  { %v1206_v57 = vmul.f32 %v1202_v56, %v1193_v55 }
 0x941   :  { %v1210_v58 = vmul.f32 0.044715, %v1206_v57 }
 0x942   :  { %v1194_v59 = vpop.f32.mrf.mxu0 }
 0x943   :  { %v1214_v60 = vadd.f32 %v1210_v58, %v1193_v55  ;;  %v1195_v61 = vadd.f32 %v1194_v59, %v3490_v52  ;;  %v3510_v59 = vperm.slane %v3444_v17, 2 }
 0x945   :  { %v1218_v63 = vmul.f32 0.7978846, %v1214_v60  ;;  %v1203_v0 = vmul.f32 %v1195_v61, %v1195_v61 }
 0x947   :  { %v1207_v1 = vmul.f32 %v1203_v0, %v1195_v61  ;;  %2896 = vtanh.f32 %v1218_v63 }
 0x949   :  { %v1211_v2 = vmul.f32 0.044715, %v1207_v1 }
 0x94b   :  { %v1215_v3 = vadd.f32 %v1211_v2, %v1195_v61 }
 0x94d   :  { %v1219_v4 = vmul.f32 0.7978846, %v1215_v3  ;;  %v2897_v5 = vpop.eup %2896 }
 0x94e   :  { %v1226_v6 = vadd.f32 1.0, %v2897_v5 }
 0x94f   :  { %2898 = vtanh.f32 %v1219_v4 }
 0x950   :  { %v1230_v62 = vmul.f32 0.5, %v1226_v6 }
 0x952   :  { %v1234_v13 = vmul.f32 %v1230_v62, %v1193_v55 }
 0x955   :  { %v2899_v8 = vpop.eup %2898 }
 0x956   :  { %v1227_v10 = vadd.f32 1.0, %v2899_v8 }
 0x958   :  { %v1231_v11 = vmul.f32 0.5, %v1227_v10 }
 0x95a   :  { %v1235_v14 = vmul.f32 %v1231_v11, %v1195_v61 }
 0x95b   :  { %v1060_v15 = vpop.xlane.xlu0 %1059 }
 0x95c   :  { %v1238_v23 = vpack.c.bf16 %v1235_v14, %v1234_v13  ;;  %v1066_v9 = vmul.f32 %v1060_v15, %v3230_v40 }
 0x95e   :  { %2701 = vmatmul.msk.bf16.vlgmr.msra.gmra.mxu1 %vm108_vm0, %v1238_v23  ;;  %v1090_v28 = vmul.f32 %v1066_v9, %v1066_v9  ;;  %v1098_v25 = vsub.f32 %v3464_v46, %v1066_v9 }
 0x963   :  { %v1080_v27 = vpop.xlane.xlu0 %1079  ;;  %v1063_v7 = vpop.xlane.xlu1 %1062 }
 0x964   :  { %v1086_v33 = vmul.f32 %v1080_v27, %v3230_v40  ;;  %v1067_v36 = vmul.f32 %v1063_v7, %v3230_v40 }
 0x966   :  { %v1094_v34 = vsub.f32 %v1086_v33, %v1090_v28  ;;  %v1091_v39 = vmul.f32 %v1067_v36, %v1067_v36  ;;  %v1099_v31 = vsub.f32 %v3472_v24, %v1067_v36 }
 0x968   :  { %v1102_v35 = vadd.f32 1e-06, %v1094_v34 }
 0x96a   :  { %2900 = vrsqrt.f32 %v1102_v35  ;;  %vm1130_vm11 = vweird.f32 %v1102_v35 }
 0x96b   :  { %v1083_v38 = vpop.xlane.xlu1 %1082 }
 0x96c   :  { %v1087_v19 = vmul.f32 %v1083_v38, %v3230_v40 }
 0x96e   :  { %v1095_v41 = vsub.f32 %v1087_v19, %v1091_v39 }
 0x970   :  { %v2901_v42 = vpop.eup %2900  ;;  %v1103_v43 = vadd.f32 1e-06, %v1095_v41 }
 0x971   :  { %v1125_v12 = vmul.f32 %v2901_v42, %v1102_v35  ;;  %vm1131_vm10 = vweird.f32 %v2901_v42 }
 0x972   :  { %2902 = vrsqrt.f32 %v1103_v43  ;;  %vm1132_vm12 = vmor %vm1130_vm11, %vm1131_vm10  ;;  %vm1140_vm14 = vweird.f32 %v1103_v43 }
 0x973   :  { %v1126_v44 = vmul.f32 %v2901_v42, %v1125_v12  ;;  %v2790_v12 = vld [vmem:[%s3864_s3 + $0x10] sm:$0xff] }
 0x975   :  { %v1127_v45 = vmul.f32 0.5, %v1126_v44 }
 0x977   :  { %v1128_v47 = vsub.f32 1.5, %v1127_v45 }
 0x978   :  { %v2903_v48 = vpop.eup %2902 }
 0x979   :  { %v1129_v49 = vmul.f32 %v2901_v42, %v1128_v47  ;;  %v1135_v50 = vmul.f32 %v2903_v48, %v1103_v43  ;;  %vm1141_vm13 = vweird.f32 %v2903_v48 }
 0x97a   :  { %vm1142_vm4 = vmor %vm1140_vm14, %vm1141_vm13 }
 0x97b   :  { %v1136_v21 = vmul.f32 %v2903_v48, %v1135_v50  ;;  %v1133_v32 = vsel %vm1132_vm12, %v2901_v42, %v1129_v49  ;;  %v2791_v42 = vld [vmem:[%s3864_s3 + $0x18] sm:$0xff] }
 0x97c   :  { %v1146_v16 = vmul.f32 %v1133_v32, %v1098_v25  ;;  %1442 = vmatpush.bf16.msra.mxu2 %v2791_v42 }
 0x97d   :  { %v1137_v26 = vmul.f32 0.5, %v1136_v21 }
 0x97e   :  { %v1151_v54 = vmul.f32 %v3447_v22, %v1146_v16 }
 0x97f   :  { %v1138_v18 = vsub.f32 1.5, %v1137_v26 }
 0x980   :  { %v1156_v56 = vadd.f32 %v3452_v29, %v1151_v54  ;;  %1443 = vmatpush.bf16.msra.mxu2 %v2790_v12 }
 0x981   :  { %v1139_v30 = vmul.f32 %v2903_v48, %v1138_v18 }
 0x983   :  { %v1143_v51 = vsel %vm1142_vm4, %v2903_v48, %v1139_v30 }
 0x984   :  { %v1147_v53 = vmul.f32 %v1143_v51, %v1099_v31 }
 0x986   :  { %v1152_v55 = vmul.f32 %v3447_v22, %v1147_v53 }
 0x988   :  { %v1157_v57 = vadd.f32 %v3452_v29, %v1152_v55 }
 0x98a   :  { %v1159_v58 = vpack.c.bf16 %v1157_v57, %v1156_v56  ;;  %v2703_v57 = vld [vmem:[%s3868_s7 + $0x8] sm:$0xff] }
 0x98c   :  { %2684 = vmatmul.msk.bf16.gmra.mxu0 %vm135_vm1, %v1159_v58 }
 0x9db   :  { %v1288_v60 = vpop.f32.mrf.mxu1 }
 0x9dc   :  { %v1289_v61 = vadd.f32 %v1288_v60, %v3510_v59 }
 0x9de   :  { %v3514_v63 = vadd.f32 %v1289_v61, %v3419_v37 }
 0x9e0   :  { %v1304_v0 = vsel %vm135_vm1, %v3514_v63, 0.0  ;;  %v1320_v29 = vmul.f32 %v3514_v63, %v3514_v63 }
 0x9e1   :  { %1305 = vadd.xlane.f32.xlu0 %v1304_v0 }
 0x9e2   :  { %v1324_v3 = vsel %vm135_vm1, %v1320_v29, 0.0 }
 0x9e3   :  { %v1290_v22 = vpop.f32.mrf.mxu1 }
 0x9e4   :  { %v1291_v1 = vadd.f32 %v1290_v22, %v3510_v59 }
 0x9e6   :  { %v3522_v2 = vadd.f32 %v1291_v1, %v3428_v20  ;;  %v3547_v1 = vperm.slane %v2703_v57, 3 }
 0x9e8   :  { %v1307_v17 = vsel %vm135_vm1, %v3522_v2, 0.0  ;;  %v1321_v37 = vmul.f32 %v3522_v2, %v3522_v2 }
 0x9e9   :  { %1308 = vadd.xlane.f32.xlu1 %v1307_v17  ;;  %1325 = vadd.xlane.f32.xlu0 %v1324_v3 }
 0x9ea   :  { %v1327_v4 = vsel %vm135_vm1, %v1321_v37, 0.0 }
 0x9eb   :  { %1328 = vadd.xlane.f32.xlu2 %v1327_v4 }
 0xa09   :  { %v1197_v5 = vpop.f32.mrf.mxu0 }
 0xa0a   :  { %v1198_v6 = vadd.f32 %v1197_v5, %v3490_v52 }
 0xa0c   :  { %v1204_v8 = vmul.f32 %v1198_v6, %v1198_v6 }
 0xa0e   :  { %v1208_v62 = vmul.f32 %v1204_v8, %v1198_v6  ;;  %v3551_v8 = vperm.slane %v2703_v57, 4 }
 0xa10   :  { %v1212_v20 = vmul.f32 0.044715, %v1208_v62 }
 0xa11   :  { %v1199_v10 = vpop.f32.mrf.mxu0 }
 0xa12   :  { %v1216_v11 = vadd.f32 %v1212_v20, %v1198_v6  ;;  %v1200_v13 = vadd.f32 %v1199_v10, %v3490_v52 }
 0xa14   :  { %v1220_v14 = vmul.f32 0.7978846, %v1216_v11  ;;  %v1205_v15 = vmul.f32 %v1200_v13, %v1200_v13 }
 0xa16   :  { %v1209_v23 = vmul.f32 %v1205_v15, %v1200_v13  ;;  %2904 = vtanh.f32 %v1220_v14 }
 0xa18   :  { %v1213_v9 = vmul.f32 0.044715, %v1209_v23 }
 0xa1a   :  { %v1217_v27 = vadd.f32 %v1213_v9, %v1200_v13 }
 0xa1c   :  { %v1221_v7 = vmul.f32 0.7978846, %v1217_v27  ;;  %v2905_v28 = vpop.eup %2904 }
 0xa1d   :  { %v1228_v33 = vadd.f32 1.0, %v2905_v28 }
 0xa1e   :  { %2906 = vtanh.f32 %v1221_v7 }
 0xa1f   :  { %v1232_v36 = vmul.f32 0.5, %v1228_v33 }
 0xa21   :  { %v1236_v39 = vmul.f32 %v1232_v36, %v1198_v6  ;;  %v3575_v36 = vperm.slane %v2703_v57, 0 }
 0xa24   :  { %v2907_v34 = vpop.eup %2906 }
 0xa25   :  { %v1229_v35 = vadd.f32 1.0, %v2907_v34 }
 0xa27   :  { %v1233_v38 = vmul.f32 0.5, %v1229_v35 }
 0xa29   :  { %v1237_v19 = vmul.f32 %v1233_v38, %v1200_v13 }
 0xa2b   :  { %v1239_v41 = vpack.c.bf16 %v1237_v19, %v1236_v39 }
 0xa2d   :  { %2702 = vmatmul.msk.bf16.gmra.mxu1 %vm108_vm0, %v1239_v41 }
 0xa54   :  { %v1306_v52 = vpop.xlane.xlu0 %1305 }
 0xa55   :  { %v1316_v43 = vmul.f32 %v1306_v52, %v3230_v40 }
 0xa57   :  { %v1340_v47 = vmul.f32 %v1316_v43, %v1316_v43  ;;  %v1348_v22 = vsub.f32 %v3514_v63, %v1316_v43 }
 0xa5c   :  { %v1326_v44 = vpop.xlane.xlu0 %1325  ;;  %v1309_v45 = vpop.xlane.xlu1 %1308 }
 0xa5d   :  { %v1336_v48 = vmul.f32 %v1326_v44, %v3230_v40  ;;  %v1317_v49 = vmul.f32 %v1309_v45, %v3230_v40 }
 0xa5e   :  { %v1329_v50 = vpop.xlane.xlu2 %1328 }
 0xa5f   :  { %v1344_v21 = vsub.f32 %v1336_v48, %v1340_v47  ;;  %v1341_v32 = vmul.f32 %v1317_v49, %v1317_v49  ;;  %v1337_v26 = vmul.f32 %v1329_v50, %v3230_v40  ;;  %v1349_v37 = vsub.f32 %v3522_v2, %v1317_v49 }
 0xa61   :  { %v1352_v25 = vadd.f32 1e-06, %v1344_v21  ;;  %v1345_v18 = vsub.f32 %v1337_v26, %v1341_v32 }
 0xa63   :  { %2908 = vrsqrt.f32 %v1352_v25  ;;  %v1353_v16 = vadd.f32 1e-06, %v1345_v18  ;;  %vm1362_vm6 = vweird.f32 %v1352_v25 }
 0xa65   :  { %2910 = vrsqrt.f32 %v1353_v16  ;;  %vm1372_vm9 = vweird.f32 %v1353_v16 }
 0xa69   :  { %v2909_v30 = vpop.eup %2908 }
 0xa6a   :  { %v1357_v31 = vmul.f32 %v2909_v30, %v1352_v25  ;;  %vm1363_vm5 = vweird.f32 %v2909_v30 }
 0xa6b   :  { %v2911_v51 = vpop.eup %2910  ;;  %vm1364_vm8 = vmor %vm1362_vm6, %vm1363_vm5 }
 0xa6c   :  { %v1358_v53 = vmul.f32 %v2909_v30, %v1357_v31  ;;  %v1367_v54 = vmul.f32 %v2911_v51, %v1353_v16  ;;  %vm1373_vm7 = vweird.f32 %v2911_v51 }
 0xa6d   :  { %vm1374_vm10 = vmor %vm1372_vm9, %vm1373_vm7 }
 0xa6e   :  { %v1359_v55 = vmul.f32 0.5, %v1358_v53  ;;  %v1368_v56 = vmul.f32 %v2911_v51, %v1367_v54 }
 0xa70   :  { %v1360_v58 = vsub.f32 1.5, %v1359_v55  ;;  %v1369_v60 = vmul.f32 0.5, %v1368_v56 }
 0xa72   :  { %v1361_v61 = vmul.f32 %v2909_v30, %v1360_v58  ;;  %v1370_v0 = vsub.f32 1.5, %v1369_v60 }
 0xa74   :  { %v1365_v29 = vsel %vm1364_vm8, %v2909_v30, %v1361_v61  ;;  %v1371_v17 = vmul.f32 %v2911_v51, %v1370_v0 }
 0xa75   :  { %v1396_v3 = vmul.f32 %v1365_v29, %v1348_v22 }
 0xa76   :  { %v1375_v4 = vsel %vm1374_vm10, %v2911_v51, %v1371_v17 }
 0xa77   :  { %v1401_v5 = vmul.f32 %v3547_v1, %v1396_v3  ;;  %v1397_v6 = vmul.f32 %v1375_v4, %v1349_v37 }
 0xa79   :  { %v1402_v62 = vmul.f32 %v3547_v1, %v1397_v6  ;;  %v1406_v20 = vadd.f32 %v3551_v8, %v1401_v5 }
 0xa7b   :  { %v1407_v10 = vadd.f32 %v3551_v8, %v1402_v62 }
 0xa7d   :  { %v1410_v11 = vpack.c.bf16 %v1407_v10, %v1406_v20 }
 0xa7f   :  { %2716 = vmatmul.msk.bf16.vlgmr.msra.gmra.mxu2 %vm135_vm1, %v1410_v11 }
 0xaaa   :  { %v1293_v13 = vpop.f32.mrf.mxu1 }
 0xaab   :  { %v1294_v14 = vadd.f32 %v1293_v13, %v3510_v59 }
 0xaad   :  { %v3559_v15 = vadd.f32 %v1294_v14, %v3464_v46 }
 0xaaf   :  { %v1310_v23 = vsel %vm135_vm1, %v3559_v15, 0.0  ;;  %v1322_v9 = vmul.f32 %v3559_v15, %v3559_v15 }
 0xab0   :  { %1311 = vadd.xlane.f32.xlu1 %v1310_v23 }
 0xab1   :  { %v1330_v27 = vsel %vm135_vm1, %v1322_v9, 0.0 }
 0xab2   :  { %v1295_v7 = vpop.f32.mrf.mxu1  ;;  %1331 = vadd.xlane.f32.xlu2 %v1330_v27 }
 0xab3   :  { %v1296_v28 = vadd.f32 %v1295_v7, %v3510_v59 }
 0xab5   :  { %v3568_v33 = vadd.f32 %v1296_v28, %v3472_v24 }
 0xab7   :  { %v1313_v46 = vsel %vm135_vm1, %v3568_v33, 0.0  ;;  %v1323_v34 = vmul.f32 %v3568_v33, %v3568_v33 }
 0xab8   :  { %1314 = vadd.xlane.f32.xlu0 %v1313_v46 }
 0xab9   :  { %v1333_v35 = vsel %vm135_vm1, %v1323_v34, 0.0 }
 0xaba   :  { %1334 = vadd.xlane.f32.xlu1 %v1333_v35 }
 0xb02   :  { %v1445_v38 = vpop.f32.mrf.mxu2 }
 0xb03   :  { %v1446_v39 = vadd.f32 %v1445_v38, %v3575_v36 }
 0xb05   :  { %v1460_v19 = vmul.f32 0.35355338, %v1446_v39  ;;  %v1468_v41 = vpack.c.bf16 %v1446_v39, %v1446_v39 }
 0xb07   :  { %v1464_v52 = vpack.c.bf16 %v1460_v19, %v1460_v19  ;;  %v1479_v12 = vunpack.c.l.b16 %v1468_v41 }
 0xb09   :  { %v1474_v47 = vunpack.c.l.b16 %v1464_v52 }
 0xb0a   :  { %v1447_v59 = vpop.f32.mrf.mxu2 }
 0xb0b   :  { %v1448_v24 = vadd.f32 %v1447_v59, %v3575_v36 }
 0xb0d   :  { %v1461_v42 = vmul.f32 0.35355338, %v1448_v24  ;;  %v1469_v43 = vpack.c.bf16 %v1448_v24, %v1448_v24 }
 0xb0f   :  { %v1465_v44 = vpack.c.bf16 %v1461_v42, %v1461_v42  ;;  %v1480_v45 = vunpack.c.l.b16 %v1469_v43 }
 0xb11   :  { %v1475_v48 = vunpack.c.l.b16 %v1465_v44  ;;  %v3579_v49 = vpack.c.b16 %v1480_v45, %v1479_v12 }
 0xb13   :  { %v3581_v50 = vpack.c.b16 %v1475_v48, %v1474_v47  ;;  %1638 = vrot.lane.b32.xlu2 %v3579_v49, %s3091_s24  ;;  %1482 = vrot.lane.b32.xlu0 %v3579_v49, %s3092_s25 }
 0xb15   :  { %1636 = vrot.lane.b32.xlu1 %v3581_v50, %s3093_s26 }
 0xb23   :  { %v1312_v21 = vpop.xlane.xlu1 %1311 }
 0xb24   :  { %v1318_v32 = vmul.f32 %v1312_v21, %v3230_v40 }
 0xb25   :  { %v1332_v26 = vpop.xlane.xlu2 %1331 }
 0xb26   :  { %v1342_v25 = vmul.f32 %v1318_v32, %v1318_v32  ;;  %v1338_v18 = vmul.f32 %v1332_v26, %v3230_v40  ;;  %v1350_v6 = vsub.f32 %v3559_v15, %v1318_v32 }
 0xb28   :  { %v1346_v16 = vsub.f32 %v1338_v18, %v1342_v25 }
 0xb2a   :  { %v1354_v30 = vadd.f32 1e-06, %v1346_v16 }
 0xb2b   :  { %v1315_v31 = vpop.xlane.xlu0 %1314 }
 0xb2c   :  { %2912 = vrsqrt.f32 %v1354_v30  ;;  %v1319_v51 = vmul.f32 %v1315_v31, %v3230_v40  ;;  %vm1382_vm12 = vweird.f32 %v1354_v30 }
 0xb2d   :  { %v1335_v53 = vpop.xlane.xlu1 %1334 }
 0xb2e   :  { %v1343_v54 = vmul.f32 %v1319_v51, %v1319_v51  ;;  %v1339_v55 = vmul.f32 %v1335_v53, %v3230_v40  ;;  %v1351_v11 = vsub.f32 %v3568_v33, %v1319_v51 }
 0xb30   :  { %v1347_v56 = vsub.f32 %v1339_v55, %v1343_v54 }
 0xb32   :  { %v2913_v57 = vpop.eup %2912  ;;  %v1355_v58 = vadd.f32 1e-06, %v1347_v56 }
 0xb33   :  { %v1377_v60 = vmul.f32 %v2913_v57, %v1354_v30  ;;  %vm1383_vm11 = vweird.f32 %v2913_v57 }
 0xb34   :  { %2914 = vrsqrt.f32 %v1355_v58  ;;  %vm1384_vm13 = vmor %vm1382_vm12, %vm1383_vm11  ;;  %vm1392_vm4 = vweird.f32 %v1355_v58 }
 0xb35   :  { %v1378_v61 = vmul.f32 %v2913_v57, %v1377_v60 }
 0xb37   :  { %v1379_v0 = vmul.f32 0.5, %v1378_v61 }
 0xb39   :  { %v1380_v22 = vsub.f32 1.5, %v1379_v0 }
 0xb3a   :  { %v2915_v29 = vpop.eup %2914 }
 0xb3b   :  { %v1381_v17 = vmul.f32 %v2913_v57, %v1380_v22  ;;  %v1387_v3 = vmul.f32 %v2915_v29, %v1355_v58  ;;  %vm1393_vm14 = vweird.f32 %v2915_v29 }
 0xb3c   :  { %vm1394_vm5 = vmor %vm1392_vm4, %vm1393_vm14 }
 0xb3d   :  { %v1388_v37 = vmul.f32 %v2915_v29, %v1387_v3  ;;  %v1385_v4 = vsel %vm1384_vm13, %v2913_v57, %v1381_v17 }
 0xb3e   :  { %v1398_v20 = vmul.f32 %v1385_v4, %v1350_v6 }
 0xb3f   :  { %v1389_v5 = vmul.f32 0.5, %v1388_v37 }
 0xb40   :  { %v1403_v23 = vmul.f32 %v3547_v1, %v1398_v20 }
 0xb41   :  { %v1390_v62 = vsub.f32 1.5, %v1389_v5 }
 0xb42   :  { %v1408_v27 = vadd.f32 %v3551_v8, %v1403_v23 }
 0xb43   :  { %v1391_v10 = vmul.f32 %v2915_v29, %v1390_v62 }
 0xb45   :  { %v1395_v13 = vsel %vm1394_vm5, %v2915_v29, %v1391_v10 }
 0xb46   :  { %v1399_v14 = vmul.f32 %v1395_v13, %v1351_v11 }
 0xb48   :  { %v1404_v9 = vmul.f32 %v3547_v1, %v1399_v14 }
 0xb4a   :  { %v1409_v7 = vadd.f32 %v3551_v8, %v1404_v9 }
 0xb4c   :  { %v1411_v28 = vpack.c.bf16 %v1409_v7, %v1408_v27 }
 0xb4e   :  { %2717 = vmatmul.msk.bf16.gmra.mxu2 %vm135_vm1, %v1411_v28 }
 0xb6d   :  { %v1639_v46 = vpop.permute.xlu2 %1638 }
 0xb6e   :  { %v1644_v38 = vsel %vm321_vm15, %v1639_v46, 0 }
 0xb85   :  { %v1483_v34 = vpop.permute.xlu0 %1482 }
 0xb86   :  { %v1488_v35 = vsel %vm321_vm15, %v1483_v34, 0 }
 0xb87   :  { %1497 = vmatpush.bf16.xpose.msrb.mxu3 %v1488_v35  ;;  %v1637_v39 = vpop.permute.xlu1 %1636 }
 0xb8e   :  { %2718 = vmatmul.msk.bf16.vlgmr.msrb.gmra.mxu3 %vm321_vm15, %v3581_v50 }
 0xb8f   :  { %1653 = vmatpush.bf16.xpose.msra.mxu3 %v1644_v38 }
 0xb9e   :  { %2722 = vmatmul.msk.bf16.vlgmr.msra.gmra.mxu3 %vm321_vm15, %v1637_v39 }
 0xbd1   :  { %v1450_v1 = vpop.f32.mrf.mxu2 }
 0xbd2   :  { %v1451_v8 = vadd.f32 %v1450_v1, %v3575_v36 }
 0xbd4   :  { %v1462_v19 = vmul.f32 0.35355338, %v1451_v8  ;;  %v1470_v41 = vpack.c.bf16 %v1451_v8, %v1451_v8 }
 0xbd6   :  { %v1466_v52 = vpack.c.bf16 %v1462_v19, %v1462_v19  ;;  %v1511_v12 = vunpack.c.l.b16 %v1470_v41 }
 0xbd8   :  { %v1506_v47 = vunpack.c.l.b16 %v1466_v52 }
 0xbd9   :  { %v1452_v59 = vpop.f32.mrf.mxu2 }
 0xbda   :  { %v1453_v24 = vadd.f32 %v1452_v59, %v3575_v36 }
 0xbdc   :  { %v1463_v42 = vmul.f32 0.35355338, %v1453_v24  ;;  %v1471_v43 = vpack.c.bf16 %v1453_v24, %v1453_v24 }
 0xbde   :  { %v1467_v44 = vpack.c.bf16 %v1463_v42, %v1463_v42  ;;  %v1512_v45 = vunpack.c.l.b16 %v1471_v43 }
 0xbe0   :  { %v1507_v48 = vunpack.c.l.b16 %v1467_v44  ;;  %v3607_v21 = vpack.c.b16 %v1512_v45, %v1511_v12 }
 0xbe2   :  { %v3609_v32 = vpack.c.b16 %v1507_v48, %v1506_v47  ;;  %1514 = vrot.lane.b32.xlu0 %v3607_v21, %s3092_s25 }
 0xc11   :  { %v1499_v26 = vpop.f32.mrf.mxu3 }
 0xc12   :  { %v1536_v25 = vsel %vm374_vm2, %v1499_v26, -inf }
 0xc13   :  { %1537 = vmax.xlane.f32.xlu2 %v1536_v25 }
 0xc19   :  { %v1501_v18 = vpop.f32.mrf.mxu3 }
 0xc1a   :  { %v1539_v16 = vsel %vm374_vm2, %v1501_v18, -inf }
 0xc1b   :  { %1540 = vmax.xlane.f32.xlu0 %v1539_v16 }
 0xc21   :  { %v1655_v30 = vpop.f32.mrf.mxu3 }
 0xc22   :  { %v1684_v31 = vsel %vm374_vm2, %v1655_v30, -inf }
 0xc23   :  { %1685 = vmax.xlane.f32.xlu1 %v1684_v31 }
 0xc29   :  { %v1657_v51 = vpop.f32.mrf.mxu3 }
 0xc2a   :  { %v1687_v53 = vsel %vm374_vm2, %v1657_v51, -inf }
 0xc2b   :  { %1688 = vmax.xlane.f32.xlu2 %v1687_v53 }
 0xc2f   :  { %1662 = vrot.lane.b32.xlu0 %v3607_v21, %s3091_s24 }
 0xc43   :  { %1589 = vrot.lane.b32.xlu2 %v3579_v49, %s3087_s17 }
 0xc54   :  { %v1515_v54 = vpop.permute.xlu0 %1514 }
 0xc55   :  { %v1520_v55 = vsel %vm321_vm15, %v1515_v54, 0 }
 0xc56   :  { %1529 = vmatpush.bf16.xpose.msrb.mxu0 %v1520_v55 }
 0xc5d   :  { %2719 = vmatmul.msk.bf16.vlgmr.msrb.gmra.mxu0 %vm321_vm15, %v3609_v32 }
 0xc86   :  { %v1538_v56 = vpop.xlane.xlu2 %1537 }
 0xc87   :  { %v1548_v57 = vsub.f32 %v1499_v26, %v1538_v56 }
 0xc89   :  { %v1552_v58 = vmul.f32 1.442695, %v1548_v57 }
 0xc8b   :  { %2916 = vpow2.f32 %v1552_v58 }
 0xc8e   :  { %v1541_v60 = vpop.xlane.xlu0 %1540 }
 0xc8f   :  { %v1549_v61 = vsub.f32 %v1501_v18, %v1541_v60 }
 0xc91   :  { %v2917_v0 = vpop.eup %2916  ;;  %v1554_v22 = vmul.f32 1.442695, %v1549_v61 }
 0xc92   :  { %v1560_v29 = vsel %vm374_vm2, %v2917_v0, 0.0 }
 0xc93   :  { %2918 = vpow2.f32 %v1554_v22  ;;  %1561 = vadd.xlane.f32.xlu1 %v1560_v29 }
 0xc96   :  { %v1686_v17 = vpop.xlane.xlu1 %1685 }
 0xc97   :  { %v1696_v3 = vsub.f32 %v1655_v30, %v1686_v17 }
 0xc99   :  { %v2919_v37 = vpop.eup %2918  ;;  %v1700_v4 = vmul.f32 1.442695, %v1696_v3 }
 0xc9a   :  { %v1563_v5 = vsel %vm374_vm2, %v2919_v37, 0.0 }
 0xc9b   :  { %2920 = vpow2.f32 %v1700_v4  ;;  %1564 = vadd.xlane.f32.xlu2 %v1563_v5  ;;  %v1456_v5 = vld [vmem:[#allocation2 + $0x10] sm:$0xf] }
 0xc9e   :  { %v1689_v6 = vpop.xlane.xlu2 %1688 }
 0xc9f   :  { %v1697_v14 = vsub.f32 %v1657_v51, %v1689_v6  ;;  %v1819_v6 = vsel %vm629_vm3, %v1456_v5, 0 }
 0xca1   :  { %v2921_v62 = vpop.eup %2920  ;;  %v1663_v20 = vpop.permute.xlu0 %1662  ;;  %v1702_v23 = vmul.f32 1.442695, %v1697_v14 }
 0xca2   :  { %v1668_v10 = vsel %vm321_vm15, %v1663_v20, 0  ;;  %v1708_v11 = vsel %vm374_vm2, %v2921_v62, 0.0 }
 0xca3   :  { %1677 = vmatpush.bf16.xpose.msra.mxu0 %v1668_v10  ;;  %1709 = vadd.xlane.f32.xlu0 %v1708_v11  ;;  %2922 = vpow2.f32 %v1702_v23 }
 0xca6   :  { %v1590_v13 = vpop.permute.xlu2 %1589 }
 0xca7   :  { %1602 = vmatpush.bf16.msrb.mxu1 %v1590_v13 }
 0xca9   :  { %v2923_v9 = vpop.eup %2922 }
 0xcaa   :  { %v1711_v27 = vsel %vm374_vm2, %v2923_v9, 0.0 }
 0xcab   :  { %1828 = vmatpush.bf16.msrb.mxu0 %v1819_v6 }
 0xcac   :  { %1660 = vrot.lane.b32.xlu1 %v3609_v32, %s3093_s26 }
 0xcb3   :  { %1737 = vrot.lane.b32.xlu2 %v3579_v49, %s3095_s28 }
 0xcbb   :  { %1842 = vrot.lane.b32.xlu2 %v3579_v49, %s3096_s29 }
 0xcc3   :  { %1840 = vrot.lane.b32.xlu2 %v3581_v50, %s3094_s27 }
 0xcd6   :  { %1712 = vadd.xlane.f32.xlu1 %v1711_v27 }
 0xcda   :  { %v1531_v7 = vpop.f32.mrf.mxu0 }
 0xcdb   :  { %v1542_v34 = vsel %vm374_vm2, %v1531_v7, -inf }
 0xce2   :  { %v1533_v28 = vpop.f32.mrf.mxu0 }
 0xce3   :  { %v1545_v46 = vsel %vm374_vm2, %v1533_v28, -inf }
 0xce4   :  { %1546 = vmax.xlane.f32.xlu0 %v1545_v46 }
 0xcec   :  { %1543 = vmax.xlane.f32.xlu2 %v1542_v34 }
 0xcef   :  { %1614 = vrot.lane.b32.xlu1 %v3607_v21, %s3087_s17 }
 0xd04   :  { %1762 = vrot.lane.b32.xlu2 %v3607_v21, %s3095_s28 }
 0xd06   :  { %v1562_v35 = vpop.xlane.xlu1 %1561 }
 0xd07   :  { %2924 = vrcp.f32 %v1562_v35 }
 0xd0d   :  { %v2925_v39 = vpop.eup %2924 }
 0xd0e   :  { %v1565_v38 = vpop.xlane.xlu2 %1564  ;;  %v1576_v1 = vmul.f32 %v2925_v39, %v2917_v0 }
 0xd0f   :  { %2926 = vrcp.f32 %v1565_v38 }
 0xd10   :  { %v1580_v19 = vpack.c.bf16 %v1576_v1, %v1576_v1 }
 0xd12   :  { %v1586_v52 = vunpack.c.l.b16 %v1580_v19 }
 0xd15   :  { %v2927_v8 = vpop.eup %2926 }
 0xd16   :  { %v1577_v59 = vmul.f32 %v2927_v8, %v2919_v37  ;;  %v1738_v41 = vpop.permute.xlu2 %1737  ;;  %v1710_v47 = vpop.xlane.xlu0 %1709 }
 0xd17   :  { %1750 = vmatpush.bf16.msra.mxu1 %v1738_v41  ;;  %2928 = vrcp.f32 %v1710_v47 }
 0xd18   :  { %v1581_v24 = vpack.c.bf16 %v1577_v59, %v1577_v59 }
 0xd1a   :  { %v1587_v42 = vunpack.c.l.b16 %v1581_v24 }
 0xd1c   :  { %v1588_v43 = vpack.c.b16 %v1587_v42, %v1586_v52 }
 0xd1d   :  { %v2929_v26 = vpop.eup %2928 }
 0xd1e   :  { %v1661_v12 = vpop.permute.xlu1 %1660  ;;  %2720 = vmatmul.msk.bf16.vlgmr.msrb.gmra.mxu1 %vm374_vm2, %v1588_v43  ;;  %v1843_v44 = vpop.permute.xlu2 %1842  ;;  %v1724_v25 = vmul.f32 %v2929_v26, %v2921_v62 }
 0xd1f   :  { %v1848_v45 = vsel %vm321_vm15, %v1843_v44, 0  ;;  %2723 = vmatmul.msk.bf16.vlgmr.msra.gmra.mxu0 %vm321_vm15, %v1661_v12 }
 0xd20   :  { %1857 = vmatpush.bf16.xpose.msrb.mxu1 %v1848_v45  ;;  %v1728_v16 = vpack.c.bf16 %v1724_v25, %v1724_v25 }
 0xd22   :  { %v1734_v51 = vunpack.c.l.b16 %v1728_v16 }
 0xd26   :  { %v1841_v54 = vpop.permute.xlu2 %1840 }
 0xd49   :  { %v1713_v48 = vpop.xlane.xlu1 %1712 }
 0xd4a   :  { %2930 = vrcp.f32 %v1713_v48 }
 0xd50   :  { %v2931_v18 = vpop.eup %2930 }
 0xd51   :  { %v1725_v30 = vmul.f32 %v2931_v18, %v2923_v9  ;;  %v1457_v9 = vld [vmem:[#allocation2 + $0x14] sm:$0xf] }
 0xd52   :  { %v1791_v27 = vsel %vm629_vm3, %v1457_v9, 0 }
 0xd53   :  { %v1729_v31 = vpack.c.bf16 %v1725_v30, %v1725_v30  ;;  %1800 = vmatpush.bf16.msrb.mxu3 %v1791_v27 }
 0xd55   :  { %v1735_v53 = vunpack.c.l.b16 %v1729_v31 }
 0xd57   :  { %v1736_v55 = vpack.c.b16 %v1735_v53, %v1734_v51  ;;  %v1547_v56 = vpop.xlane.xlu0 %1546 }
 0xd58   :  { %v1551_v61 = vsub.f32 %v1533_v28, %v1547_v56 }
 0xd59   :  { %2724 = vmatmul.msk.bf16.vlgmr.msra.gmra.mxu1 %vm374_vm2, %v1736_v55 }
 0xd5a   :  { %v1558_v22 = vmul.f32 1.442695, %v1551_v61 }
 0xd5f   :  { %v1544_v57 = vpop.xlane.xlu2 %1543 }
 0xd60   :  { %v1550_v58 = vsub.f32 %v1531_v7, %v1544_v57 }
 0xd61   :  { %v1615_v60 = vpop.permute.xlu1 %1614 }
 0xd62   :  { %v1556_v0 = vmul.f32 1.442695, %v1550_v58  ;;  %1627 = vmatpush.bf16.msrb.mxu2 %v1615_v60 }
 0xd64   :  { %2932 = vpow2.f32 %v1556_v0 }
 0xd65   :  { %2934 = vpow2.f32 %v1558_v22 }
 0xd67   :  { %v1763_v29 = vpop.permute.xlu2 %1762 }
 0xd68   :  { %1775 = vmatpush.bf16.msra.mxu2 %v1763_v29 }
 0xd69   :  { %2730 = vmatmul.msk.bf16.vlgmr.msrb.gmra.mxu1 %vm321_vm15, %v1841_v54 }
 0xd6a   :  { %v2933_v17 = vpop.eup %2932 }
 0xd6b   :  { %v1566_v3 = vsel %vm374_vm2, %v2933_v17, 0.0  ;;  %v2935_v37 = vpop.eup %2934 }
 0xd6c   :  { %1567 = vadd.xlane.f32.xlu0 %v1566_v3  ;;  %v1569_v4 = vsel %vm374_vm2, %v2935_v37, 0.0 }
 0xd74   :  { %1570 = vadd.xlane.f32.xlu0 %v1569_v4 }
 0xd9b   :  { %v1604_v62 = vpop.f32.mrf.mxu1 }
 0xd9c   :  { %v1679_v20 = vpop.f32.mrf.mxu0 }
 0xd9d   :  { %v1690_v10 = vsel %vm374_vm2, %v1679_v20, -inf }
 0xd9e   :  { %1691 = vmax.xlane.f32.xlu0 %v1690_v10 }
 0xda3   :  { %v1606_v11 = vpop.f32.mrf.mxu1 }
 0xda4   :  { %v1634_v13 = vpack.c.bf16 %v1606_v11, %v1604_v62  ;;  %v1681_v14 = vpop.f32.mrf.mxu0 }
 0xda5   :  { %v1693_v23 = vsel %vm374_vm2, %v1681_v14, -inf }
 0xda6   :  { %2728 = vmatmul.msk.bf16.vlgmr.msrb.gmra.mxu0 %vm321_vm15, %v1634_v13  ;;  %1694 = vmax.xlane.f32.xlu0 %v1693_v23 }
 0xdd6   :  { %v1752_v7 = vpop.f32.mrf.mxu1 }
 0xdde   :  { %v1754_v28 = vpop.f32.mrf.mxu1 }
 0xddf   :  { %v1782_v46 = vpack.c.bf16 %v1754_v28, %v1752_v7  ;;  %v1568_v34 = vpop.xlane.xlu0 %1567 }
 0xde0   :  { %2936 = vrcp.f32 %v1568_v34 }
 0xde1   :  { %2726 = vmatmul.msk.bf16.vlgmr.msrb.gmra.mxu3 %vm321_vm15, %v1782_v46 }
 0xde6   :  { %v1859_v35 = vpop.f32.mrf.mxu1  ;;  %v2937_v39 = vpop.eup %2936 }
 0xde7   :  { %v1571_v38 = vpop.xlane.xlu0 %1570  ;;  %v1578_v1 = vmul.f32 %v2937_v39, %v2933_v17  ;;  %v1888_v51 = vsel %vm374_vm2, %v1859_v35, -inf }
 0xde8   :  { %2938 = vrcp.f32 %v1571_v38 }
 0xde9   :  { %v1582_v59 = vpack.c.bf16 %v1578_v1, %v1578_v1 }
 0xdeb   :  { %v1611_v42 = vunpack.c.l.b16 %v1582_v59 }
 0xdee   :  { %v2939_v8 = vpop.eup %2938  ;;  %v1861_v19 = vpop.f32.mrf.mxu1 }
 0xdef   :  { %v1579_v41 = vmul.f32 %v2939_v8, %v2935_v37  ;;  %v1891_v24 = vsel %vm374_vm2, %v1861_v19, -inf }
 0xdf0   :  { %1892 = vmax.xlane.f32.xlu2 %v1891_v24 }
 0xdf1   :  { %v1583_v52 = vpack.c.bf16 %v1579_v41, %v1579_v41 }
 0xdf3   :  { %v1612_v43 = vunpack.c.l.b16 %v1583_v52 }
 0xdf5   :  { %v1613_v12 = vpack.c.b16 %v1612_v43, %v1611_v42 }
 0xdf7   :  { %2721 = vmatmul.msk.bf16.vlgmr.msrb.gmra.mxu2 %vm374_vm2, %v1613_v12 }
 0xe08   :  { %1864 = vrot.lane.b32.xlu2 %v3609_v32, %s3094_s27 }
 0xe11   :  { %v1692_v44 = vpop.xlane.xlu0 %1691 }
 0xe12   :  { %v1698_v45 = vsub.f32 %v1679_v20, %v1692_v44 }
 0xe14   :  { %v1704_v47 = vmul.f32 1.442695, %v1698_v45 }
 0xe16   :  { %2940 = vpow2.f32 %v1704_v47 }
 0xe19   :  { %v1695_v48 = vpop.xlane.xlu0 %1694 }
 0xe1a   :  { %v1699_v26 = vsub.f32 %v1681_v14, %v1695_v48 }
 0xe1c   :  { %v2941_v25 = vpop.eup %2940  ;;  %v1706_v18 = vmul.f32 1.442695, %v1699_v26 }
 0xe1d   :  { %v1714_v16 = vsel %vm374_vm2, %v2941_v25, 0.0 }
 0xe1e   :  { %2942 = vpow2.f32 %v1706_v18  ;;  %1715 = vadd.xlane.f32.xlu1 %v1714_v16 }
 0xe23   :  { %v3683_v34 = vpop.f32.mrf.mxu0 }
 0xe24   :  { %v2943_v30 = vpop.eup %2942 }
 0xe25   :  { %v1717_v31 = vsel %vm374_vm2, %v2943_v30, 0.0 }
 0xe26   :  { %1718 = vadd.xlane.f32.xlu0 %v1717_v31 }
 0xe2e   :  { %1889 = vmax.xlane.f32.xlu0 %v1888_v51 }
 0xe37   :  { %2022 = vrot.lane.b32.xlu1 %v3579_v49, %s3097_s30 }
 0xe3f   :  { %2020 = vrot.lane.b32.xlu1 %v3581_v50, %s3098_s10 }
 0xe42   :  { %1866 = vrot.lane.b32.xlu0 %v3607_v21, %s3096_s29 }
 0xe47   :  { %1941 = vrot.lane.b32.xlu1 %v3579_v49, %s3099_s11 }
 0xe63   :  { %v1893_v53 = vpop.xlane.xlu2 %1892 }
 0xe64   :  { %v1901_v54 = vsub.f32 %v1861_v19, %v1893_v53 }
 0xe66   :  { %v1906_v55 = vmul.f32 1.442695, %v1901_v54 }
 0xe68   :  { %2944 = vpow2.f32 %v1906_v55 }
 0xe6b   :  { %v1865_v46 = vpop.permute.xlu2 %1864 }
 0xe6e   :  { %v2945_v56 = vpop.eup %2944 }
 0xe6f   :  { %v1915_v57 = vsel %vm374_vm2, %v2945_v56, 0.0 }
 0xe70   :  { %1916 = vadd.xlane.f32.xlu2 %v1915_v57  ;;  %v1458_v57 = vld [vmem:[#allocation2 + $0x18] sm:$0xf] }
 0xe7a   :  { %v1629_v58 = vpop.f32.mrf.mxu2 }
 0xe82   :  { %v1631_v60 = vpop.f32.mrf.mxu2 }
 0xe83   :  { %v1635_v61 = vpack.c.bf16 %v1631_v60, %v1629_v58  ;;  %v1995_v58 = vsel %vm629_vm3, %v1458_v57, 0 }
 0xe84   :  { %2004 = vmatpush.bf16.msra.mxu3 %v1995_v58 }
 0xe85   :  { %2729 = vmatmul.msk.bf16.gmra.mxu0 %vm321_vm15, %v1635_v61 }
 0xe88   :  { %2044 = vrot.lane.b32.xlu2 %v3609_v32, %s3098_s10 }
 0xe91   :  { %v1716_v50 = vpop.xlane.xlu1 %1715 }
 0xe92   :  { %2946 = vrcp.f32 %v1716_v50 }
 0xe98   :  { %v2947_v22 = vpop.eup %2946 }
 0xe99   :  { %v1719_v0 = vpop.xlane.xlu0 %1718  ;;  %v1726_v29 = vmul.f32 %v2947_v22, %v2941_v25 }
 0xe9a   :  { %2948 = vrcp.f32 %v1719_v0 }
 0xe9b   :  { %v1730_v3 = vpack.c.bf16 %v1726_v29, %v1726_v29 }
 0xe9d   :  { %v1759_v20 = vunpack.c.l.b16 %v1730_v3 }
 0xea0   :  { %v2949_v17 = vpop.eup %2948 }
 0xea1   :  { %v1727_v37 = vmul.f32 %v2949_v17, %v2943_v30  ;;  %v1890_v4 = vpop.xlane.xlu0 %1889 }
 0xea2   :  { %v1900_v5 = vsub.f32 %v1859_v35, %v1890_v4  ;;  %v3685_v35 = vpop.f32.mrf.mxu0 }
 0xea3   :  { %v1731_v6 = vpack.c.bf16 %v1727_v37, %v1727_v37 }
 0xea4   :  { %v1904_v62 = vmul.f32 1.442695, %v1900_v5 }
 0xea5   :  { %v1760_v10 = vunpack.c.l.b16 %v1731_v6 }
 0xea6   :  { %2950 = vpow2.f32 %v1904_v62 }
 0xea7   :  { %v1761_v11 = vpack.c.b16 %v1760_v10, %v1759_v20 }
 0xea9   :  { %v2023_v13 = vpop.permute.xlu1 %2022  ;;  %2725 = vmatmul.msk.bf16.vlgmr.msra.gmra.mxu2 %vm374_vm2, %v1761_v11 }
 0xeaa   :  { %v2028_v32 = vsel %vm321_vm15, %v2023_v13, 0 }
 0xeab   :  { %2037 = vmatpush.bf16.xpose.msra.mxu0 %v2028_v32 }
 0xeac   :  { %v2951_v14 = vpop.eup %2950 }
 0xead   :  { %v1912_v23 = vsel %vm374_vm2, %v2951_v14, 0.0 }
 0xeae   :  { %1913 = vadd.xlane.f32.xlu0 %v1912_v23 }
 0xeb1   :  { %v2021_v9 = vpop.permute.xlu1 %2020 }
 0xeb2   :  { %2736 = vmatmul.msk.bf16.vlgmr.msra.gmra.mxu0 %vm321_vm15, %v2021_v9 }
 0xeb4   :  { %v1867_v27 = vpop.permute.xlu0 %1866 }
 0xeb5   :  { %v1872_v7 = vsel %vm321_vm15, %v1867_v27, 0 }
 0xeb6   :  { %1881 = vmatpush.bf16.xpose.msrb.mxu2 %v1872_v7 }
 0xeb9   :  { %v1942_v28 = vpop.permute.xlu1 %1941 }
 0xeba   :  { %1954 = vmatpush.bf16.msra.mxu1 %v1942_v28 }
 0xebd   :  { %2731 = vmatmul.msk.bf16.vlgmr.msrb.gmra.mxu2 %vm321_vm15, %v1865_v46 }
 0xec2   :  { %2046 = vrot.lane.b32.xlu0 %v3607_v21, %s3097_s30 }
 0xee3   :  { %v1917_v38 = vpop.xlane.xlu2 %1916 }
 0xee4   :  { %2952 = vrcp.f32 %v1917_v38 }
 0xeea   :  { %v2953_v8 = vpop.eup %2952 }
 0xeeb   :  { %v1929_v19 = vmul.f32 %v2953_v8, %v2945_v56  ;;  %v2045_v30 = vpop.permute.xlu2 %2044 }
 0xeed   :  { %v1933_v24 = vpack.c.bf16 %v1929_v19, %v1929_v19 }
 0xeef   :  { %v1939_v12 = vunpack.c.l.b16 %v1933_v24 }
 0xf02   :  { %v3687_v39 = vpop.f32.mrf.mxu0 }
 0xf0a   :  { %v3689_v59 = vpop.f32.mrf.mxu0 }
 0xf21   :  { %v1914_v1 = vpop.xlane.xlu0 %1913 }
 0xf22   :  { %2954 = vrcp.f32 %v1914_v1 }
 0xf28   :  { %v2955_v41 = vpop.eup %2954 }
 0xf29   :  { %v1928_v52 = vmul.f32 %v2955_v41, %v2951_v14 }
 0xf2b   :  { %v1932_v42 = vpack.c.bf16 %v1928_v52, %v1928_v52 }
 0xf2c   :  { %v1777_v43 = vpop.f32.mrf.mxu2 }
 0xf2d   :  { %v1938_v44 = vunpack.c.l.b16 %v1932_v42 }
 0xf2f   :  { %v1940_v45 = vpack.c.b16 %v1939_v12, %v1938_v44  ;;  %v2039_v47 = vpop.f32.mrf.mxu0 }
 0xf30   :  { %v2068_v48 = vsel %vm374_vm2, %v2039_v47, -inf }
 0xf31   :  { %2069 = vmax.xlane.f32.xlu2 %v2068_v48  ;;  %2732 = vmatmul.msk.bf16.vlgmr.msra.gmra.mxu1 %vm374_vm2, %v1940_v45 }
 0xf34   :  { %v2047_v26 = vpop.permute.xlu0 %2046  ;;  %v1779_v25 = vpop.f32.mrf.mxu2 }
 0xf35   :  { %v2052_v18 = vsel %vm321_vm15, %v2047_v26, 0  ;;  %v1783_v16 = vpack.c.bf16 %v1779_v25, %v1777_v43 }
 0xf36   :  { %2061 = vmatpush.bf16.xpose.msrb.mxu1 %v2052_v18 }
 0xf37   :  { %2727 = vmatmul.msk.bf16.gmra.mxu3 %vm321_vm15, %v1783_v16  ;;  %v2041_v53 = vpop.f32.mrf.mxu0 }
 0xf38   :  { %v2071_v55 = vsel %vm374_vm2, %v2041_v53, -inf }
 0xf40   :  { %v1883_v31 = vpop.f32.mrf.mxu2 }
 0xf41   :  { %2737 = vmatmul.msk.bf16.vlgmr.msrb.gmra.mxu1 %vm321_vm15, %v2045_v30  ;;  %v1894_v51 = vsel %vm374_vm2, %v1883_v31, -inf }
 0xf42   :  { %1895 = vmax.xlane.f32.xlu1 %v1894_v51 }
 0xf48   :  { %v1885_v54 = vpop.f32.mrf.mxu2 }
 0xf49   :  { %v1897_v56 = vsel %vm374_vm2, %v1885_v54, -inf }
 0xf4a   :  { %2072 = vmax.xlane.f32.xlu1 %v2071_v55  ;;  %1898 = vmax.xlane.f32.xlu0 %v1897_v56 }
 0xfa4   :  { %v2070_v17 = vpop.xlane.xlu2 %2069 }
 0xfa5   :  { %v2080_v62 = vsub.f32 %v2039_v47, %v2070_v17 }
 0xfa7   :  { %v2084_v13 = vmul.f32 1.442695, %v2080_v62 }
 0xfae   :  { %v1956_v60 = vpop.f32.mrf.mxu1 }
 0xfb5   :  { %v1896_v61 = vpop.xlane.xlu1 %1895 }
 0xfb6   :  { %v1902_v50 = vsub.f32 %v1883_v31, %v1896_v61  ;;  %v1958_v0 = vpop.f32.mrf.mxu1 }
 0xfb7   :  { %v1986_v22 = vpack.c.bf16 %v1958_v0, %v1956_v60 }
 0xfb8   :  { %v1908_v29 = vmul.f32 1.442695, %v1902_v50 }
 0xfb9   :  { %2734 = vmatmul.msk.bf16.vlgmr.msra.gmra.mxu3 %vm321_vm15, %v1986_v22 }
 0xfba   :  { %2956 = vpow2.f32 %v1908_v29 }
 0xfbd   :  { %v1899_v3 = vpop.xlane.xlu0 %1898  ;;  %v2073_v37 = vpop.xlane.xlu1 %2072 }
 0xfbe   :  { %v1903_v4 = vsub.f32 %v1885_v54, %v1899_v3  ;;  %v2063_v5 = vpop.f32.mrf.mxu1  ;;  %v2081_v10 = vsub.f32 %v2041_v53, %v2073_v37 }
 0xfbf   :  { %v2074_v27 = vsel %vm374_vm2, %v2063_v5, -inf }
 0xfc0   :  { %v2957_v6 = vpop.eup %2956  ;;  %v1910_v20 = vmul.f32 1.442695, %v1903_v4  ;;  %v2086_v32 = vmul.f32 1.442695, %v2081_v10 }
 0xfc1   :  { %v1918_v11 = vsel %vm374_vm2, %v2957_v6, 0.0 }
 0xfc2   :  { %1919 = vadd.xlane.f32.xlu1 %v1918_v11  ;;  %2958 = vpow2.f32 %v1910_v20 }
 0xfc3   :  { %2960 = vpow2.f32 %v2084_v13 }
 0xfc4   :  { %2962 = vpow2.f32 %v2086_v32 }
 0xfc6   :  { %v2065_v14 = vpop.f32.mrf.mxu1 }
 0xfc7   :  { %v2077_v23 = vsel %vm374_vm2, %v2065_v14, -inf }
 0xfc8   :  { %2078 = vmax.xlane.f32.xlu0 %v2077_v23  ;;  %v2959_v9 = vpop.eup %2958  ;;  %v1459_v23 = vld [vmem:[#allocation2 + $0x1c] sm:$0xf] }
 0xfc9   :  { %v1921_v7 = vsel %vm374_vm2, %v2959_v9, 0.0  ;;  %v2961_v28 = vpop.eup %2960 }
 0xfca   :  { %2075 = vmax.xlane.f32.xlu1 %v2074_v27  ;;  %1922 = vadd.xlane.f32.xlu2 %v1921_v7  ;;  %v2963_v46 = vpop.eup %2962  ;;  %v2092_v38 = vsel %vm374_vm2, %v2961_v28, 0.0 }
 0xfcb   :  { %v2095_v1 = vsel %vm374_vm2, %v2963_v46, 0.0 }
 0xfd2   :  { %2093 = vadd.xlane.f32.xlu1 %v2092_v38  ;;  %2096 = vadd.xlane.f32.xlu2 %v2095_v1  ;;  %v1802_v1 = vpop.f32.mrf.mxu3 }
 0xfdc   :  { %1966 = vrot.lane.b32.xlu0 %v3607_v21, %s3099_s11 }
 0xfeb   :  { %2121 = vrot.lane.b32.xlu1 %v3579_v49, %s3100_s12 }
 0xff3   :  { %2205 = vrot.lane.b32.xlu1 %v3575_v36, %s3101_s13 }
0x1035   :  { %v1920_v8 = vpop.xlane.xlu1 %1919 }
0x1036   :  { %2964 = vrcp.f32 %v1920_v8 }
0x103b   :  { %v2079_v19 = vpop.xlane.xlu0 %2078 }
0x103c   :  { %v2083_v41 = vsub.f32 %v2065_v14, %v2079_v19  ;;  %v2965_v44 = vpop.eup %2964  ;;  %v1804_v19 = vpop.f32.mrf.mxu3 }
0x103d   :  { %v2076_v24 = vpop.xlane.xlu1 %2075  ;;  %v1923_v43 = vpop.xlane.xlu2 %1922  ;;  %v1930_v48 = vmul.f32 %v2965_v44, %v2957_v6 }
0x103e   :  { %v2090_v52 = vmul.f32 1.442695, %v2083_v41  ;;  %v2082_v42 = vsub.f32 %v2063_v5, %v2076_v24  ;;  %2966 = vrcp.f32 %v1923_v43 }
0x103f   :  { %v1934_v31 = vpack.c.bf16 %v1930_v48, %v1930_v48 }
0x1040   :  { %2968 = vpow2.f32 %v2090_v52  ;;  %v2088_v12 = vmul.f32 1.442695, %v2082_v42 }
0x1041   :  { %v1963_v53 = vunpack.c.l.b16 %v1934_v31 }
0x1042   :  { %2970 = vpow2.f32 %v2088_v12  ;;  %v1831_v12 = vadd.f32 %v3683_v34, %v1802_v1 }
0x1044   :  { %v2967_v45 = vpop.eup %2966  ;;  %v1807_v52 = vpop.f32.mrf.mxu3 }
0x1045   :  { %v1931_v49 = vmul.f32 %v2967_v45, %v2959_v9  ;;  %v2094_v26 = vpop.xlane.xlu1 %2093  ;;  %v2097_v16 = vpop.xlane.xlu2 %2096 }
0x1046   :  { %v2969_v47 = vpop.eup %2968  ;;  %2972 = vrcp.f32 %v2094_v26 }
0x1047   :  { %v2101_v36 = vsel %vm374_vm2, %v2969_v47, 0.0  ;;  %v1935_v18 = vpack.c.bf16 %v1931_v49, %v1931_v49  ;;  %2974 = vrcp.f32 %v2097_v16 }
0x1048   :  { %v2971_v25 = vpop.eup %2970  ;;  %2102 = vadd.xlane.f32.xlu0 %v2101_v36  ;;  %v1833_v36 = vadd.f32 %v3685_v35, %v1804_v19 }
0x1049   :  { %v2098_v30 = vsel %vm374_vm2, %v2971_v25, 0.0  ;;  %v1964_v51 = vunpack.c.l.b16 %v1935_v18 }
0x104a   :  { %2099 = vadd.xlane.f32.xlu2 %v2098_v30 }
0x104b   :  { %v1965_v56 = vpack.c.b16 %v1964_v51, %v1963_v53 }
0x104c   :  { %v2973_v55 = vpop.eup %2972  ;;  %v1809_v42 = vpop.f32.mrf.mxu3 }
0x104d   :  { %v2975_v57 = vpop.eup %2974  ;;  %v2108_v58 = vmul.f32 %v2973_v55, %v2961_v28 }
0x104e   :  { %v1967_v54 = vpop.permute.xlu0 %1966  ;;  %v2109_v60 = vmul.f32 %v2975_v57, %v2963_v46  ;;  %v1836_v57 = vadd.f32 %v3687_v39, %v1807_v52 }
0x104f   :  { %1979 = vmatpush.bf16.msra.mxu2 %v1967_v54  ;;  %v2112_v61 = vpack.c.bf16 %v2108_v58, %v2108_v58 }
0x1050   :  { %v2113_v50 = vpack.c.bf16 %v2109_v60, %v2109_v60 }
0x1051   :  { %v2118_v0 = vunpack.c.l.b16 %v2112_v61 }
0x1052   :  { %2733 = vmatmul.msk.bf16.vlgmr.msra.gmra.mxu2 %vm374_vm2, %v1965_v56  ;;  %v2119_v22 = vunpack.c.l.b16 %v2113_v50 }
0x1054   :  { %v2120_v17 = vpack.c.b16 %v2119_v22, %v2118_v0  ;;  %v2006_v43 = vpop.f32.mrf.mxu3  ;;  %v1838_v0 = vadd.f32 %v3689_v59, %v1809_v42 }
0x1055   :  { %v2016_v44 = vadd.f32 %v2006_v43, %v1831_v12 }
0x105c   :  { %v2008_v26 = vpop.f32.mrf.mxu3 }
0x105d   :  { %v2122_v29 = vpop.permute.xlu1 %2121  ;;  %v2017_v18 = vadd.f32 %v2008_v26, %v1833_v36  ;;  %v3768_v26 = vld [vmem:[%s3868_s7 + $0x8] sm:$0xff] }
0x105e   :  { %2134 = vmatpush.bf16.msrb.mxu2 %v2122_v29  ;;  %v2308_v36 = vperm.slane %v3768_v26, 5 }
0x1062   :  { %2146 = vrot.lane.b32.xlu2 %v3607_v21, %s3100_s12  ;;  %2738 = vmatmul.msk.bf16.vlgmr.msrb.gmra.mxu2 %vm374_vm2, %v2120_v17  ;;  %v2175_v21 = vsel %vm629_vm3, %v1459_v23, 0 }
0x1063   :  { %2184 = vmatpush.bf16.msra.mxu1 %v2175_v21  ;;  %v2792_v21 = vld [vmem:[#allocation5 + $0x10] sm:$0xff] }
0x1065   :  { %v2206_v48 = vpop.permute.xlu1 %2205 }
0x10bb   :  { %v2103_v3 = vpop.xlane.xlu0 %2102 }
0x10bc   :  { %2976 = vrcp.f32 %v2103_v3 }
0x10bd   :  { %v2100_v37 = vpop.xlane.xlu2 %2099 }
0x10be   :  { %2978 = vrcp.f32 %v2100_v37 }
0x10c2   :  { %v2977_v4 = vpop.eup %2976 }
0x10c3   :  { %v2111_v5 = vmul.f32 %v2977_v4, %v2969_v47 }
0x10c4   :  { %v2979_v6 = vpop.eup %2978 }
0x10c5   :  { %v2115_v62 = vpack.c.bf16 %v2111_v5, %v2111_v5  ;;  %v2110_v20 = vmul.f32 %v2979_v6, %v2971_v25  ;;  %v2147_v10 = vpop.permute.xlu2 %2146 }
0x10c6   :  { %2159 = vmatpush.bf16.msrb.mxu0 %v2147_v10 }
0x10c7   :  { %v2114_v11 = vpack.c.bf16 %v2110_v20, %v2110_v20  ;;  %v2144_v13 = vunpack.c.l.b16 %v2115_v62 }
0x10c9   :  { %v2143_v32 = vunpack.c.l.b16 %v2114_v11 }
0x10cb   :  { %v2145_v14 = vpack.c.b16 %v2144_v13, %v2143_v32  ;;  %v2793_v32 = vld [vmem:[#allocation5 + $0x18] sm:$0xff] }
0x10cc   :  { %2350 = vmatpush.bf16.msra.mxu2 %v2793_v32 }
0x10cd   :  { %2739 = vmatmul.msk.bf16.vlgmr.msrb.gmra.mxu0 %vm374_vm2, %v2145_v14 }
0x10d0   :  { %2351 = vmatpush.bf16.msra.mxu2 %v2792_v21 }
0x10d5   :  { %v1981_v9 = vpop.f32.mrf.mxu2 }
0x10dd   :  { %v1983_v27 = vpop.f32.mrf.mxu2 }
0x10de   :  { %v1987_v7 = vpack.c.bf16 %v1983_v27, %v1981_v9 }
0x10e0   :  { %2735 = vmatmul.msk.bf16.gmra.mxu3 %vm321_vm15, %v1987_v7 }
0x10e5   :  { %v2136_v28 = vpop.f32.mrf.mxu2 }
0x10ed   :  { %v2138_v46 = vpop.f32.mrf.mxu2 }
0x10ee   :  { %v2166_v38 = vpack.c.bf16 %v2138_v46, %v2136_v28 }
0x10f0   :  { %2740 = vmatmul.msk.bf16.vlgmr.msra.gmra.mxu1 %vm321_vm15, %v2166_v38 }
0x114a   :  { %v2161_v8 = vpop.f32.mrf.mxu0 }
0x1152   :  { %v2163_v41 = vpop.f32.mrf.mxu0 }
0x1153   :  { %v2167_v24 = vpack.c.bf16 %v2163_v41, %v2161_v8 }
0x1155   :  { %2741 = vmatmul.msk.bf16.gmra.mxu1 %vm321_vm15, %v2167_v24 }
0x1163   :  { %v2011_v56 = vpop.f32.mrf.mxu3 }
0x1164   :  { %v2018_v58 = vadd.f32 %v2011_v56, %v1836_v57 }
0x116b   :  { %v2013_v50 = vpop.f32.mrf.mxu3 }
0x116c   :  { %v2019_v29 = vadd.f32 %v2013_v50, %v1838_v0 }
0x116d   :  { %v2186_v45 = vpop.f32.mrf.mxu1 }
0x116e   :  { %v2196_v47 = vadd.f32 %v2186_v45, %v2016_v44 }
0x1170   :  { %v2200_v49 = vadd.f32 %v2196_v47, %v3514_v63 }
0x1172   :  { %v3727_v25 = vadd.f32 %v2206_v48, %v2200_v49 }
0x1174   :  { %v2212_v16 = vsel %vm135_vm1, %v3727_v25, 0.0  ;;  %v2228_v30 = vmul.f32 %v3727_v25, %v3727_v25 }
0x1175   :  { %2213 = vadd.xlane.f32.xlu1 %v2212_v16  ;;  %v2188_v34 = vpop.f32.mrf.mxu1 }
0x1176   :  { %v2197_v31 = vadd.f32 %v2188_v34, %v2017_v18  ;;  %v2232_v51 = vsel %vm135_vm1, %v2228_v30, 0.0 }
0x1177   :  { %2233 = vadd.xlane.f32.xlu0 %v2232_v51 }
0x1178   :  { %v2201_v63 = vadd.f32 %v2197_v31, %v3522_v2  ;;  %v2313_v31 = vperm.slane %v3768_v26, 6 }
0x117a   :  { %v3735_v53 = vadd.f32 %v2206_v48, %v2201_v63 }
0x117c   :  { %v2215_v35 = vsel %vm135_vm1, %v3735_v53, 0.0  ;;  %v2229_v54 = vmul.f32 %v3735_v53, %v3735_v53 }
0x117d   :  { %2216 = vadd.xlane.f32.xlu2 %v2215_v35 }
0x117e   :  { %v2235_v55 = vsel %vm135_vm1, %v2229_v54, 0.0 }
0x117f   :  { %2236 = vadd.xlane.f32.xlu0 %v2235_v55 }
0x11d2   :  { %v2191_v60 = vpop.f32.mrf.mxu1 }
0x11d3   :  { %v2198_v61 = vadd.f32 %v2191_v60, %v2018_v58 }
0x11d5   :  { %v2202_v2 = vadd.f32 %v2198_v61, %v3559_v15 }
0x11d7   :  { %v3745_v22 = vadd.f32 %v2206_v48, %v2202_v2 }
0x11d9   :  { %v2218_v17 = vsel %vm135_vm1, %v3745_v22, 0.0  ;;  %v2230_v39 = vmul.f32 %v3745_v22, %v3745_v22 }
0x11da   :  { %2219 = vadd.xlane.f32.xlu0 %v2218_v17  ;;  %v2193_v3 = vpop.f32.mrf.mxu1 }
0x11db   :  { %v2199_v37 = vadd.f32 %v2193_v3, %v2019_v29  ;;  %v2238_v15 = vsel %vm135_vm1, %v2230_v39, 0.0 }
0x11dd   :  { %v2203_v4 = vadd.f32 %v2199_v37, %v3568_v33 }
0x11df   :  { %v3752_v5 = vadd.f32 %v2206_v48, %v2203_v4 }
0x11e1   :  { %v2221_v59 = vsel %vm135_vm1, %v3752_v5, 0.0  ;;  %v2231_v6 = vmul.f32 %v3752_v5, %v3752_v5 }
0x11e2   :  { %2239 = vadd.xlane.f32.xlu0 %v2238_v15  ;;  %2222 = vadd.xlane.f32.xlu1 %v2221_v59 }
0x11e3   :  { %v2241_v62 = vsel %vm135_vm1, %v2231_v6, 0.0 }
0x11e4   :  { %2242 = vadd.xlane.f32.xlu2 %v2241_v62 }
0x11e8   :  { %v2214_v20 = vpop.xlane.xlu1 %2213 }
0x11e9   :  { %v2224_v33 = vmul.f32 %v2214_v20, %v3230_v40 }
0x11ea   :  { %v2234_v10 = vpop.xlane.xlu0 %2233 }
0x11eb   :  { %v2248_v11 = vmul.f32 %v2224_v33, %v2224_v33  ;;  %v2244_v13 = vmul.f32 %v2234_v10, %v3230_v40  ;;  %v2256_v48 = vsub.f32 %v3727_v25, %v2224_v33 }
0x11ed   :  { %v2252_v14 = vsub.f32 %v2244_v13, %v2248_v11 }
0x11ef   :  { %v2260_v23 = vadd.f32 1e-06, %v2252_v14 }
0x11f0   :  { %v2217_v9 = vpop.xlane.xlu2 %2216 }
0x11f1   :  { %2980 = vrsqrt.f32 %v2260_v23  ;;  %v2225_v27 = vmul.f32 %v2217_v9, %v3230_v40  ;;  %vm2270_vm2 = vweird.f32 %v2260_v23 }
0x11f2   :  { %v2237_v7 = vpop.xlane.xlu0 %2236 }
0x11f3   :  { %v2249_v28 = vmul.f32 %v2225_v27, %v2225_v27  ;;  %v2245_v46 = vmul.f32 %v2237_v7, %v3230_v40  ;;  %v2257_v30 = vsub.f32 %v3735_v53, %v2225_v27 }
0x11f5   :  { %v2253_v38 = vsub.f32 %v2245_v46, %v2249_v28 }
0x11f7   :  { %v2981_v1 = vpop.eup %2980  ;;  %v2261_v8 = vadd.f32 1e-06, %v2253_v38 }
0x11f8   :  { %v2265_v19 = vmul.f32 %v2981_v1, %v2260_v23  ;;  %vm2271_vm15 = vweird.f32 %v2981_v1 }
0x11f9   :  { %2982 = vrsqrt.f32 %v2261_v8  ;;  %vm2272_vm3 = vmor %vm2270_vm2, %vm2271_vm15  ;;  %vm2280_vm7 = vweird.f32 %v2261_v8 }
0x11fa   :  { %v2266_v41 = vmul.f32 %v2981_v1, %v2265_v19 }
0x11fc   :  { %v2267_v24 = vmul.f32 0.5, %v2266_v41 }
0x11fe   :  { %v2268_v52 = vsub.f32 1.5, %v2267_v24 }
0x11ff   :  { %v2983_v42 = vpop.eup %2982 }
0x1200   :  { %v2269_v43 = vmul.f32 %v2981_v1, %v2268_v52  ;;  %v2275_v12 = vmul.f32 %v2983_v42, %v2261_v8  ;;  %vm2281_vm6 = vweird.f32 %v2983_v42  ;;  %v2797_v52 = vld [vmem:[%s3867_s6 + $0x38] sm:$0xff] }
0x1201   :  { %vm2282_vm8 = vmor %vm2280_vm7, %vm2281_vm6  ;;  %2445 = vmatpush.bf16.msrb.mxu3 %v2797_v52 }
0x1202   :  { %v2276_v44 = vmul.f32 %v2983_v42, %v2275_v12  ;;  %v2273_v45 = vsel %vm2272_vm3, %v2981_v1, %v2269_v43  ;;  %v2795_v43 = vld [vmem:[%s3867_s6 + $0x28] sm:$0xff]  ;;  %v2325_v12 = vperm.slane %v3768_v26, 1 }
0x1203   :  { %v2304_v18 = vmul.f32 %v2273_v45, %v2256_v48  ;;  %v2794_v45 = vld [vmem:[%s3867_s6 + $0x20] sm:$0xff] }
0x1204   :  { %v2277_v47 = vmul.f32 0.5, %v2276_v44 }
0x1205   :  { %v2309_v51 = vmul.f32 %v2308_v36, %v2304_v18 }
0x1206   :  { %v2278_v49 = vsub.f32 1.5, %v2277_v47 }
0x1207   :  { %v2314_v54 = vadd.f32 %v2313_v31, %v2309_v51 }
0x1208   :  { %v2279_v16 = vmul.f32 %v2983_v42, %v2278_v49 }
0x120a   :  { %v2283_v34 = vsel %vm2282_vm8, %v2983_v42, %v2279_v16  ;;  %v2796_v42 = vld [vmem:[%s3867_s6 + $0x30] sm:$0xff] }
0x120b   :  { %v2305_v63 = vmul.f32 %v2283_v34, %v2257_v30  ;;  %2446 = vmatpush.bf16.msrb.mxu3 %v2796_v42 }
0x120d   :  { %v2310_v35 = vmul.f32 %v2308_v36, %v2305_v63 }
0x120f   :  { %v2315_v55 = vadd.f32 %v2313_v31, %v2310_v35  ;;  %2447 = vmatpush.bf16.msrb.mxu3 %v2795_v43 }
0x1211   :  { %v2318_v56 = vpack.c.bf16 %v2315_v55, %v2314_v54 }
0x1213   :  { %2750 = vmatmul.msk.bf16.vlgmr.msra.gmra.mxu2 %vm135_vm1, %v2318_v56  ;;  %2448 = vmatpush.bf16.msrb.mxu3 %v2794_v45 }
0x124d   :  { %v2220_v57 = vpop.xlane.xlu0 %2219 }
0x124e   :  { %v2226_v58 = vmul.f32 %v2220_v57, %v3230_v40 }
0x1250   :  { %v2250_v2 = vmul.f32 %v2226_v58, %v2226_v58  ;;  %v2258_v21 = vsub.f32 %v3745_v22, %v2226_v58 }
0x1255   :  { %v2240_v60 = vpop.xlane.xlu0 %2239  ;;  %v2223_v61 = vpop.xlane.xlu1 %2222 }
0x1256   :  { %v2246_v50 = vmul.f32 %v2240_v60, %v3230_v40  ;;  %v2227_v0 = vmul.f32 %v2223_v61, %v3230_v40 }
0x1257   :  { %v2243_v29 = vpop.xlane.xlu2 %2242 }
0x1258   :  { %v2254_v17 = vsub.f32 %v2246_v50, %v2250_v2  ;;  %v2251_v3 = vmul.f32 %v2227_v0, %v2227_v0  ;;  %v2247_v37 = vmul.f32 %v2243_v29, %v3230_v40  ;;  %v2259_v28 = vsub.f32 %v3752_v5, %v2227_v0 }
0x125a   :  { %v2262_v4 = vadd.f32 1e-06, %v2254_v17  ;;  %v2255_v39 = vsub.f32 %v2247_v37, %v2251_v3 }
0x125c   :  { %2984 = vrsqrt.f32 %v2262_v4  ;;  %v2263_v15 = vadd.f32 1e-06, %v2255_v39  ;;  %vm2290_vm10 = vweird.f32 %v2262_v4 }
0x125e   :  { %2986 = vrsqrt.f32 %v2263_v15  ;;  %vm2300_vm13 = vweird.f32 %v2263_v15 }
0x1262   :  { %v2985_v59 = vpop.eup %2984 }
0x1263   :  { %v2285_v6 = vmul.f32 %v2985_v59, %v2262_v4  ;;  %vm2291_vm9 = vweird.f32 %v2985_v59 }
0x1264   :  { %v2987_v62 = vpop.eup %2986  ;;  %vm2292_vm12 = vmor %vm2290_vm10, %vm2291_vm9 }
0x1265   :  { %v2286_v20 = vmul.f32 %v2985_v59, %v2285_v6  ;;  %v2295_v33 = vmul.f32 %v2987_v62, %v2263_v15  ;;  %vm2301_vm11 = vweird.f32 %v2987_v62 }
0x1266   :  { %vm2302_vm14 = vmor %vm2300_vm13, %vm2301_vm11  ;;  %vm2603_vm13 = vcmask 254976  }
0x1267   :  { %v2287_v10 = vmul.f32 0.5, %v2286_v20  ;;  %v2296_v11 = vmul.f32 %v2987_v62, %v2295_v33 }
0x1269   :  { %v2288_v13 = vsub.f32 1.5, %v2287_v10  ;;  %v2297_v32 = vmul.f32 0.5, %v2296_v11 }
0x126b   :  { %v2289_v14 = vmul.f32 %v2985_v59, %v2288_v13  ;;  %v2298_v23 = vsub.f32 1.5, %v2297_v32 }
0x126d   :  { %v2293_v9 = vsel %vm2292_vm12, %v2985_v59, %v2289_v14  ;;  %v2299_v27 = vmul.f32 %v2987_v62, %v2298_v23 }
0x126e   :  { %v2306_v7 = vmul.f32 %v2293_v9, %v2258_v21 }
0x126f   :  { %v2303_v46 = vsel %vm2302_vm14, %v2987_v62, %v2299_v27 }
0x1270   :  { %v2307_v38 = vmul.f32 %v2303_v46, %v2259_v28  ;;  %v2311_v1 = vmul.f32 %v2308_v36, %v2306_v7  ;;  %v2410_v46 = vperm.slane %v3768_v26, 2 }
0x1272   :  { %v2312_v8 = vmul.f32 %v2308_v36, %v2307_v38  ;;  %v2316_v19 = vadd.f32 %v2313_v31, %v2311_v1 }
0x1274   :  { %v2317_v41 = vadd.f32 %v2313_v31, %v2312_v8 }
0x1276   :  { %v2319_v24 = vpack.c.bf16 %v2317_v41, %v2316_v19 }
0x1278   :  { %2751 = vmatmul.msk.bf16.gmra.mxu2 %vm135_vm1, %v2319_v24 }
0x1296   :  { %v2353_v44 = vpop.f32.mrf.mxu2 }
0x1297   :  { %v2354_v47 = vadd.f32 %v2353_v44, %v2325_v12 }
0x1299   :  { %v2363_v48 = vmul.f32 %v2354_v47, %v2354_v47 }
0x129b   :  { %v2367_v49 = vmul.f32 %v2363_v48, %v2354_v47 }
0x129d   :  { %v2371_v36 = vmul.f32 0.044715, %v2367_v49 }
0x129e   :  { %v2355_v18 = vpop.f32.mrf.mxu2 }
0x129f   :  { %v2375_v16 = vadd.f32 %v2371_v36, %v2354_v47  ;;  %v2356_v30 = vadd.f32 %v2355_v18, %v2325_v12 }
0x12a1   :  { %v2379_v34 = vmul.f32 0.7978846, %v2375_v16  ;;  %v2364_v31 = vmul.f32 %v2356_v30, %v2356_v30 }
0x12a3   :  { %v2368_v51 = vmul.f32 %v2364_v31, %v2356_v30  ;;  %2988 = vtanh.f32 %v2379_v34 }
0x12a5   :  { %v2372_v63 = vmul.f32 0.044715, %v2368_v51 }
0x12a7   :  { %v2376_v35 = vadd.f32 %v2372_v63, %v2356_v30 }
0x12a9   :  { %v2380_v54 = vmul.f32 0.7978846, %v2376_v35  ;;  %v2989_v55 = vpop.eup %2988 }
0x12aa   :  { %v2387_v56 = vadd.f32 1.0, %v2989_v55 }
0x12ab   :  { %2990 = vtanh.f32 %v2380_v54 }
0x12ac   :  { %v2391_v58 = vmul.f32 0.5, %v2387_v56 }
0x12ae   :  { %v2395_v2 = vmul.f32 %v2391_v58, %v2354_v47 }
0x12b1   :  { %v2991_v57 = vpop.eup %2990 }
0x12b2   :  { %v2388_v60 = vadd.f32 1.0, %v2991_v57 }
0x12b4   :  { %v2392_v61 = vmul.f32 0.5, %v2388_v60 }
0x12b6   :  { %v2396_v50 = vmul.f32 %v2392_v61, %v2356_v30 }
0x12b8   :  { %v2399_v0 = vpack.c.bf16 %v2396_v50, %v2395_v2 }
0x12ba   :  { %2776 = vmatmul.msk.bf16.vlgmr.msrb.gmra.mxu3 %vm108_vm0, %v2399_v0 }
0x12fb   :  { %v2358_v29 = vpop.f32.mrf.mxu2 }
0x12fc   :  { %v2359_v17 = vadd.f32 %v2358_v29, %v2325_v12 }
0x12fe   :  { %v2365_v3 = vmul.f32 %v2359_v17, %v2359_v17 }
0x1300   :  { %v2369_v37 = vmul.f32 %v2365_v3, %v2359_v17 }
0x1302   :  { %v2373_v4 = vmul.f32 0.044715, %v2369_v37 }
0x1303   :  { %v2360_v39 = vpop.f32.mrf.mxu2 }
0x1304   :  { %v2377_v15 = vadd.f32 %v2373_v4, %v2359_v17  ;;  %v2361_v59 = vadd.f32 %v2360_v39, %v2325_v12 }
0x1306   :  { %v2381_v6 = vmul.f32 0.7978846, %v2377_v15  ;;  %v2366_v62 = vmul.f32 %v2361_v59, %v2361_v59 }
0x1308   :  { %v2370_v20 = vmul.f32 %v2366_v62, %v2361_v59  ;;  %2992 = vtanh.f32 %v2381_v6 }
0x130a   :  { %v2374_v33 = vmul.f32 0.044715, %v2370_v20 }
0x130c   :  { %v2378_v10 = vadd.f32 %v2374_v33, %v2361_v59 }
0x130e   :  { %v2382_v11 = vmul.f32 0.7978846, %v2378_v10  ;;  %v2993_v13 = vpop.eup %2992 }
0x130f   :  { %v2389_v32 = vadd.f32 1.0, %v2993_v13 }
0x1310   :  { %2994 = vtanh.f32 %v2382_v11 }
0x1311   :  { %v2393_v23 = vmul.f32 0.5, %v2389_v32 }
0x1313   :  { %v2397_v27 = vmul.f32 %v2393_v23, %v2359_v17 }
0x1316   :  { %v2995_v14 = vpop.eup %2994 }
0x1317   :  { %v2390_v21 = vadd.f32 1.0, %v2995_v14 }
0x1319   :  { %v2394_v9 = vmul.f32 0.5, %v2390_v21 }
0x131b   :  { %v2398_v7 = vmul.f32 %v2394_v9, %v2361_v59 }
0x131d   :  { %v2400_v28 = vpack.c.bf16 %v2398_v7, %v2397_v27 }
0x131f   :  { %2777 = vmatmul.msk.bf16.gmra.mxu3 %vm108_vm0, %v2400_v28  ;;  %v2464_v28 = vld [vmem:[%s3869_s8] sm:$0x3]  ;;  %s3103_s8 = smov [#allocation7]  }
0x1320   :  { %s2610_s12 = sshll.u32 %s3103_s8, 4  ;;  %s2611_s12 = int_to_ptr.vmem [resolvable:$true] %s2610_s12 }
0x133d   :  { %v2450_v38 = vpop.f32.mrf.mxu3 }
0x133e   :  { %v2451_v1 = vadd.f32 %v2450_v38, %v2410_v46 }
0x1340   :  { %v3798_v8 = vadd.f32 %v2451_v1, %v3727_v25 }
0x1342   :  { %v2465_v19 = vsel %vm135_vm1, %v3798_v8, 0.0  ;;  %v2481_v41 = vmul.f32 %v3798_v8, %v3798_v8 }
0x1343   :  { %2466 = vadd.xlane.f32.xlu1 %v2465_v19 }
0x1344   :  { %v2485_v24 = vsel %vm135_vm1, %v2481_v41, 0.0 }
0x1345   :  { %v2452_v52 = vpop.f32.mrf.mxu3  ;;  %2486 = vadd.xlane.f32.xlu0 %v2485_v24  ;;  %v2561_v24 = vperm.slane %v2464_v28, 0 }
0x1346   :  { %v2453_v42 = vadd.f32 %v2452_v52, %v2410_v46 }
0x1348   :  { %v3806_v43 = vadd.f32 %v2453_v42, %v3735_v53 }
0x134a   :  { %v2468_v26 = vsel %vm135_vm1, %v3806_v43, 0.0  ;;  %v2482_v49 = vmul.f32 %v3806_v43, %v3806_v43 }
0x134c   :  { %v2488_v18 = vsel %vm135_vm1, %v2482_v49, 0.0 }
0x134d   :  { %2469 = vadd.xlane.f32.xlu0 %v2468_v26 }
0x13a2   :  { %v2455_v25 = vpop.f32.mrf.mxu3 }
0x13a3   :  { %v2456_v12 = vadd.f32 %v2455_v25, %v2410_v46 }
0x13a5   :  { %v3811_v44 = vadd.f32 %v2456_v12, %v3745_v22 }
0x13a7   :  { %v2471_v45 = vsel %vm135_vm1, %v3811_v44, 0.0  ;;  %v2483_v30 = vmul.f32 %v3811_v44, %v3811_v44 }
0x13a8   :  { %2472 = vadd.xlane.f32.xlu2 %v2471_v45 }
0x13a9   :  { %v2491_v34 = vsel %vm135_vm1, %v2483_v30, 0.0 }
0x13aa   :  { %v2457_v47 = vpop.f32.mrf.mxu3 }
0x13ab   :  { %v2458_v48 = vadd.f32 %v2457_v47, %v2410_v46 }
0x13ad   :  { %v3818_v53 = vadd.f32 %v2458_v48, %v3752_v5  ;;  %v2566_v48 = vperm.slane %v2464_v28, 1 }
0x13af   :  { %v2474_v36 = vsel %vm135_vm1, %v3818_v53, 0.0  ;;  %v2484_v22 = vmul.f32 %v3818_v53, %v3818_v53 }
0x13b0   :  { %2475 = vadd.xlane.f32.xlu1 %v2474_v36  ;;  %2489 = vadd.xlane.f32.xlu2 %v2488_v18 }
0x13b1   :  { %v2494_v16 = vsel %vm135_vm1, %v2484_v22, 0.0 }
0x13b2   :  { %2495 = vadd.xlane.f32.xlu0 %v2494_v16 }
0x13b6   :  { %v2467_v5 = vpop.xlane.xlu1 %2466 }
0x13b7   :  { %v2477_v31 = vmul.f32 %v2467_v5, %v3230_v40 }
0x13b8   :  { %2492 = vadd.xlane.f32.xlu1 %v2491_v34  ;;  %v2487_v51 = vpop.xlane.xlu0 %2486 }
0x13b9   :  { %v2501_v63 = vmul.f32 %v2477_v31, %v2477_v31  ;;  %v2497_v35 = vmul.f32 %v2487_v51, %v3230_v40  ;;  %v2509_v19 = vsub.f32 %v3798_v8, %v2477_v31  ;;  %v3102_v31 = vmov 16.0  }
0x13bb   :  { %v2505_v54 = vsub.f32 %v2497_v35, %v2501_v63 }
0x13bd   :  { %v2513_v55 = vadd.f32 1e-06, %v2505_v54 }
0x13bf   :  { %2996 = vrsqrt.f32 %v2513_v55  ;;  %vm2523_vm4 = vweird.f32 %v2513_v55 }
0x13c0   :  { %v2470_v58 = vpop.xlane.xlu0 %2469 }
0x13c1   :  { %v2478_v61 = vmul.f32 %v2470_v58, %v3230_v40 }
0x13c3   :  { %v2502_v29 = vmul.f32 %v2478_v61, %v2478_v61  ;;  %v2510_v36 = vsub.f32 %v3806_v43, %v2478_v61 }
0x13c5   :  { %v2997_v57 = vpop.eup %2996 }
0x13c6   :  { %v2518_v60 = vmul.f32 %v2997_v57, %v2513_v55  ;;  %vm2524_vm0 = vweird.f32 %v2997_v57 }
0x13c7   :  { %vm2525_vm5 = vmor %vm2523_vm4, %vm2524_vm0 }
0x13c8   :  { %v2519_v2 = vmul.f32 %v2997_v57, %v2518_v60 }
0x13ca   :  { %v2520_v59 = vmul.f32 0.5, %v2519_v2 }
0x13cc   :  { %v2521_v10 = vsub.f32 1.5, %v2520_v59 }
0x13ce   :  { %v2522_v23 = vmul.f32 %v2997_v57, %v2521_v10 }
0x13d0   :  { %v2526_v46 = vsel %vm2525_vm5, %v2997_v57, %v2522_v23 }
0x13d1   :  { %v2557_v52 = vmul.f32 %v2526_v46, %v2509_v19 }
0x13d3   :  { %v2562_v49 = vmul.f32 %v2561_v24, %v2557_v52 }
0x13d5   :  { %v2567_v51 = vadd.f32 %v2566_v48, %v2562_v49 }
0x141b   :  { %v2473_v56 = vpop.xlane.xlu2 %2472 }
0x141c   :  { %v3840_v6 = vmul.f32 %v2473_v56, %v3230_v40  ;;  %v2571_v56 = vsel %vm135_vm1, %v2567_v51, 0.0 }
0x141e   :  { %v2503_v13 = vmul.f32 %v3840_v6, %v3840_v6  ;;  %v2511_v57 = vsub.f32 %v3811_v44, %v3840_v6 }
0x1423   :  { %v2476_v50 = vpop.xlane.xlu1 %2475  ;;  %v2490_v0 = vpop.xlane.xlu2 %2489 }
0x1424   :  { %v3833_v17 = vmul.f32 %v2476_v50, %v3230_v40  ;;  %v2498_v3 = vmul.f32 %v2490_v0, %v3230_v40 }
0x1425   :  { %v2496_v37 = vpop.xlane.xlu0 %2495 }
0x1426   :  { %v2504_v4 = vmul.f32 %v3833_v17, %v3833_v17  ;;  %v2506_v39 = vsub.f32 %v2498_v3, %v2502_v29  ;;  %v2500_v15 = vmul.f32 %v2496_v37, %v3230_v40  ;;  %v2512_v16 = vsub.f32 %v3818_v53, %v3833_v17 }
0x1428   :  { %v2514_v62 = vadd.f32 1e-06, %v2506_v39  ;;  %v2508_v20 = vsub.f32 %v2500_v15, %v2504_v4 }
0x142a   :  { %2998 = vrsqrt.f32 %v2514_v62  ;;  %v2516_v33 = vadd.f32 1e-06, %v2508_v20  ;;  %vm2533_vm2 = vweird.f32 %v2514_v62 }
0x142b   :  { %v2493_v11 = vpop.xlane.xlu1 %2492 }
0x142c   :  { %3000 = vrsqrt.f32 %v2516_v33  ;;  %v2499_v32 = vmul.f32 %v2493_v11, %v3230_v40  ;;  %vm2553_vm7 = vweird.f32 %v2516_v33 }
0x142e   :  { %v2507_v14 = vsub.f32 %v2499_v32, %v2503_v13 }
0x1430   :  { %v2999_v21 = vpop.eup %2998  ;;  %v2515_v9 = vadd.f32 1e-06, %v2507_v14 }
0x1431   :  { %v2528_v27 = vmul.f32 %v2999_v21, %v2514_v62  ;;  %vm2534_vm15 = vweird.f32 %v2999_v21 }
0x1432   :  { %v3001_v7 = vpop.eup %3000  ;;  %3002 = vrsqrt.f32 %v2515_v9  ;;  %vm2535_vm6 = vmor %vm2533_vm2, %vm2534_vm15  ;;  %vm2543_vm10 = vweird.f32 %v2515_v9 }
0x1433   :  { %v2529_v38 = vmul.f32 %v2999_v21, %v2528_v27  ;;  %v2548_v1 = vmul.f32 %v3001_v7, %v2516_v33  ;;  %vm2554_vm3 = vweird.f32 %v3001_v7  ;;  %3004 = vrcp.f32 %v3102_v31 }
0x1434   :  { %vm2555_vm8 = vmor %vm2553_vm7, %vm2554_vm3 }
0x1435   :  { %v2530_v40 = vmul.f32 0.5, %v2529_v38  ;;  %v2549_v41 = vmul.f32 %v3001_v7, %v2548_v1 }
0x1437   :  { %v2531_v42 = vsub.f32 1.5, %v2530_v40  ;;  %v2550_v26 = vmul.f32 0.5, %v2549_v41 }
0x1438   :  { %v3003_v25 = vpop.eup %3002 }
0x1439   :  { %v2532_v12 = vmul.f32 %v2999_v21, %v2531_v42  ;;  %v2551_v45 = vsub.f32 1.5, %v2550_v26  ;;  %v2538_v47 = vmul.f32 %v3003_v25, %v2515_v9  ;;  %vm2544_vm9 = vweird.f32 %v3003_v25  ;;  %v3005_v60 = vpop.eup %3004 }
0x143a   :  { %vm2545_vm11 = vmor %vm2543_vm10, %vm2544_vm9  ;;  %v2590_v3 = vmul.f32 16.0, %v3005_v60  ;;  %vm2594_vm12 = vweird.f32 %v3005_v60 }
0x143b   :  { %v2536_v18 = vsel %vm2535_vm6, %v2999_v21, %v2532_v12  ;;  %v2552_v8 = vmul.f32 %v3001_v7, %v2551_v45  ;;  %v2539_v22 = vmul.f32 %v3003_v25, %v2538_v47 }
0x143c   :  { %v2558_v30 = vmul.f32 %v2536_v18, %v2510_v36  ;;  %v2591_v44 = vsub.f32 1.0, %v2590_v3 }
0x143d   :  { %v2556_v34 = vsel %vm2555_vm8, %v3001_v7, %v2552_v8  ;;  %v2540_v5 = vmul.f32 0.5, %v2539_v22 }
0x143e   :  { %v2563_v63 = vmul.f32 %v2561_v24, %v2558_v30  ;;  %v2560_v35 = vmul.f32 %v2556_v34, %v2512_v16  ;;  %v2592_v33 = vmul.f32 %v3005_v60, %v2591_v44 }
0x143f   :  { %v2541_v54 = vsub.f32 1.5, %v2540_v5 }
0x1440   :  { %v2568_v43 = vadd.f32 %v2566_v48, %v2563_v63  ;;  %v2565_v58 = vmul.f32 %v2561_v24, %v2560_v35  ;;  %v2593_v32 = vadd.f32 %v3005_v60, %v2592_v33 }
0x1441   :  { %v2542_v55 = vmul.f32 %v3003_v25, %v2541_v54 }
0x1442   :  { %v2572_v53 = vsel %vm135_vm1, %v2568_v43, 0.0  ;;  %v2570_v29 = vadd.f32 %v2566_v48, %v2565_v58  ;;  %v2595_v9 = vsel %vm2594_vm12, %v3005_v60, %v2593_v32 }
0x1443   :  { %v2546_v61 = vsel %vm2545_vm11, %v3003_v25, %v2542_v55  ;;  %v2573_v2 = vadd.f32 %v2572_v53, %v2571_v56 }
0x1444   :  { %v2559_v50 = vmul.f32 %v2546_v61, %v2511_v57  ;;  %v2581_v15 = vsel %vm135_vm1, %v2570_v29, 0.0 }
0x1445   :  { %v2574_v0 = vrot.slane %v2573_v2, 4 }
0x1446   :  { %v2564_v17 = vmul.f32 %v2561_v24, %v2559_v50 }
0x1447   :  { %v2575_v37 = vadd.f32 %v2574_v0, %v2573_v2 }
0x1448   :  { %v2569_v4 = vadd.f32 %v2566_v48, %v2564_v17 }
0x1449   :  { %v2576_v39 = vrot.slane %v2575_v37, 2 }
0x144a   :  { %v2580_v59 = vsel %vm135_vm1, %v2569_v4, 0.0  ;;  %vm2600_vm1 = vcmask 1041409  }
0x144b   :  { %v2582_v6 = vadd.f32 %v2581_v15, %v2580_v59  ;;  %v2577_v62 = vadd.f32 %v2576_v39, %v2575_v37 }
0x144d   :  { %v2583_v20 = vrot.slane %v2582_v6, 4  ;;  %v2578_v11 = vrot.slane %v2577_v62, 1 }
0x144f   :  { %v2584_v10 = vadd.f32 %v2583_v20, %v2582_v6  ;;  %v2579_v23 = vadd.f32 %v2578_v11, %v2577_v62 }
0x1451   :  { %v2585_v13 = vrot.slane %v2584_v10, 2  ;;  %v2596_v7 = vmul.f32 %v2595_v9, %v2579_v23 }
0x1453   :  { %v2586_v14 = vadd.f32 %v2585_v13, %v2584_v10 }
0x1455   :  { %v2587_v21 = vrot.slane %v2586_v14, 1 }
0x1457   :  { %v2588_v27 = vadd.f32 %v2587_v21, %v2586_v14 }
0x1459   :  { %v2597_v28 = vmul.f32 %v2595_v9, %v2588_v27 }
0x145b   :  { %v2601_v46 = vsel %vm2600_vm1, %v2597_v28, %v2596_v7 }
0x145c   :  { %2604 = vst.msk [vmem:[#allocation7] sm:$0x3] %vm2603_vm13, %v2601_v46 }
0x145d   :  { %2615 = dma.vmem_to_hbm [thread:$0]  %s2611_s12, 32, %s2613_s0, [#allocation4]  }
0x145e   :  { %3084 = dma.done.wait [#allocation4], 32  }
0x145f   :  { %3085 = vsyncadd [#allocation4], 4294967264 }
0x1460   :  { %2620 = vsyncpa [#allocation3], 1 }
0x1461   :  { %2621 = vsyncpa [#allocation6], 1 }
0x1462   :  { %2622 = vsyncpa [#allocation4], 1 }

</bundles_post_ra>
